<compile_context>
chip_gen: v6e
topology: v6e:2x2x1
jax: 0.10.0
libtpu: 0.0.40
codegen_flags: <defaults>
</compile_context>

<pallas_src>
import functools

import jax
import jax.numpy as jnp
from jax import lax
from jax.experimental import pallas as pl
from jax.experimental.pallas import tpu as pltpu

HIDDEN_SIZE = 128
INPUT_SIZE = 28
NUM_CLASSES = 10
NUM_LAYERS = 2  # the fused kernel below hard-codes the module's 2-layer structure


def _fused_lstm_fc_kernel(xg0_ref, whh0_ref, wih1_ref, whh1_ref, b1_ref,
                          wfc_ref, bfc_ref, out_ref):
    """Fused 2-layer LSTM recurrence + FC head.

    xg0_ref : (T, B, 4H) f32  precomputed layer-0 gate pre-activations (x@W_ih0 + b0)
    whh0_ref: (H, 4H) bf16    layer-0 recurrent weights   (gate order i,f,o,g)
    wih1_ref: (H, 4H) bf16    layer-1 input weights
    whh1_ref: (H, 4H) bf16    layer-1 recurrent weights
    b1_ref  : (1, 4H) f32     layer-1 combined bias (b_ih + b_hh)
    wfc_ref : (H, C)  f32, bfc_ref: (1, C) f32
    out_ref : (B, C)  f32     logits
    """
    T, B, _ = xg0_ref.shape
    H = whh0_ref.shape[0]

    # Load the (small) weights once; keep them live across the whole recurrence.
    whh0 = whh0_ref[...]
    wih1 = wih1_ref[...]
    whh1 = whh1_ref[...]
    b1 = jnp.broadcast_to(b1_ref[...], (B, 4 * H))  # hoisted broadcast (no per-iter bcast)

    def lstm_cell(gates, c):
        # gate columns are pre-permuted to [i, f, o, g]:
        #   one wide sigmoid over (B, 3H) + one tanh over (B, H)
        ifo = jax.nn.sigmoid(gates[:, : 3 * H])
        g = jnp.tanh(gates[:, 3 * H:])
        i_g = ifo[:, 0 * H:1 * H]
        f_g = ifo[:, 1 * H:2 * H]
        o_g = ifo[:, 2 * H:3 * H]
        c_new = f_g * c + i_g * g
        h_new = o_g * jnp.tanh(c_new)
        return h_new, c_new

    def step(t, carry):
        h0, c0, h1, c1 = carry
        # Layer 0: only the recurrent matmul sits on the serial critical path.
        g0 = xg0_ref[t] + jnp.dot(h0.astype(whh0.dtype), whh0,
                                  preferred_element_type=jnp.float32)
        h0, c0 = lstm_cell(g0, c0)
        # Layer 1 consumes layer-0's fresh hidden state directly (no HBM writeback).
        g1 = (jnp.dot(h0.astype(wih1.dtype), wih1,
                      preferred_element_type=jnp.float32)
              + jnp.dot(h1.astype(whh1.dtype), whh1,
                        preferred_element_type=jnp.float32)
              + b1)
        h1, c1 = lstm_cell(g1, c1)
        return h0, c0, h1, c1

    z = jnp.zeros((B, H), jnp.float32)   # h0 = c0 = 0, per the PyTorch module
    _, _, h1, _ = lax.fori_loop(0, T, step, (z, z, z, z), unroll=True)

    # FC head on the final hidden state of the last layer (== out[:, -1, :] @ W_fc + b).
    out_ref[...] = (jnp.dot(h1, wfc_ref[...], preferred_element_type=jnp.float32)
                    + bfc_ref[...])


def _fused_forward(xg0, whh0, wih1, whh1, b1, wfc, bfc):
    T, B, _ = xg0.shape
    C = wfc.shape[1]
    vmem = pl.BlockSpec(memory_space=pltpu.MemorySpace.VMEM)  # whole array resident in VMEM
    return pl.pallas_call(
        _fused_lstm_fc_kernel,
        out_shape=jax.ShapeDtypeStruct((B, C), jnp.float32),
        in_specs=[vmem] * 7,
        out_specs=vmem,
    )(xg0, whh0, wih1, whh1, b1, wfc, bfc)


def _reorder_ifgo_to_ifog(w):
    """Permute PyTorch's [i, f, g, o] gate blocks (axis 0) to [i, f, o, g]."""
    i, f, g, o = jnp.split(w, 4, axis=0)
    return jnp.concatenate([i, f, o, g], axis=0)


def init_params(key, input_size, hidden_size, num_layers, num_classes):
    """Deterministic init mimicking PyTorch's U(-1/sqrt(H), 1/sqrt(H)) LSTM init."""
    params = {}
    bound = 1.0 / jnp.sqrt(jnp.float32(hidden_size))
    for layer in range(num_layers):
        d_in = input_size if layer == 0 else hidden_size
        key, k1, k2, k3, k4 = jax.random.split(key, 5)
        w_ih = jax.random.uniform(k1, (4 * hidden_size, d_in),
                                  minval=-bound, maxval=bound, dtype=jnp.float32)
        w_hh = jax.random.uniform(k2, (4 * hidden_size, hidden_size),
                                  minval=-bound, maxval=bound, dtype=jnp.float32)
        b_ih = jax.random.uniform(k3, (4 * hidden_size,),
                                  minval=-bound, maxval=bound, dtype=jnp.float32)
        b_hh = jax.random.uniform(k4, (4 * hidden_size,),
                                  minval=-bound, maxval=bound, dtype=jnp.float32)
        # Reorder gate blocks to [i, f, o, g] and transpose to right-multiply layouts.
        w_ih_t = _reorder_ifgo_to_ifog(w_ih).T              # (d_in, 4H)
        w_hh_t = _reorder_ifgo_to_ifog(w_hh).T              # (H, 4H)
        bias = (_reorder_ifgo_to_ifog(b_ih)
                + _reorder_ifgo_to_ifog(b_hh))[None, :]     # (1, 4H) f32
        if layer == 0:
            params["l0"] = {
                "w_ih_t": w_ih_t,                            # f32: used in XLA input projection
                "w_hh_t": w_hh_t.astype(jnp.bfloat16),       # bf16 MXU operand, f32 accumulate
                "bias": bias,
            }
        else:
            params[f"l{layer}"] = {
                "w_ih_t": w_ih_t.astype(jnp.bfloat16),
                "w_hh_t": w_hh_t.astype(jnp.bfloat16),
                "bias": bias,
            }
    key, k1, k2 = jax.random.split(key, 3)
    w_fc = jax.random.uniform(k1, (num_classes, hidden_size),
                              minval=-bound, maxval=bound, dtype=jnp.float32)
    b_fc = jax.random.uniform(k2, (num_classes,),
                              minval=-bound, maxval=bound, dtype=jnp.float32)
    params["fc"] = {"w_t": w_fc.T, "bias": b_fc[None, :]}
    return params


@jax.jit
def rnn_forward(params, x):
    """x: (B, T, input_size) -> logits (B, num_classes).  h0 = c0 = 0 (as in PyTorch)."""
    # Hoisted layer-0 input projection for ALL timesteps: a single well-shaped
    # (T*B, D) @ (D, 4H) matmul (plain XLA, off the serial critical path), with
    # the combined bias folded in.
    x_tm = jnp.transpose(x, (1, 0, 2))                       # (T, B, D) time-major
    xg0 = (jnp.einsum("tbd,dg->tbg", x_tm, params["l0"]["w_ih_t"])
           + params["l0"]["bias"])                           # (T, B, 4H) f32
    return _fused_forward(
        xg0,
        params["l0"]["w_hh_t"],
        params["l1"]["w_ih_t"],
        params["l1"]["w_hh_t"],
        params["l1"]["bias"],
        params["fc"]["w_t"],
        params["fc"]["bias"],
    )


if __name__ == "__main__":
    key = jax.random.PRNGKey(0)
    key, pkey, xkey = jax.random.split(key, 3)

    params = init_params(pkey, INPUT_SIZE, HIDDEN_SIZE, NUM_LAYERS, NUM_CLASSES)

    B, T = 2, 8
    x = jax.random.normal(xkey, (B, T, INPUT_SIZE), dtype=jnp.float32)

    out = rnn_forward(params, x)
    jax.block_until_ready(out)
    assert out.shape == (B, NUM_CLASSES)
    print("KERNEL_OK")
</pallas_src>

<mosaic_0001>
module attributes {stable_mosaic.version = 11 : i64} {
  func.func @_fused_lstm_fc_kernel(%arg0: memref<8x2x512xf32, #tpu.memory_space<vmem>>, %arg1: memref<128x512xbf16, #tpu.memory_space<vmem>>, %arg2: memref<128x512xbf16, #tpu.memory_space<vmem>>, %arg3: memref<128x512xbf16, #tpu.memory_space<vmem>>, %arg4: memref<1x512xf32, #tpu.memory_space<vmem>>, %arg5: memref<128x10xf32, #tpu.memory_space<vmem>>, %arg6: memref<1x10xf32, #tpu.memory_space<vmem>>, %arg7: memref<2x10xf32, #tpu.memory_space<vmem>>) attributes {dimension_semantics = [], scalar_prefetch = 0 : i64, scratch_operands = 0 : i64, tpu.core_type = #tpu.core_type<tc>} {
    %c0 = arith.constant 0 : index
    %c0_0 = arith.constant 0 : index
    %0 = vector.load %arg1[%c0, %c0_0] : memref<128x512xbf16, #tpu.memory_space<vmem>>, vector<128x512xbf16>
    %c0_1 = arith.constant 0 : index
    %c0_2 = arith.constant 0 : index
    %1 = vector.load %arg2[%c0_1, %c0_2] : memref<128x512xbf16, #tpu.memory_space<vmem>>, vector<128x512xbf16>
    %c0_3 = arith.constant 0 : index
    %c0_4 = arith.constant 0 : index
    %2 = vector.load %arg3[%c0_3, %c0_4] : memref<128x512xbf16, #tpu.memory_space<vmem>>, vector<128x512xbf16>
    %c0_5 = arith.constant 0 : index
    %c0_6 = arith.constant 0 : index
    %3 = vector.load %arg4[%c0_5, %c0_6] : memref<1x512xf32, #tpu.memory_space<vmem>>, vector<1x512xf32>
    %4 = vector.shape_cast %3 : vector<1x512xf32> to vector<1x512xf32>
    %5 = vector.broadcast %4 : vector<1x512xf32> to vector<2x512xf32>
    %cst = arith.constant 0.000000e+00 : f32
    %6 = vector.broadcast %cst : f32 to vector<2x128xf32>
    %c0_i32 = arith.constant 0 : i32
    %7 = arith.index_cast %c0_i32 : i32 to index
    %c0_7 = arith.constant 0 : index
    %c0_8 = arith.constant 0 : index
    %8 = vector.load %arg0[%7, %c0_7, %c0_8] : memref<8x2x512xf32, #tpu.memory_space<vmem>>, vector<1x2x512xf32>
    %9 = vector.shape_cast %8 : vector<1x2x512xf32> to vector<2x512xf32>
    %10 = arith.truncf %6 : vector<2x128xf32> to vector<2x128xbf16>
    %cst_9 = arith.constant dense<0.000000e+00> : vector<2x512xf32>
    %11 = tpu.matmul %10, %0, %cst_9 {dimension_numbers = #tpu.dot_dimension_numbers<[1], [0], [0], [1], [0, 0, 1, 1], [], []>} : vector<2x128xbf16>, vector<128x512xbf16>, vector<2x512xf32> -> vector<2x512xf32>
    %12 = arith.addf %9, %11 : vector<2x512xf32>
    %13 = vector.extract_strided_slice %12 {offsets = [0, 0], sizes = [2, 384], strides = [1, 1]} : vector<2x512xf32> to vector<2x384xf32>
    %14 = arith.negf %13 : vector<2x384xf32>
    %15 = math.exp %14 : vector<2x384xf32>
    %cst_10 = arith.constant 1.000000e+00 : f32
    %16 = vector.broadcast %cst_10 : f32 to vector<2x384xf32>
    %17 = arith.addf %16, %15 : vector<2x384xf32>
    %18 = arith.divf %16, %17 : vector<2x384xf32>
    %19 = vector.extract_strided_slice %12 {offsets = [0, 384], sizes = [2, 128], strides = [1, 1]} : vector<2x512xf32> to vector<2x128xf32>
    %20 = math.tanh %19 : vector<2x128xf32>
    %21 = vector.extract_strided_slice %18 {offsets = [0, 0], sizes = [2, 128], strides = [1, 1]} : vector<2x384xf32> to vector<2x128xf32>
    %22 = vector.extract_strided_slice %18 {offsets = [0, 128], sizes = [2, 128], strides = [1, 1]} : vector<2x384xf32> to vector<2x128xf32>
    %23 = vector.extract_strided_slice %18 {offsets = [0, 256], sizes = [2, 128], strides = [1, 1]} : vector<2x384xf32> to vector<2x128xf32>
    %24 = arith.mulf %22, %6 : vector<2x128xf32>
    %25 = arith.mulf %21, %20 : vector<2x128xf32>
    %26 = arith.addf %24, %25 : vector<2x128xf32>
    %27 = math.tanh %26 : vector<2x128xf32>
    %28 = arith.mulf %23, %27 : vector<2x128xf32>
    %29 = arith.truncf %28 : vector<2x128xf32> to vector<2x128xbf16>
    %cst_11 = arith.constant dense<0.000000e+00> : vector<2x512xf32>
    %30 = tpu.matmul %29, %1, %cst_11 {dimension_numbers = #tpu.dot_dimension_numbers<[1], [0], [0], [1], [0, 0, 1, 1], [], []>} : vector<2x128xbf16>, vector<128x512xbf16>, vector<2x512xf32> -> vector<2x512xf32>
    %31 = arith.truncf %6 : vector<2x128xf32> to vector<2x128xbf16>
    %cst_12 = arith.constant dense<0.000000e+00> : vector<2x512xf32>
    %32 = tpu.matmul %31, %2, %cst_12 {dimension_numbers = #tpu.dot_dimension_numbers<[1], [0], [0], [1], [0, 0, 1, 1], [], []>} : vector<2x128xbf16>, vector<128x512xbf16>, vector<2x512xf32> -> vector<2x512xf32>
    %33 = arith.addf %30, %32 : vector<2x512xf32>
    %34 = arith.addf %33, %5 : vector<2x512xf32>
    %35 = vector.extract_strided_slice %34 {offsets = [0, 0], sizes = [2, 384], strides = [1, 1]} : vector<2x512xf32> to vector<2x384xf32>
    %36 = arith.negf %35 : vector<2x384xf32>
    %37 = math.exp %36 : vector<2x384xf32>
    %cst_13 = arith.constant 1.000000e+00 : f32
    %38 = vector.broadcast %cst_13 : f32 to vector<2x384xf32>
    %39 = arith.addf %38, %37 : vector<2x384xf32>
    %40 = arith.divf %38, %39 : vector<2x384xf32>
    %41 = vector.extract_strided_slice %34 {offsets = [0, 384], sizes = [2, 128], strides = [1, 1]} : vector<2x512xf32> to vector<2x128xf32>
    %42 = math.tanh %41 : vector<2x128xf32>
    %43 = vector.extract_strided_slice %40 {offsets = [0, 0], sizes = [2, 128], strides = [1, 1]} : vector<2x384xf32> to vector<2x128xf32>
    %44 = vector.extract_strided_slice %40 {offsets = [0, 128], sizes = [2, 128], strides = [1, 1]} : vector<2x384xf32> to vector<2x128xf32>
    %45 = vector.extract_strided_slice %40 {offsets = [0, 256], sizes = [2, 128], strides = [1, 1]} : vector<2x384xf32> to vector<2x128xf32>
    %46 = arith.mulf %44, %6 : vector<2x128xf32>
    %47 = arith.mulf %43, %42 : vector<2x128xf32>
    %48 = arith.addf %46, %47 : vector<2x128xf32>
    %49 = math.tanh %48 : vector<2x128xf32>
    %50 = arith.mulf %45, %49 : vector<2x128xf32>
    %c1_i32 = arith.constant 1 : i32
    %51 = arith.index_cast %c1_i32 : i32 to index
    %c0_14 = arith.constant 0 : index
    %c0_15 = arith.constant 0 : index
    %52 = vector.load %arg0[%51, %c0_14, %c0_15] : memref<8x2x512xf32, #tpu.memory_space<vmem>>, vector<1x2x512xf32>
    %53 = vector.shape_cast %52 : vector<1x2x512xf32> to vector<2x512xf32>
    %54 = arith.truncf %28 : vector<2x128xf32> to vector<2x128xbf16>
    %cst_16 = arith.constant dense<0.000000e+00> : vector<2x512xf32>
    %55 = tpu.matmul %54, %0, %cst_16 {dimension_numbers = #tpu.dot_dimension_numbers<[1], [0], [0], [1], [0, 0, 1, 1], [], []>} : vector<2x128xbf16>, vector<128x512xbf16>, vector<2x512xf32> -> vector<2x512xf32>
    %56 = arith.addf %53, %55 : vector<2x512xf32>
    %57 = vector.extract_strided_slice %56 {offsets = [0, 0], sizes = [2, 384], strides = [1, 1]} : vector<2x512xf32> to vector<2x384xf32>
    %58 = arith.negf %57 : vector<2x384xf32>
    %59 = math.exp %58 : vector<2x384xf32>
    %cst_17 = arith.constant 1.000000e+00 : f32
    %60 = vector.broadcast %cst_17 : f32 to vector<2x384xf32>
    %61 = arith.addf %60, %59 : vector<2x384xf32>
    %62 = arith.divf %60, %61 : vector<2x384xf32>
    %63 = vector.extract_strided_slice %56 {offsets = [0, 384], sizes = [2, 128], strides = [1, 1]} : vector<2x512xf32> to vector<2x128xf32>
    %64 = math.tanh %63 : vector<2x128xf32>
    %65 = vector.extract_strided_slice %62 {offsets = [0, 0], sizes = [2, 128], strides = [1, 1]} : vector<2x384xf32> to vector<2x128xf32>
    %66 = vector.extract_strided_slice %62 {offsets = [0, 128], sizes = [2, 128], strides = [1, 1]} : vector<2x384xf32> to vector<2x128xf32>
    %67 = vector.extract_strided_slice %62 {offsets = [0, 256], sizes = [2, 128], strides = [1, 1]} : vector<2x384xf32> to vector<2x128xf32>
    %68 = arith.mulf %66, %26 : vector<2x128xf32>
    %69 = arith.mulf %65, %64 : vector<2x128xf32>
    %70 = arith.addf %68, %69 : vector<2x128xf32>
    %71 = math.tanh %70 : vector<2x128xf32>
    %72 = arith.mulf %67, %71 : vector<2x128xf32>
    %73 = arith.truncf %72 : vector<2x128xf32> to vector<2x128xbf16>
    %cst_18 = arith.constant dense<0.000000e+00> : vector<2x512xf32>
    %74 = tpu.matmul %73, %1, %cst_18 {dimension_numbers = #tpu.dot_dimension_numbers<[1], [0], [0], [1], [0, 0, 1, 1], [], []>} : vector<2x128xbf16>, vector<128x512xbf16>, vector<2x512xf32> -> vector<2x512xf32>
    %75 = arith.truncf %50 : vector<2x128xf32> to vector<2x128xbf16>
    %cst_19 = arith.constant dense<0.000000e+00> : vector<2x512xf32>
    %76 = tpu.matmul %75, %2, %cst_19 {dimension_numbers = #tpu.dot_dimension_numbers<[1], [0], [0], [1], [0, 0, 1, 1], [], []>} : vector<2x128xbf16>, vector<128x512xbf16>, vector<2x512xf32> -> vector<2x512xf32>
    %77 = arith.addf %74, %76 : vector<2x512xf32>
    %78 = arith.addf %77, %5 : vector<2x512xf32>
    %79 = vector.extract_strided_slice %78 {offsets = [0, 0], sizes = [2, 384], strides = [1, 1]} : vector<2x512xf32> to vector<2x384xf32>
    %80 = arith.negf %79 : vector<2x384xf32>
    %81 = math.exp %80 : vector<2x384xf32>
    %cst_20 = arith.constant 1.000000e+00 : f32
    %82 = vector.broadcast %cst_20 : f32 to vector<2x384xf32>
    %83 = arith.addf %82, %81 : vector<2x384xf32>
    %84 = arith.divf %82, %83 : vector<2x384xf32>
    %85 = vector.extract_strided_slice %78 {offsets = [0, 384], sizes = [2, 128], strides = [1, 1]} : vector<2x512xf32> to vector<2x128xf32>
    %86 = math.tanh %85 : vector<2x128xf32>
    %87 = vector.extract_strided_slice %84 {offsets = [0, 0], sizes = [2, 128], strides = [1, 1]} : vector<2x384xf32> to vector<2x128xf32>
    %88 = vector.extract_strided_slice %84 {offsets = [0, 128], sizes = [2, 128], strides = [1, 1]} : vector<2x384xf32> to vector<2x128xf32>
    %89 = vector.extract_strided_slice %84 {offsets = [0, 256], sizes = [2, 128], strides = [1, 1]} : vector<2x384xf32> to vector<2x128xf32>
    %90 = arith.mulf %88, %48 : vector<2x128xf32>
    %91 = arith.mulf %87, %86 : vector<2x128xf32>
    %92 = arith.addf %90, %91 : vector<2x128xf32>
    %93 = math.tanh %92 : vector<2x128xf32>
    %94 = arith.mulf %89, %93 : vector<2x128xf32>
    %c2_i32 = arith.constant 2 : i32
    %95 = arith.index_cast %c2_i32 : i32 to index
    %c0_21 = arith.constant 0 : index
    %c0_22 = arith.constant 0 : index
    %96 = vector.load %arg0[%95, %c0_21, %c0_22] : memref<8x2x512xf32, #tpu.memory_space<vmem>>, vector<1x2x512xf32>
    %97 = vector.shape_cast %96 : vector<1x2x512xf32> to vector<2x512xf32>
    %98 = arith.truncf %72 : vector<2x128xf32> to vector<2x128xbf16>
    %cst_23 = arith.constant dense<0.000000e+00> : vector<2x512xf32>
    %99 = tpu.matmul %98, %0, %cst_23 {dimension_numbers = #tpu.dot_dimension_numbers<[1], [0], [0], [1], [0, 0, 1, 1], [], []>} : vector<2x128xbf16>, vector<128x512xbf16>, vector<2x512xf32> -> vector<2x512xf32>
    %100 = arith.addf %97, %99 : vector<2x512xf32>
    %101 = vector.extract_strided_slice %100 {offsets = [0, 0], sizes = [2, 384], strides = [1, 1]} : vector<2x512xf32> to vector<2x384xf32>
    %102 = arith.negf %101 : vector<2x384xf32>
    %103 = math.exp %102 : vector<2x384xf32>
    %cst_24 = arith.constant 1.000000e+00 : f32
    %104 = vector.broadcast %cst_24 : f32 to vector<2x384xf32>
    %105 = arith.addf %104, %103 : vector<2x384xf32>
    %106 = arith.divf %104, %105 : vector<2x384xf32>
    %107 = vector.extract_strided_slice %100 {offsets = [0, 384], sizes = [2, 128], strides = [1, 1]} : vector<2x512xf32> to vector<2x128xf32>
    %108 = math.tanh %107 : vector<2x128xf32>
    %109 = vector.extract_strided_slice %106 {offsets = [0, 0], sizes = [2, 128], strides = [1, 1]} : vector<2x384xf32> to vector<2x128xf32>
    %110 = vector.extract_strided_slice %106 {offsets = [0, 128], sizes = [2, 128], strides = [1, 1]} : vector<2x384xf32> to vector<2x128xf32>
    %111 = vector.extract_strided_slice %106 {offsets = [0, 256], sizes = [2, 128], strides = [1, 1]} : vector<2x384xf32> to vector<2x128xf32>
    %112 = arith.mulf %110, %70 : vector<2x128xf32>
    %113 = arith.mulf %109, %108 : vector<2x128xf32>
    %114 = arith.addf %112, %113 : vector<2x128xf32>
    %115 = math.tanh %114 : vector<2x128xf32>
    %116 = arith.mulf %111, %115 : vector<2x128xf32>
    %117 = arith.truncf %116 : vector<2x128xf32> to vector<2x128xbf16>
    %cst_25 = arith.constant dense<0.000000e+00> : vector<2x512xf32>
    %118 = tpu.matmul %117, %1, %cst_25 {dimension_numbers = #tpu.dot_dimension_numbers<[1], [0], [0], [1], [0, 0, 1, 1], [], []>} : vector<2x128xbf16>, vector<128x512xbf16>, vector<2x512xf32> -> vector<2x512xf32>
    %119 = arith.truncf %94 : vector<2x128xf32> to vector<2x128xbf16>
    %cst_26 = arith.constant dense<0.000000e+00> : vector<2x512xf32>
    %120 = tpu.matmul %119, %2, %cst_26 {dimension_numbers = #tpu.dot_dimension_numbers<[1], [0], [0], [1], [0, 0, 1, 1], [], []>} : vector<2x128xbf16>, vector<128x512xbf16>, vector<2x512xf32> -> vector<2x512xf32>
    %121 = arith.addf %118, %120 : vector<2x512xf32>
    %122 = arith.addf %121, %5 : vector<2x512xf32>
    %123 = vector.extract_strided_slice %122 {offsets = [0, 0], sizes = [2, 384], strides = [1, 1]} : vector<2x512xf32> to vector<2x384xf32>
    %124 = arith.negf %123 : vector<2x384xf32>
    %125 = math.exp %124 : vector<2x384xf32>
    %cst_27 = arith.constant 1.000000e+00 : f32
    %126 = vector.broadcast %cst_27 : f32 to vector<2x384xf32>
    %127 = arith.addf %126, %125 : vector<2x384xf32>
    %128 = arith.divf %126, %127 : vector<2x384xf32>
    %129 = vector.extract_strided_slice %122 {offsets = [0, 384], sizes = [2, 128], strides = [1, 1]} : vector<2x512xf32> to vector<2x128xf32>
    %130 = math.tanh %129 : vector<2x128xf32>
    %131 = vector.extract_strided_slice %128 {offsets = [0, 0], sizes = [2, 128], strides = [1, 1]} : vector<2x384xf32> to vector<2x128xf32>
    %132 = vector.extract_strided_slice %128 {offsets = [0, 128], sizes = [2, 128], strides = [1, 1]} : vector<2x384xf32> to vector<2x128xf32>
    %133 = vector.extract_strided_slice %128 {offsets = [0, 256], sizes = [2, 128], strides = [1, 1]} : vector<2x384xf32> to vector<2x128xf32>
    %134 = arith.mulf %132, %92 : vector<2x128xf32>
    %135 = arith.mulf %131, %130 : vector<2x128xf32>
    %136 = arith.addf %134, %135 : vector<2x128xf32>
    %137 = math.tanh %136 : vector<2x128xf32>
    %138 = arith.mulf %133, %137 : vector<2x128xf32>
    %c3_i32 = arith.constant 3 : i32
    %139 = arith.index_cast %c3_i32 : i32 to index
    %c0_28 = arith.constant 0 : index
    %c0_29 = arith.constant 0 : index
    %140 = vector.load %arg0[%139, %c0_28, %c0_29] : memref<8x2x512xf32, #tpu.memory_space<vmem>>, vector<1x2x512xf32>
    %141 = vector.shape_cast %140 : vector<1x2x512xf32> to vector<2x512xf32>
    %142 = arith.truncf %116 : vector<2x128xf32> to vector<2x128xbf16>
    %cst_30 = arith.constant dense<0.000000e+00> : vector<2x512xf32>
    %143 = tpu.matmul %142, %0, %cst_30 {dimension_numbers = #tpu.dot_dimension_numbers<[1], [0], [0], [1], [0, 0, 1, 1], [], []>} : vector<2x128xbf16>, vector<128x512xbf16>, vector<2x512xf32> -> vector<2x512xf32>
    %144 = arith.addf %141, %143 : vector<2x512xf32>
    %145 = vector.extract_strided_slice %144 {offsets = [0, 0], sizes = [2, 384], strides = [1, 1]} : vector<2x512xf32> to vector<2x384xf32>
    %146 = arith.negf %145 : vector<2x384xf32>
    %147 = math.exp %146 : vector<2x384xf32>
    %cst_31 = arith.constant 1.000000e+00 : f32
    %148 = vector.broadcast %cst_31 : f32 to vector<2x384xf32>
    %149 = arith.addf %148, %147 : vector<2x384xf32>
    %150 = arith.divf %148, %149 : vector<2x384xf32>
    %151 = vector.extract_strided_slice %144 {offsets = [0, 384], sizes = [2, 128], strides = [1, 1]} : vector<2x512xf32> to vector<2x128xf32>
    %152 = math.tanh %151 : vector<2x128xf32>
    %153 = vector.extract_strided_slice %150 {offsets = [0, 0], sizes = [2, 128], strides = [1, 1]} : vector<2x384xf32> to vector<2x128xf32>
    %154 = vector.extract_strided_slice %150 {offsets = [0, 128], sizes = [2, 128], strides = [1, 1]} : vector<2x384xf32> to vector<2x128xf32>
    %155 = vector.extract_strided_slice %150 {offsets = [0, 256], sizes = [2, 128], strides = [1, 1]} : vector<2x384xf32> to vector<2x128xf32>
    %156 = arith.mulf %154, %114 : vector<2x128xf32>
    %157 = arith.mulf %153, %152 : vector<2x128xf32>
    %158 = arith.addf %156, %157 : vector<2x128xf32>
    %159 = math.tanh %158 : vector<2x128xf32>
    %160 = arith.mulf %155, %159 : vector<2x128xf32>
    %161 = arith.truncf %160 : vector<2x128xf32> to vector<2x128xbf16>
    %cst_32 = arith.constant dense<0.000000e+00> : vector<2x512xf32>
    %162 = tpu.matmul %161, %1, %cst_32 {dimension_numbers = #tpu.dot_dimension_numbers<[1], [0], [0], [1], [0, 0, 1, 1], [], []>} : vector<2x128xbf16>, vector<128x512xbf16>, vector<2x512xf32> -> vector<2x512xf32>
    %163 = arith.truncf %138 : vector<2x128xf32> to vector<2x128xbf16>
    %cst_33 = arith.constant dense<0.000000e+00> : vector<2x512xf32>
    %164 = tpu.matmul %163, %2, %cst_33 {dimension_numbers = #tpu.dot_dimension_numbers<[1], [0], [0], [1], [0, 0, 1, 1], [], []>} : vector<2x128xbf16>, vector<128x512xbf16>, vector<2x512xf32> -> vector<2x512xf32>
    %165 = arith.addf %162, %164 : vector<2x512xf32>
    %166 = arith.addf %165, %5 : vector<2x512xf32>
    %167 = vector.extract_strided_slice %166 {offsets = [0, 0], sizes = [2, 384], strides = [1, 1]} : vector<2x512xf32> to vector<2x384xf32>
    %168 = arith.negf %167 : vector<2x384xf32>
    %169 = math.exp %168 : vector<2x384xf32>
    %cst_34 = arith.constant 1.000000e+00 : f32
    %170 = vector.broadcast %cst_34 : f32 to vector<2x384xf32>
    %171 = arith.addf %170, %169 : vector<2x384xf32>
    %172 = arith.divf %170, %171 : vector<2x384xf32>
    %173 = vector.extract_strided_slice %166 {offsets = [0, 384], sizes = [2, 128], strides = [1, 1]} : vector<2x512xf32> to vector<2x128xf32>
    %174 = math.tanh %173 : vector<2x128xf32>
    %175 = vector.extract_strided_slice %172 {offsets = [0, 0], sizes = [2, 128], strides = [1, 1]} : vector<2x384xf32> to vector<2x128xf32>
    %176 = vector.extract_strided_slice %172 {offsets = [0, 128], sizes = [2, 128], strides = [1, 1]} : vector<2x384xf32> to vector<2x128xf32>
    %177 = vector.extract_strided_slice %172 {offsets = [0, 256], sizes = [2, 128], strides = [1, 1]} : vector<2x384xf32> to vector<2x128xf32>
    %178 = arith.mulf %176, %136 : vector<2x128xf32>
    %179 = arith.mulf %175, %174 : vector<2x128xf32>
    %180 = arith.addf %178, %179 : vector<2x128xf32>
    %181 = math.tanh %180 : vector<2x128xf32>
    %182 = arith.mulf %177, %181 : vector<2x128xf32>
    %c4_i32 = arith.constant 4 : i32
    %183 = arith.index_cast %c4_i32 : i32 to index
    %c0_35 = arith.constant 0 : index
    %c0_36 = arith.constant 0 : index
    %184 = vector.load %arg0[%183, %c0_35, %c0_36] : memref<8x2x512xf32, #tpu.memory_space<vmem>>, vector<1x2x512xf32>
    %185 = vector.shape_cast %184 : vector<1x2x512xf32> to vector<2x512xf32>
    %186 = arith.truncf %160 : vector<2x128xf32> to vector<2x128xbf16>
    %cst_37 = arith.constant dense<0.000000e+00> : vector<2x512xf32>
    %187 = tpu.matmul %186, %0, %cst_37 {dimension_numbers = #tpu.dot_dimension_numbers<[1], [0], [0], [1], [0, 0, 1, 1], [], []>} : vector<2x128xbf16>, vector<128x512xbf16>, vector<2x512xf32> -> vector<2x512xf32>
    %188 = arith.addf %185, %187 : vector<2x512xf32>
    %189 = vector.extract_strided_slice %188 {offsets = [0, 0], sizes = [2, 384], strides = [1, 1]} : vector<2x512xf32> to vector<2x384xf32>
    %190 = arith.negf %189 : vector<2x384xf32>
    %191 = math.exp %190 : vector<2x384xf32>
    %cst_38 = arith.constant 1.000000e+00 : f32
    %192 = vector.broadcast %cst_38 : f32 to vector<2x384xf32>
    %193 = arith.addf %192, %191 : vector<2x384xf32>
    %194 = arith.divf %192, %193 : vector<2x384xf32>
    %195 = vector.extract_strided_slice %188 {offsets = [0, 384], sizes = [2, 128], strides = [1, 1]} : vector<2x512xf32> to vector<2x128xf32>
    %196 = math.tanh %195 : vector<2x128xf32>
    %197 = vector.extract_strided_slice %194 {offsets = [0, 0], sizes = [2, 128], strides = [1, 1]} : vector<2x384xf32> to vector<2x128xf32>
    %198 = vector.extract_strided_slice %194 {offsets = [0, 128], sizes = [2, 128], strides = [1, 1]} : vector<2x384xf32> to vector<2x128xf32>
    %199 = vector.extract_strided_slice %194 {offsets = [0, 256], sizes = [2, 128], strides = [1, 1]} : vector<2x384xf32> to vector<2x128xf32>
    %200 = arith.mulf %198, %158 : vector<2x128xf32>
    %201 = arith.mulf %197, %196 : vector<2x128xf32>
    %202 = arith.addf %200, %201 : vector<2x128xf32>
    %203 = math.tanh %202 : vector<2x128xf32>
    %204 = arith.mulf %199, %203 : vector<2x128xf32>
    %205 = arith.truncf %204 : vector<2x128xf32> to vector<2x128xbf16>
    %cst_39 = arith.constant dense<0.000000e+00> : vector<2x512xf32>
    %206 = tpu.matmul %205, %1, %cst_39 {dimension_numbers = #tpu.dot_dimension_numbers<[1], [0], [0], [1], [0, 0, 1, 1], [], []>} : vector<2x128xbf16>, vector<128x512xbf16>, vector<2x512xf32> -> vector<2x512xf32>
    %207 = arith.truncf %182 : vector<2x128xf32> to vector<2x128xbf16>
    %cst_40 = arith.constant dense<0.000000e+00> : vector<2x512xf32>
    %208 = tpu.matmul %207, %2, %cst_40 {dimension_numbers = #tpu.dot_dimension_numbers<[1], [0], [0], [1], [0, 0, 1, 1], [], []>} : vector<2x128xbf16>, vector<128x512xbf16>, vector<2x512xf32> -> vector<2x512xf32>
    %209 = arith.addf %206, %208 : vector<2x512xf32>
    %210 = arith.addf %209, %5 : vector<2x512xf32>
    %211 = vector.extract_strided_slice %210 {offsets = [0, 0], sizes = [2, 384], strides = [1, 1]} : vector<2x512xf32> to vector<2x384xf32>
    %212 = arith.negf %211 : vector<2x384xf32>
    %213 = math.exp %212 : vector<2x384xf32>
    %cst_41 = arith.constant 1.000000e+00 : f32
    %214 = vector.broadcast %cst_41 : f32 to vector<2x384xf32>
    %215 = arith.addf %214, %213 : vector<2x384xf32>
    %216 = arith.divf %214, %215 : vector<2x384xf32>
    %217 = vector.extract_strided_slice %210 {offsets = [0, 384], sizes = [2, 128], strides = [1, 1]} : vector<2x512xf32> to vector<2x128xf32>
    %218 = math.tanh %217 : vector<2x128xf32>
    %219 = vector.extract_strided_slice %216 {offsets = [0, 0], sizes = [2, 128], strides = [1, 1]} : vector<2x384xf32> to vector<2x128xf32>
    %220 = vector.extract_strided_slice %216 {offsets = [0, 128], sizes = [2, 128], strides = [1, 1]} : vector<2x384xf32> to vector<2x128xf32>
    %221 = vector.extract_strided_slice %216 {offsets = [0, 256], sizes = [2, 128], strides = [1, 1]} : vector<2x384xf32> to vector<2x128xf32>
    %222 = arith.mulf %220, %180 : vector<2x128xf32>
    %223 = arith.mulf %219, %218 : vector<2x128xf32>
    %224 = arith.addf %222, %223 : vector<2x128xf32>
    %225 = math.tanh %224 : vector<2x128xf32>
    %226 = arith.mulf %221, %225 : vector<2x128xf32>
    %c5_i32 = arith.constant 5 : i32
    %227 = arith.index_cast %c5_i32 : i32 to index
    %c0_42 = arith.constant 0 : index
    %c0_43 = arith.constant 0 : index
    %228 = vector.load %arg0[%227, %c0_42, %c0_43] : memref<8x2x512xf32, #tpu.memory_space<vmem>>, vector<1x2x512xf32>
    %229 = vector.shape_cast %228 : vector<1x2x512xf32> to vector<2x512xf32>
    %230 = arith.truncf %204 : vector<2x128xf32> to vector<2x128xbf16>
    %cst_44 = arith.constant dense<0.000000e+00> : vector<2x512xf32>
    %231 = tpu.matmul %230, %0, %cst_44 {dimension_numbers = #tpu.dot_dimension_numbers<[1], [0], [0], [1], [0, 0, 1, 1], [], []>} : vector<2x128xbf16>, vector<128x512xbf16>, vector<2x512xf32> -> vector<2x512xf32>
    %232 = arith.addf %229, %231 : vector<2x512xf32>
    %233 = vector.extract_strided_slice %232 {offsets = [0, 0], sizes = [2, 384], strides = [1, 1]} : vector<2x512xf32> to vector<2x384xf32>
    %234 = arith.negf %233 : vector<2x384xf32>
    %235 = math.exp %234 : vector<2x384xf32>
    %cst_45 = arith.constant 1.000000e+00 : f32
    %236 = vector.broadcast %cst_45 : f32 to vector<2x384xf32>
    %237 = arith.addf %236, %235 : vector<2x384xf32>
    %238 = arith.divf %236, %237 : vector<2x384xf32>
    %239 = vector.extract_strided_slice %232 {offsets = [0, 384], sizes = [2, 128], strides = [1, 1]} : vector<2x512xf32> to vector<2x128xf32>
    %240 = math.tanh %239 : vector<2x128xf32>
    %241 = vector.extract_strided_slice %238 {offsets = [0, 0], sizes = [2, 128], strides = [1, 1]} : vector<2x384xf32> to vector<2x128xf32>
    %242 = vector.extract_strided_slice %238 {offsets = [0, 128], sizes = [2, 128], strides = [1, 1]} : vector<2x384xf32> to vector<2x128xf32>
    %243 = vector.extract_strided_slice %238 {offsets = [0, 256], sizes = [2, 128], strides = [1, 1]} : vector<2x384xf32> to vector<2x128xf32>
    %244 = arith.mulf %242, %202 : vector<2x128xf32>
    %245 = arith.mulf %241, %240 : vector<2x128xf32>
    %246 = arith.addf %244, %245 : vector<2x128xf32>
    %247 = math.tanh %246 : vector<2x128xf32>
    %248 = arith.mulf %243, %247 : vector<2x128xf32>
    %249 = arith.truncf %248 : vector<2x128xf32> to vector<2x128xbf16>
    %cst_46 = arith.constant dense<0.000000e+00> : vector<2x512xf32>
    %250 = tpu.matmul %249, %1, %cst_46 {dimension_numbers = #tpu.dot_dimension_numbers<[1], [0], [0], [1], [0, 0, 1, 1], [], []>} : vector<2x128xbf16>, vector<128x512xbf16>, vector<2x512xf32> -> vector<2x512xf32>
    %251 = arith.truncf %226 : vector<2x128xf32> to vector<2x128xbf16>
    %cst_47 = arith.constant dense<0.000000e+00> : vector<2x512xf32>
    %252 = tpu.matmul %251, %2, %cst_47 {dimension_numbers = #tpu.dot_dimension_numbers<[1], [0], [0], [1], [0, 0, 1, 1], [], []>} : vector<2x128xbf16>, vector<128x512xbf16>, vector<2x512xf32> -> vector<2x512xf32>
    %253 = arith.addf %250, %252 : vector<2x512xf32>
    %254 = arith.addf %253, %5 : vector<2x512xf32>
    %255 = vector.extract_strided_slice %254 {offsets = [0, 0], sizes = [2, 384], strides = [1, 1]} : vector<2x512xf32> to vector<2x384xf32>
    %256 = arith.negf %255 : vector<2x384xf32>
    %257 = math.exp %256 : vector<2x384xf32>
    %cst_48 = arith.constant 1.000000e+00 : f32
    %258 = vector.broadcast %cst_48 : f32 to vector<2x384xf32>
    %259 = arith.addf %258, %257 : vector<2x384xf32>
    %260 = arith.divf %258, %259 : vector<2x384xf32>
    %261 = vector.extract_strided_slice %254 {offsets = [0, 384], sizes = [2, 128], strides = [1, 1]} : vector<2x512xf32> to vector<2x128xf32>
    %262 = math.tanh %261 : vector<2x128xf32>
    %263 = vector.extract_strided_slice %260 {offsets = [0, 0], sizes = [2, 128], strides = [1, 1]} : vector<2x384xf32> to vector<2x128xf32>
    %264 = vector.extract_strided_slice %260 {offsets = [0, 128], sizes = [2, 128], strides = [1, 1]} : vector<2x384xf32> to vector<2x128xf32>
    %265 = vector.extract_strided_slice %260 {offsets = [0, 256], sizes = [2, 128], strides = [1, 1]} : vector<2x384xf32> to vector<2x128xf32>
    %266 = arith.mulf %264, %224 : vector<2x128xf32>
    %267 = arith.mulf %263, %262 : vector<2x128xf32>
    %268 = arith.addf %266, %267 : vector<2x128xf32>
    %269 = math.tanh %268 : vector<2x128xf32>
    %270 = arith.mulf %265, %269 : vector<2x128xf32>
    %c6_i32 = arith.constant 6 : i32
    %271 = arith.index_cast %c6_i32 : i32 to index
    %c0_49 = arith.constant 0 : index
    %c0_50 = arith.constant 0 : index
    %272 = vector.load %arg0[%271, %c0_49, %c0_50] : memref<8x2x512xf32, #tpu.memory_space<vmem>>, vector<1x2x512xf32>
    %273 = vector.shape_cast %272 : vector<1x2x512xf32> to vector<2x512xf32>
    %274 = arith.truncf %248 : vector<2x128xf32> to vector<2x128xbf16>
    %cst_51 = arith.constant dense<0.000000e+00> : vector<2x512xf32>
    %275 = tpu.matmul %274, %0, %cst_51 {dimension_numbers = #tpu.dot_dimension_numbers<[1], [0], [0], [1], [0, 0, 1, 1], [], []>} : vector<2x128xbf16>, vector<128x512xbf16>, vector<2x512xf32> -> vector<2x512xf32>
    %276 = arith.addf %273, %275 : vector<2x512xf32>
    %277 = vector.extract_strided_slice %276 {offsets = [0, 0], sizes = [2, 384], strides = [1, 1]} : vector<2x512xf32> to vector<2x384xf32>
    %278 = arith.negf %277 : vector<2x384xf32>
    %279 = math.exp %278 : vector<2x384xf32>
    %cst_52 = arith.constant 1.000000e+00 : f32
    %280 = vector.broadcast %cst_52 : f32 to vector<2x384xf32>
    %281 = arith.addf %280, %279 : vector<2x384xf32>
    %282 = arith.divf %280, %281 : vector<2x384xf32>
    %283 = vector.extract_strided_slice %276 {offsets = [0, 384], sizes = [2, 128], strides = [1, 1]} : vector<2x512xf32> to vector<2x128xf32>
    %284 = math.tanh %283 : vector<2x128xf32>
    %285 = vector.extract_strided_slice %282 {offsets = [0, 0], sizes = [2, 128], strides = [1, 1]} : vector<2x384xf32> to vector<2x128xf32>
    %286 = vector.extract_strided_slice %282 {offsets = [0, 128], sizes = [2, 128], strides = [1, 1]} : vector<2x384xf32> to vector<2x128xf32>
    %287 = vector.extract_strided_slice %282 {offsets = [0, 256], sizes = [2, 128], strides = [1, 1]} : vector<2x384xf32> to vector<2x128xf32>
    %288 = arith.mulf %286, %246 : vector<2x128xf32>
    %289 = arith.mulf %285, %284 : vector<2x128xf32>
    %290 = arith.addf %288, %289 : vector<2x128xf32>
    %291 = math.tanh %290 : vector<2x128xf32>
    %292 = arith.mulf %287, %291 : vector<2x128xf32>
    %293 = arith.truncf %292 : vector<2x128xf32> to vector<2x128xbf16>
    %cst_53 = arith.constant dense<0.000000e+00> : vector<2x512xf32>
    %294 = tpu.matmul %293, %1, %cst_53 {dimension_numbers = #tpu.dot_dimension_numbers<[1], [0], [0], [1], [0, 0, 1, 1], [], []>} : vector<2x128xbf16>, vector<128x512xbf16>, vector<2x512xf32> -> vector<2x512xf32>
    %295 = arith.truncf %270 : vector<2x128xf32> to vector<2x128xbf16>
    %cst_54 = arith.constant dense<0.000000e+00> : vector<2x512xf32>
    %296 = tpu.matmul %295, %2, %cst_54 {dimension_numbers = #tpu.dot_dimension_numbers<[1], [0], [0], [1], [0, 0, 1, 1], [], []>} : vector<2x128xbf16>, vector<128x512xbf16>, vector<2x512xf32> -> vector<2x512xf32>
    %297 = arith.addf %294, %296 : vector<2x512xf32>
    %298 = arith.addf %297, %5 : vector<2x512xf32>
    %299 = vector.extract_strided_slice %298 {offsets = [0, 0], sizes = [2, 384], strides = [1, 1]} : vector<2x512xf32> to vector<2x384xf32>
    %300 = arith.negf %299 : vector<2x384xf32>
    %301 = math.exp %300 : vector<2x384xf32>
    %cst_55 = arith.constant 1.000000e+00 : f32
    %302 = vector.broadcast %cst_55 : f32 to vector<2x384xf32>
    %303 = arith.addf %302, %301 : vector<2x384xf32>
    %304 = arith.divf %302, %303 : vector<2x384xf32>
    %305 = vector.extract_strided_slice %298 {offsets = [0, 384], sizes = [2, 128], strides = [1, 1]} : vector<2x512xf32> to vector<2x128xf32>
    %306 = math.tanh %305 : vector<2x128xf32>
    %307 = vector.extract_strided_slice %304 {offsets = [0, 0], sizes = [2, 128], strides = [1, 1]} : vector<2x384xf32> to vector<2x128xf32>
    %308 = vector.extract_strided_slice %304 {offsets = [0, 128], sizes = [2, 128], strides = [1, 1]} : vector<2x384xf32> to vector<2x128xf32>
    %309 = vector.extract_strided_slice %304 {offsets = [0, 256], sizes = [2, 128], strides = [1, 1]} : vector<2x384xf32> to vector<2x128xf32>
    %310 = arith.mulf %308, %268 : vector<2x128xf32>
    %311 = arith.mulf %307, %306 : vector<2x128xf32>
    %312 = arith.addf %310, %311 : vector<2x128xf32>
    %313 = math.tanh %312 : vector<2x128xf32>
    %314 = arith.mulf %309, %313 : vector<2x128xf32>
    %c7_i32 = arith.constant 7 : i32
    %315 = arith.index_cast %c7_i32 : i32 to index
    %c0_56 = arith.constant 0 : index
    %c0_57 = arith.constant 0 : index
    %316 = vector.load %arg0[%315, %c0_56, %c0_57] : memref<8x2x512xf32, #tpu.memory_space<vmem>>, vector<1x2x512xf32>
    %317 = vector.shape_cast %316 : vector<1x2x512xf32> to vector<2x512xf32>
    %318 = arith.truncf %292 : vector<2x128xf32> to vector<2x128xbf16>
    %cst_58 = arith.constant dense<0.000000e+00> : vector<2x512xf32>
    %319 = tpu.matmul %318, %0, %cst_58 {dimension_numbers = #tpu.dot_dimension_numbers<[1], [0], [0], [1], [0, 0, 1, 1], [], []>} : vector<2x128xbf16>, vector<128x512xbf16>, vector<2x512xf32> -> vector<2x512xf32>
    %320 = arith.addf %317, %319 : vector<2x512xf32>
    %321 = vector.extract_strided_slice %320 {offsets = [0, 0], sizes = [2, 384], strides = [1, 1]} : vector<2x512xf32> to vector<2x384xf32>
    %322 = arith.negf %321 : vector<2x384xf32>
    %323 = math.exp %322 : vector<2x384xf32>
    %cst_59 = arith.constant 1.000000e+00 : f32
    %324 = vector.broadcast %cst_59 : f32 to vector<2x384xf32>
    %325 = arith.addf %324, %323 : vector<2x384xf32>
    %326 = arith.divf %324, %325 : vector<2x384xf32>
    %327 = vector.extract_strided_slice %320 {offsets = [0, 384], sizes = [2, 128], strides = [1, 1]} : vector<2x512xf32> to vector<2x128xf32>
    %328 = math.tanh %327 : vector<2x128xf32>
    %329 = vector.extract_strided_slice %326 {offsets = [0, 0], sizes = [2, 128], strides = [1, 1]} : vector<2x384xf32> to vector<2x128xf32>
    %330 = vector.extract_strided_slice %326 {offsets = [0, 128], sizes = [2, 128], strides = [1, 1]} : vector<2x384xf32> to vector<2x128xf32>
    %331 = vector.extract_strided_slice %326 {offsets = [0, 256], sizes = [2, 128], strides = [1, 1]} : vector<2x384xf32> to vector<2x128xf32>
    %332 = arith.mulf %330, %290 : vector<2x128xf32>
    %333 = arith.mulf %329, %328 : vector<2x128xf32>
    %334 = arith.addf %332, %333 : vector<2x128xf32>
    %335 = math.tanh %334 : vector<2x128xf32>
    %336 = arith.mulf %331, %335 : vector<2x128xf32>
    %337 = arith.truncf %336 : vector<2x128xf32> to vector<2x128xbf16>
    %cst_60 = arith.constant dense<0.000000e+00> : vector<2x512xf32>
    %338 = tpu.matmul %337, %1, %cst_60 {dimension_numbers = #tpu.dot_dimension_numbers<[1], [0], [0], [1], [0, 0, 1, 1], [], []>} : vector<2x128xbf16>, vector<128x512xbf16>, vector<2x512xf32> -> vector<2x512xf32>
    %339 = arith.truncf %314 : vector<2x128xf32> to vector<2x128xbf16>
    %cst_61 = arith.constant dense<0.000000e+00> : vector<2x512xf32>
    %340 = tpu.matmul %339, %2, %cst_61 {dimension_numbers = #tpu.dot_dimension_numbers<[1], [0], [0], [1], [0, 0, 1, 1], [], []>} : vector<2x128xbf16>, vector<128x512xbf16>, vector<2x512xf32> -> vector<2x512xf32>
    %341 = arith.addf %338, %340 : vector<2x512xf32>
    %342 = arith.addf %341, %5 : vector<2x512xf32>
    %343 = vector.extract_strided_slice %342 {offsets = [0, 0], sizes = [2, 384], strides = [1, 1]} : vector<2x512xf32> to vector<2x384xf32>
    %344 = arith.negf %343 : vector<2x384xf32>
    %345 = math.exp %344 : vector<2x384xf32>
    %cst_62 = arith.constant 1.000000e+00 : f32
    %346 = vector.broadcast %cst_62 : f32 to vector<2x384xf32>
    %347 = arith.addf %346, %345 : vector<2x384xf32>
    %348 = arith.divf %346, %347 : vector<2x384xf32>
    %349 = vector.extract_strided_slice %342 {offsets = [0, 384], sizes = [2, 128], strides = [1, 1]} : vector<2x512xf32> to vector<2x128xf32>
    %350 = math.tanh %349 : vector<2x128xf32>
    %351 = vector.extract_strided_slice %348 {offsets = [0, 0], sizes = [2, 128], strides = [1, 1]} : vector<2x384xf32> to vector<2x128xf32>
    %352 = vector.extract_strided_slice %348 {offsets = [0, 128], sizes = [2, 128], strides = [1, 1]} : vector<2x384xf32> to vector<2x128xf32>
    %353 = vector.extract_strided_slice %348 {offsets = [0, 256], sizes = [2, 128], strides = [1, 1]} : vector<2x384xf32> to vector<2x128xf32>
    %354 = arith.mulf %352, %312 : vector<2x128xf32>
    %355 = arith.mulf %351, %350 : vector<2x128xf32>
    %356 = arith.addf %354, %355 : vector<2x128xf32>
    %357 = math.tanh %356 : vector<2x128xf32>
    %358 = arith.mulf %353, %357 : vector<2x128xf32>
    %c8_i32 = arith.constant 8 : i32
    %c0_63 = arith.constant 0 : index
    %c0_64 = arith.constant 0 : index
    %359 = vector.load %arg5[%c0_63, %c0_64] : memref<128x10xf32, #tpu.memory_space<vmem>>, vector<128x10xf32>
    %cst_65 = arith.constant dense<0.000000e+00> : vector<2x10xf32>
    %360 = tpu.matmul %358, %359, %cst_65 {dimension_numbers = #tpu.dot_dimension_numbers<[1], [0], [0], [1], [0, 0, 1, 1], [], []>} : vector<2x128xf32>, vector<128x10xf32>, vector<2x10xf32> -> vector<2x10xf32>
    %c0_66 = arith.constant 0 : index
    %c0_67 = arith.constant 0 : index
    %361 = vector.load %arg6[%c0_66, %c0_67] : memref<1x10xf32, #tpu.memory_space<vmem>>, vector<1x10xf32>
    %362 = vector.broadcast %361 : vector<1x10xf32> to vector<2x10xf32>
    %363 = arith.addf %360, %362 : vector<2x10xf32>
    %c0_68 = arith.constant 0 : index
    %c0_69 = arith.constant 0 : index
    %364 = vector.load %arg7[%c0_68, %c0_69] : memref<2x10xf32, #tpu.memory_space<vmem>>, vector<2x10xf32>
    tpu.vector_store %arg7[%c0_68, %c0_69], %363 {strides = array<i32>} : memref<2x10xf32, #tpu.memory_space<vmem>>, vector<2x10xf32>,
    return
  }
}

</mosaic_0001>

<bundles_post_ra>
// kernel: rnn_forward.1
= control target key start
LH: loop header
LB: loop body
LE: loop exit
PB: predicated region body
PF: predicated region fallthrough
CT: control target
= control target key end

     0   :  { %12 = vsyncpa [#allocation3], 0  ;;  %s6069_s0 = inlined_call_operand.vmem [shape: f32[8,2,512], index: 0, kind: input, shape index: {}]   ;;  %s6070_s1 = inlined_call_operand.vmem [shape: bf16[128,512], index: 1, kind: input, shape index: {}]   ;;  %s6071_s2 = inlined_call_operand.hbm [shape: bf16[128,512], index: 2, kind: input, shape index: {}]   ;;  %s6072_s3 = inlined_call_operand.hbm [shape: bf16[128,512], index: 3, kind: input, shape index: {}]   ;;  %s6073_s4 = inlined_call_operand.vmem [shape: f32[1,512], index: 4, kind: input, shape index: {}]   ;;  %s6074_s5 = inlined_call_operand.vmem [shape: f32[128,10], index: 5, kind: input, shape index: {}]   ;;  %s6075_s6 = inlined_call_operand.vmem [shape: f32[1,10], index: 6, kind: input, shape index: {}]   ;;  %s6076_s7 = inlined_call_operand.hbm [shape: f32[2,10], index: 7, kind: output, shape index: {}]  }
   0x1   :  { %13 = vsyncpa [#allocation6], 0 }
   0x2   :  { %14 = vsyncpa [#allocation4], 0  ;;  %s4122_s24 = smov [#allocation2]  }
   0x3   :  { %s24_s25 = sshll.u32 %s4122_s24, 4  ;;  %s25_s25 = int_to_ptr.vmem [resolvable:$true] %s24_s25 }
   0x4   :  { %s4064_s26 = scalar_lea.vmem %s25_s25, 4096  ;;  %p4069_p1 = scmp.lt.s32.totalorder %s25_s25, %s25_s25 }
   0x5   :  { %p4065_p0 = scmp.ne.s32.totalorder %s25_s25, %s4064_s26  ;;  %p4070_p2 = scmp.lt.s32.totalorder %s4064_s26, %s4064_s26 }
   0x7   :  { %p4071_p3 = por %p4070_p2, %p4069_p1 }
   0x9   :  { %p4072_p4 = pnand %p4071_p3, %p4065_p0 }
   0xb   :  { %4075 = shalt.err (!%p4072_p4)
}
   0xc   :  { %s4123_s27 = smov 256   ;;  %s4124_s28 = smov 16  }
   0xd   :  { %30 = dma.hbm_to_vmem [thread:$0]  %s6071_s2, 4096, %s25_s25, [#allocation3], %s4123_s27, %s4123_s27, %s4124_s28  }
   0xe   :  { %s4125_s8 = smov [#allocation5]  }
   0xf   :  { %s36_s9 = sshll.u32 %s4125_s8, 4  ;;  %s37_s9 = int_to_ptr.vmem [resolvable:$true] %s36_s9 }
  0x10   :  { %s4084_s10 = scalar_lea.vmem %s37_s9, 4096  ;;  %p4089_p6 = scmp.lt.s32.totalorder %s37_s9, %s37_s9 }
  0x11   :  { %p4085_p5 = scmp.ne.s32.totalorder %s37_s9, %s4084_s10  ;;  %p4090_p7 = scmp.lt.s32.totalorder %s4084_s10, %s4084_s10 }
  0x13   :  { %p4091_p8 = por %p4090_p7, %p4089_p6 }
  0x15   :  { %p4092_p9 = pnand %p4091_p8, %p4085_p5 }
  0x17   :  { %4095 = shalt.err (!%p4092_p9)
}
  0x18   :  { %42 = dma.hbm_to_vmem [thread:$0]  %s6072_s3, 4096, %s37_s9, [#allocation6], %s4123_s27, %s4123_s27, %s4124_s28  }
  0x19   :  { %4116 = dma.done.wait [#allocation3], 4096  }
  0x1a   :  { %4117 = vsyncadd [#allocation3], 4294963200 }
  0x1b   :  { %4118 = dma.done.wait [#allocation6], 4096  }
  0x1c   :  { %4119 = vsyncadd [#allocation6], 4294963200  ;;  %v6077_v0 = vmov 0   ;;  %v4182_v1 = vld [vmem:[%s6070_s1 + $0xe4] ss:$16 sps:$4 sm:$0xff]   ;;  %vm4129_vm0 = vmmov 0  }
  0x1d   :  { %367 = vmatprep.mubr.bf16.mxu0 %v6077_v0  ;;  %408 = vmatprep.mubr.bf16.mxu1 %v6077_v0  ;;  %v4187_v2 = vld [vmem:[%s6070_s1 + $0xec] ss:$16 sps:$4 sm:$0xff]   ;;  %v4193_v3 = vld [vmem:[%s6070_s1 + $0xe0] ss:$16 sps:$4 sm:$0xff]   ;;  %v4198_v4 = vld [vmem:[%s6070_s1 + $0xe8] ss:$16 sps:$4 sm:$0xff]  }
  0x1e   :  { %335 = vmatprep.subr.bf16.mxu0 %v4182_v1  ;;  %376 = vmatprep.subr.bf16.mxu1 %v4187_v2  ;;  %v4204_v5 = vld [vmem:[%s6070_s1 + $0xc4] ss:$16 sps:$4 sm:$0xff]   ;;  %v4211_v6 = vld [vmem:[%s6070_s1 + $0xcc] ss:$16 sps:$4 sm:$0xff]   ;;  %v4216_v7 = vld [vmem:[%s6070_s1 + $0xc0] ss:$16 sps:$4 sm:$0xff]  }
  0x1f   :  { %336 = vmatpush1.bf16.msra.mxu0 %v4193_v3  ;;  %377 = vmatpush1.bf16.msra.mxu1 %v4198_v4  ;;  %v4222_v8 = vld [vmem:[%s6070_s1 + $0xc8] ss:$16 sps:$4 sm:$0xff]   ;;  %v4228_v9 = vld [vmem:[%s6070_s1 + $0xa4] ss:$16 sps:$4 sm:$0xff]   ;;  %v4233_v10 = vld [vmem:[%s6070_s1 + $0xac] ss:$16 sps:$4 sm:$0xff]  }
  0x20   :  { %337 = vmatprep.subr.bf16.mxu0 %v4204_v5  ;;  %378 = vmatprep.subr.bf16.mxu1 %v4211_v6  ;;  %v4238_v11 = vld [vmem:[%s6070_s1 + $0xa0] ss:$16 sps:$4 sm:$0xff]   ;;  %v4243_v12 = vld [vmem:[%s6070_s1 + $0xa8] ss:$16 sps:$4 sm:$0xff]   ;;  %v4250_v13 = vld [vmem:[%s6070_s1 + $0x84] ss:$16 sps:$4 sm:$0xff]  }
  0x21   :  { %v4257_v14 = vld [vmem:[%s6070_s1 + $0x8c] ss:$16 sps:$4 sm:$0xff]   ;;  %v4262_v15 = vld [vmem:[%s6070_s1 + $0x80] ss:$16 sps:$4 sm:$0xff]   ;;  %v4269_v16 = vld [vmem:[%s6070_s1 + $0x88] ss:$16 sps:$4 sm:$0xff]  }
  0x22   :  { %v4274_v17 = vld [vmem:[%s6070_s1 + $0x64] ss:$16 sps:$4 sm:$0xff]   ;;  %v4281_v18 = vld [vmem:[%s6070_s1 + $0x6c] ss:$16 sps:$4 sm:$0xff]   ;;  %v4286_v19 = vld [vmem:[%s6070_s1 + $0x60] ss:$16 sps:$4 sm:$0xff]  }
  0x23   :  { %338 = vmatpush1.bf16.msra.mxu0 %v4216_v7  ;;  %379 = vmatpush1.bf16.msra.mxu1 %v4222_v8  ;;  %v4291_v20 = vld [vmem:[%s6070_s1 + $0x68] ss:$16 sps:$4 sm:$0xff]   ;;  %v4298_v21 = vld [vmem:[%s6070_s1 + $0x44] ss:$16 sps:$4 sm:$0xff]   ;;  %v4305_v22 = vld [vmem:[%s6070_s1 + $0x4c] ss:$16 sps:$4 sm:$0xff]  }
  0x24   :  { %339 = vmatprep.subr.bf16.mxu0 %v4228_v9  ;;  %380 = vmatprep.subr.bf16.mxu1 %v4233_v10  ;;  %v4310_v23 = vld [vmem:[%s6070_s1 + $0x40] ss:$16 sps:$4 sm:$0xff]   ;;  %v4317_v24 = vld [vmem:[%s6070_s1 + $0x48] ss:$16 sps:$4 sm:$0xff]   ;;  %v4322_v25 = vld [vmem:[%s6070_s1 + $0x24] ss:$16 sps:$4 sm:$0xff]  }
  0x25   :  { %v4329_v26 = vld [vmem:[%s6070_s1 + $0x2c] ss:$16 sps:$4 sm:$0xff]   ;;  %v4334_v27 = vld [vmem:[%s6070_s1 + $0x20] ss:$16 sps:$4 sm:$0xff]   ;;  %v4339_v28 = vld [vmem:[%s6070_s1 + $0x28] ss:$16 sps:$4 sm:$0xff]  }
  0x26   :  { %v4344_v29 = vld [vmem:[%s6070_s1 + $0x4] ss:$16 sps:$4 sm:$0xff]   ;;  %v4349_v30 = vld [vmem:[%s6070_s1 + $0xc] ss:$16 sps:$4 sm:$0xff]   ;;  %v4358_v31 = vld [vmem:[%s6070_s1] ss:$16 sps:$4 sm:$0xff]  }
  0x27   :  { %340 = vmatpush1.bf16.msra.mxu0 %v4238_v11  ;;  %381 = vmatpush1.bf16.msra.mxu1 %v4243_v12  ;;  %v4363_v32 = vld [vmem:[%s6070_s1 + $0x8] ss:$16 sps:$4 sm:$0xff]   ;;  %v4365_v33 = vld [vmem:[#allocation5 + $0xe4] ss:$16 sps:$4 sm:$0xff]   ;;  %v4367_v34 = vld [vmem:[#allocation5 + $0xec] ss:$16 sps:$4 sm:$0xff]  }
  0x28   :  { %341 = vmatprep.subr.bf16.mxu0 %v4250_v13  ;;  %382 = vmatprep.subr.bf16.mxu1 %v4257_v14  ;;  %v4373_v35 = vld [vmem:[#allocation5 + $0xe0] ss:$16 sps:$4 sm:$0xff]   ;;  %v4375_v36 = vld [vmem:[#allocation5 + $0xe8] ss:$16 sps:$4 sm:$0xff]   ;;  %v4387_v37 = vld [vmem:[#allocation5 + $0xc4] ss:$16 sps:$4 sm:$0xff]  }
  0x29   :  { %v4389_v38 = vld [vmem:[#allocation5 + $0xcc] ss:$16 sps:$4 sm:$0xff]   ;;  %v4393_v39 = vld [vmem:[#allocation5 + $0xc0] ss:$16 sps:$4 sm:$0xff]   ;;  %v4395_v40 = vld [vmem:[#allocation5 + $0xc8] ss:$16 sps:$4 sm:$0xff]  }
  0x2a   :  { %v4399_v41 = vld [vmem:[#allocation5 + $0xa4] ss:$16 sps:$4 sm:$0xff]   ;;  %v4401_v42 = vld [vmem:[#allocation5 + $0xac] ss:$16 sps:$4 sm:$0xff]   ;;  %v4403_v43 = vld [vmem:[#allocation5 + $0xa0] ss:$16 sps:$4 sm:$0xff]  }
  0x2b   :  { %342 = vmatpush1.bf16.msra.mxu0 %v4262_v15  ;;  %383 = vmatpush1.bf16.msra.mxu1 %v4269_v16  ;;  %v4405_v44 = vld [vmem:[#allocation5 + $0xa8] ss:$16 sps:$4 sm:$0xff]   ;;  %v4411_v45 = vld [vmem:[#allocation5 + $0x84] ss:$16 sps:$4 sm:$0xff]   ;;  %v4413_v46 = vld [vmem:[#allocation5 + $0x8c] ss:$16 sps:$4 sm:$0xff]  }
  0x2c   :  { %343 = vmatprep.subr.bf16.mxu0 %v4274_v17  ;;  %384 = vmatprep.subr.bf16.mxu1 %v4281_v18  ;;  %v4415_v47 = vld [vmem:[#allocation5 + $0x80] ss:$16 sps:$4 sm:$0xff]   ;;  %v4417_v48 = vld [vmem:[#allocation5 + $0x88] ss:$16 sps:$4 sm:$0xff]   ;;  %v4423_v49 = vld [vmem:[#allocation5 + $0x64] ss:$16 sps:$4 sm:$0xff]  }
  0x2d   :  { %6360 = vst [vmem:[#allocation11_spill] sm:$0xff] %v4415_v47  ;;  %6361 = vst [vmem:[#allocation12_spill] sm:$0xff] %v4417_v48  ;;  %v4425_v50 = vld [vmem:[#allocation5 + $0x6c] ss:$16 sps:$4 sm:$0xff]   ;;  %v4427_v51 = vld [vmem:[#allocation5 + $0x60] ss:$16 sps:$4 sm:$0xff]  }
  0x2e   :  { %6362 = vst [vmem:[#allocation13_spill] sm:$0xff] %v4423_v49  ;;  %6363 = vst [vmem:[#allocation14_spill] sm:$0xff] %v4425_v50  ;;  %v4429_v52 = vld [vmem:[#allocation5 + $0x68] ss:$16 sps:$4 sm:$0xff]   ;;  %v4435_v53 = vld [vmem:[#allocation5 + $0x44] ss:$16 sps:$4 sm:$0xff]  }
  0x2f   :  { %344 = vmatpush1.bf16.msra.mxu0 %v4286_v19  ;;  %385 = vmatpush1.bf16.msra.mxu1 %v4291_v20  ;;  %6364 = vst [vmem:[#allocation15_spill] sm:$0xff] %v4427_v51  ;;  %6365 = vst [vmem:[#allocation16_spill] sm:$0xff] %v4429_v52  ;;  %v4437_v54 = vld [vmem:[#allocation5 + $0x4c] ss:$16 sps:$4 sm:$0xff]   ;;  %v4439_v55 = vld [vmem:[#allocation5 + $0x40] ss:$16 sps:$4 sm:$0xff]  }
  0x30   :  { %345 = vmatprep.subr.bf16.mxu0 %v4298_v21  ;;  %386 = vmatprep.subr.bf16.mxu1 %v4305_v22  ;;  %6366 = vst [vmem:[#allocation17_spill] sm:$0xff] %v4435_v53  ;;  %6367 = vst [vmem:[#allocation18_spill] sm:$0xff] %v4437_v54  ;;  %v4441_v56 = vld [vmem:[#allocation5 + $0x48] ss:$16 sps:$4 sm:$0xff]   ;;  %v4447_v57 = vld [vmem:[#allocation5 + $0x24] ss:$16 sps:$4 sm:$0xff]  }
  0x31   :  { %6368 = vst [vmem:[#allocation19_spill] sm:$0xff] %v4439_v55  ;;  %6369 = vst [vmem:[#allocation20_spill] sm:$0xff] %v4441_v56  ;;  %v4449_v58 = vld [vmem:[#allocation5 + $0x2c] ss:$16 sps:$4 sm:$0xff]   ;;  %v4451_v59 = vld [vmem:[#allocation5 + $0x20] ss:$16 sps:$4 sm:$0xff]  }
  0x32   :  { %6370 = vst [vmem:[#allocation21_spill] sm:$0xff] %v4447_v57  ;;  %6371 = vst [vmem:[#allocation22_spill] sm:$0xff] %v4449_v58  ;;  %v4453_v60 = vld [vmem:[#allocation5 + $0x28] ss:$16 sps:$4 sm:$0xff]   ;;  %v4459_v61 = vld [vmem:[#allocation5 + $0x4] ss:$16 sps:$4 sm:$0xff]  }
  0x33   :  { %346 = vmatpush1.bf16.msra.mxu0 %v4310_v23  ;;  %387 = vmatpush1.bf16.msra.mxu1 %v4317_v24  ;;  %6372 = vst [vmem:[#allocation23_spill] sm:$0xff] %v4451_v59  ;;  %6373 = vst [vmem:[#allocation24_spill] sm:$0xff] %v4453_v60  ;;  %v4461_v62 = vld [vmem:[#allocation5 + $0xc] ss:$16 sps:$4 sm:$0xff]   ;;  %v4463_v63 = vld [vmem:[#allocation5] ss:$16 sps:$4 sm:$0xff]  }
  0x34   :  { %347 = vmatprep.subr.bf16.mxu0 %v4322_v25  ;;  %388 = vmatprep.subr.bf16.mxu1 %v4329_v26  ;;  %6374 = vst [vmem:[#allocation25_spill] sm:$0xff] %v4459_v61  ;;  %6375 = vst [vmem:[#allocation26_spill] sm:$0xff] %v4461_v62  ;;  %s4130_s18 = smov [#allocation7]   ;;  %vm3313_vm1 = vcmask 74752  }
  0x35   :  { %6376 = vst [vmem:[#allocation27_spill] sm:$0xff] %v4463_v63  ;;  %s3321_s19 = sshll.u32 %s4130_s18, 4  ;;  %s3322_s19 = int_to_ptr.vmem [resolvable:$true] %s3321_s19 }
  0x36   :  { %s4096_s20 = scalar_lea.vmem %s3322_s19, 32  ;;  %p4101_p11 = scmp.lt.s32.totalorder %s3322_s19, %s3322_s19 }
  0x37   :  { %348 = vmatpush1.bf16.msra.mxu0 %v4334_v27  ;;  %389 = vmatpush1.bf16.msra.mxu1 %v4339_v28  ;;  %p4097_p10 = scmp.ne.s32.totalorder %s3322_s19, %s4096_s20  ;;  %p4102_p12 = scmp.lt.s32.totalorder %s4096_s20, %s4096_s20 }
  0x38   :  { %349 = vmatprep.subr.bf16.mxu0 %v4344_v29  ;;  %390 = vmatprep.subr.bf16.mxu1 %v4349_v30 }
  0x39   :  { %p4103_p13 = por %p4102_p12, %p4101_p11 }
  0x3b   :  { %350 = vmatpush1.bf16.msra.mxu0 %v4358_v31  ;;  %391 = vmatpush1.bf16.msra.mxu1 %v4363_v32  ;;  %p4104_p0 = pnand %p4103_p13, %p4097_p10 }
  0x3c   :  { %621 = vmatprep.subr.bf16.mxu0 %v4365_v33  ;;  %662 = vmatprep.subr.bf16.mxu1 %v4367_v34 }
  0x3e   :  { %368 = vmatmul.mubr.bf16.vlgmr.msra.gmra.mxu0 %v6077_v0  ;;  %409 = vmatmul.mubr.bf16.vlgmr.msra.gmra.mxu1 %v6077_v0 }
  0x3f   :  { %622 = vmatpush1.bf16.msra.mxu0 %v4373_v35  ;;  %663 = vmatpush1.bf16.msra.mxu1 %v4375_v36 }
  0x40   :  { %653 = vmatprep.mubr.bf16.mxu0 %v6077_v0  ;;  %694 = vmatprep.mubr.bf16.mxu1 %v6077_v0  ;;  %v4465_v0 = vld [vmem:[#allocation5 + $0x8] ss:$16 sps:$4 sm:$0xff]  }
  0x41   :  { %623 = vmatprep.subr.bf16.mxu0 %v4387_v37  ;;  %664 = vmatprep.subr.bf16.mxu1 %v4389_v38  ;;  %6377 = vst [vmem:[#allocation28_spill] sm:$0xff] %v4465_v0 }
  0x43   :  { %624 = vmatpush1.bf16.msra.mxu0 %v4393_v39  ;;  %665 = vmatpush1.bf16.msra.mxu1 %v4395_v40 }
  0x44   :  { %625 = vmatprep.subr.bf16.mxu0 %v4399_v41  ;;  %666 = vmatprep.subr.bf16.mxu1 %v4401_v42 }
  0x47   :  { %626 = vmatpush1.bf16.msra.mxu0 %v4403_v43  ;;  %667 = vmatpush1.bf16.msra.mxu1 %v4405_v44 }
  0x48   :  { %627 = vmatprep.subr.bf16.mxu0 %v4411_v45  ;;  %668 = vmatprep.subr.bf16.mxu1 %v4413_v46 }
  0x4b   :  { %628 = vmatpush1.bf16.msra.mxu0 %v4415_v47  ;;  %669 = vmatpush1.bf16.msra.mxu1 %v4417_v48 }
  0x4c   :  { %629 = vmatprep.subr.bf16.mxu0 %v4423_v49  ;;  %670 = vmatprep.subr.bf16.mxu1 %v4425_v50 }
  0x4f   :  { %630 = vmatpush1.bf16.msra.mxu0 %v4427_v51  ;;  %671 = vmatpush1.bf16.msra.mxu1 %v4429_v52 }
  0x50   :  { %631 = vmatprep.subr.bf16.mxu0 %v4435_v53  ;;  %672 = vmatprep.subr.bf16.mxu1 %v4437_v54 }
  0x53   :  { %632 = vmatpush1.bf16.msra.mxu0 %v4439_v55  ;;  %673 = vmatpush1.bf16.msra.mxu1 %v4441_v56  ;;  %v4493_v56 = vld [vmem:[#allocation2 + $0xc8] ss:$16 sps:$4 sm:$0xff]   ;;  %v4509_v55 = vld [vmem:[#allocation2 + $0x84] ss:$16 sps:$4 sm:$0xff]  }
  0x54   :  { %633 = vmatprep.subr.bf16.mxu0 %v4447_v57  ;;  %674 = vmatprep.subr.bf16.mxu1 %v4449_v58  ;;  %v6378_v58 = vmov 0   ;;  %v4479_v57 = vld [vmem:[#allocation2 + $0xe0] ss:$16 sps:$4 sm:$0xff]   ;;  %6386 = vst [vmem:[#allocation36_spill] sm:$0xff] %v4493_v56  ;;  %6391 = vst [vmem:[#allocation41_spill] sm:$0xff] %v4509_v55 }
  0x55   :  { %6381 = vst [vmem:[#allocation31_spill] sm:$0xff] %v4479_v57 }
  0x57   :  { %634 = vmatpush1.bf16.msra.mxu0 %v4451_v59  ;;  %675 = vmatpush1.bf16.msra.mxu1 %v4453_v60  ;;  %v4475_v60 = vld [vmem:[#allocation2 + $0xe4] ss:$16 sps:$4 sm:$0xff]   ;;  %v4477_v59 = vld [vmem:[#allocation2 + $0xec] ss:$16 sps:$4 sm:$0xff]  }
  0x58   :  { %635 = vmatprep.subr.bf16.mxu0 %v4459_v61  ;;  %676 = vmatprep.subr.bf16.mxu1 %v4461_v62  ;;  %6379 = vst [vmem:[#allocation29_spill] sm:$0xff] %v4475_v60  ;;  %6380 = vst [vmem:[#allocation30_spill] sm:$0xff] %v4477_v59  ;;  %v4481_v61 = vld [vmem:[#allocation2 + $0xe8] ss:$16 sps:$4 sm:$0xff]   ;;  %v4491_v62 = vld [vmem:[#allocation2 + $0xc0] ss:$16 sps:$4 sm:$0xff]  }
  0x59   :  { %6382 = vst [vmem:[#allocation32_spill] sm:$0xff] %v4481_v61  ;;  %6385 = vst [vmem:[#allocation35_spill] sm:$0xff] %v4491_v62 }
  0x5b   :  { %636 = vmatpush1.bf16.msra.mxu0 %v4463_v63  ;;  %677 = vmatpush1.bf16.msra.mxu1 %v4465_v0  ;;  %v4487_v0 = vld [vmem:[#allocation2 + $0xc4] ss:$16 sps:$4 sm:$0xff]   ;;  %v4489_v63 = vld [vmem:[#allocation2 + $0xcc] ss:$16 sps:$4 sm:$0xff]  }
  0x5c   :  { %863 = vmatprep.subr.bf16.mxu0 %v4475_v60  ;;  %904 = vmatprep.subr.bf16.mxu1 %v4477_v59  ;;  %6383 = vst [vmem:[#allocation33_spill] sm:$0xff] %v4487_v0  ;;  %6384 = vst [vmem:[#allocation34_spill] sm:$0xff] %v4489_v63  ;;  %v4499_v59 = vld [vmem:[#allocation2 + $0xa4] ss:$16 sps:$4 sm:$0xff]   ;;  %v4505_v60 = vld [vmem:[#allocation2 + $0xa8] ss:$16 sps:$4 sm:$0xff]  }
  0x5d   :  { %6387 = vst [vmem:[#allocation37_spill] sm:$0xff] %v4499_v59  ;;  %6390 = vst [vmem:[#allocation40_spill] sm:$0xff] %v4505_v60 }
  0x5e   :  { %654 = vmatmul.mubr.bf16.vlgmr.msra.gmra.mxu0 %v6378_v58  ;;  %695 = vmatmul.mubr.bf16.vlgmr.msra.gmra.mxu1 %v6378_v58 }
  0x5f   :  { %895 = vmatprep.mubr.bf16.mxu0 %v6378_v58  ;;  %936 = vmatprep.mubr.bf16.mxu1 %v6378_v58 }
  0x60   :  { %864 = vmatpush1.bf16.msra.mxu0 %v4479_v57  ;;  %905 = vmatpush1.bf16.msra.mxu1 %v4481_v61  ;;  %v4501_v57 = vld [vmem:[#allocation2 + $0xac] ss:$16 sps:$4 sm:$0xff]   ;;  %v4503_v61 = vld [vmem:[#allocation2 + $0xa0] ss:$16 sps:$4 sm:$0xff]  }
  0x61   :  { %865 = vmatprep.subr.bf16.mxu0 %v4487_v0  ;;  %906 = vmatprep.subr.bf16.mxu1 %v4489_v63  ;;  %6388 = vst [vmem:[#allocation38_spill] sm:$0xff] %v4501_v57  ;;  %6389 = vst [vmem:[#allocation39_spill] sm:$0xff] %v4503_v61  ;;  %v4511_v0 = vld [vmem:[#allocation2 + $0x8c] ss:$16 sps:$4 sm:$0xff]   ;;  %v4521_v63 = vld [vmem:[#allocation2 + $0x64] ss:$16 sps:$4 sm:$0xff]  }
  0x62   :  { %6392 = vst [vmem:[#allocation42_spill] sm:$0xff] %v4511_v0  ;;  %6395 = vst [vmem:[#allocation45_spill] sm:$0xff] %v4521_v63 }
  0x64   :  { %866 = vmatpush1.bf16.msra.mxu0 %v4491_v62  ;;  %907 = vmatpush1.bf16.msra.mxu1 %v4493_v56  ;;  %v4515_v56 = vld [vmem:[#allocation2 + $0x80] ss:$16 sps:$4 sm:$0xff]   ;;  %v4517_v62 = vld [vmem:[#allocation2 + $0x88] ss:$16 sps:$4 sm:$0xff]  }
  0x65   :  { %867 = vmatprep.subr.bf16.mxu0 %v4499_v59  ;;  %908 = vmatprep.subr.bf16.mxu1 %v4501_v57  ;;  %6393 = vst [vmem:[#allocation43_spill] sm:$0xff] %v4515_v56  ;;  %6394 = vst [vmem:[#allocation44_spill] sm:$0xff] %v4517_v62  ;;  %v4523_v59 = vld [vmem:[#allocation2 + $0x6c] ss:$16 sps:$4 sm:$0xff]   ;;  %v4527_v57 = vld [vmem:[#allocation2 + $0x60] ss:$16 sps:$4 sm:$0xff]  }
  0x66   :  { %6396 = vst [vmem:[#allocation46_spill] sm:$0xff] %v4523_v59  ;;  %6397 = vst [vmem:[#allocation47_spill] sm:$0xff] %v4527_v57 }
  0x68   :  { %868 = vmatpush1.bf16.msra.mxu0 %v4503_v61  ;;  %909 = vmatpush1.bf16.msra.mxu1 %v4505_v60  ;;  %v4529_v61 = vld [vmem:[#allocation2 + $0x68] ss:$16 sps:$4 sm:$0xff]   ;;  %v4533_v60 = vld [vmem:[#allocation2 + $0x44] ss:$16 sps:$4 sm:$0xff]  }
  0x69   :  { %869 = vmatprep.subr.bf16.mxu0 %v4509_v55  ;;  %910 = vmatprep.subr.bf16.mxu1 %v4511_v0  ;;  %6398 = vst [vmem:[#allocation48_spill] sm:$0xff] %v4529_v61  ;;  %6399 = vst [vmem:[#allocation49_spill] sm:$0xff] %v4533_v60  ;;  %v4535_v55 = vld [vmem:[#allocation2 + $0x4c] ss:$16 sps:$4 sm:$0xff]   ;;  %v4539_v0 = vld [vmem:[#allocation2 + $0x40] ss:$16 sps:$4 sm:$0xff]  }
  0x6a   :  { %6400 = vst [vmem:[#allocation50_spill] sm:$0xff] %v4535_v55  ;;  %6401 = vst [vmem:[#allocation51_spill] sm:$0xff] %v4539_v0 }
  0x6c   :  { %870 = vmatpush1.bf16.msra.mxu0 %v4515_v56  ;;  %911 = vmatpush1.bf16.msra.mxu1 %v4517_v62  ;;  %v4541_v56 = vld [vmem:[#allocation2 + $0x48] ss:$16 sps:$4 sm:$0xff]   ;;  %v4545_v62 = vld [vmem:[#allocation2 + $0x24] ss:$16 sps:$4 sm:$0xff]  }
  0x6d   :  { %871 = vmatprep.subr.bf16.mxu0 %v4521_v63  ;;  %912 = vmatprep.subr.bf16.mxu1 %v4523_v59  ;;  %6402 = vst [vmem:[#allocation52_spill] sm:$0xff] %v4541_v56  ;;  %6403 = vst [vmem:[#allocation53_spill] sm:$0xff] %v4545_v62  ;;  %v4547_v63 = vld [vmem:[#allocation2 + $0x2c] ss:$16 sps:$4 sm:$0xff]   ;;  %v4551_v59 = vld [vmem:[#allocation2 + $0x20] ss:$16 sps:$4 sm:$0xff]  }
  0x6e   :  { %6404 = vst [vmem:[#allocation54_spill] sm:$0xff] %v4547_v63  ;;  %6405 = vst [vmem:[#allocation55_spill] sm:$0xff] %v4551_v59 }
  0x70   :  { %872 = vmatpush1.bf16.msra.mxu0 %v4527_v57  ;;  %913 = vmatpush1.bf16.msra.mxu1 %v4529_v61  ;;  %v4553_v57 = vld [vmem:[#allocation2 + $0x28] ss:$16 sps:$4 sm:$0xff]   ;;  %v4557_v61 = vld [vmem:[#allocation2 + $0x4] ss:$16 sps:$4 sm:$0xff]  }
  0x71   :  { %873 = vmatprep.subr.bf16.mxu0 %v4533_v60  ;;  %914 = vmatprep.subr.bf16.mxu1 %v4535_v55  ;;  %6406 = vst [vmem:[#allocation56_spill] sm:$0xff] %v4553_v57  ;;  %6407 = vst [vmem:[#allocation57_spill] sm:$0xff] %v4557_v61  ;;  %v4559_v60 = vld [vmem:[#allocation2 + $0xc] ss:$16 sps:$4 sm:$0xff]   ;;  %v4563_v55 = vld [vmem:[#allocation2] ss:$16 sps:$4 sm:$0xff]  }
  0x72   :  { %6408 = vst [vmem:[#allocation58_spill] sm:$0xff] %v4559_v60  ;;  %6409 = vst [vmem:[#allocation59_spill] sm:$0xff] %v4563_v55 }
  0x74   :  { %874 = vmatpush1.bf16.msra.mxu0 %v4539_v0  ;;  %915 = vmatpush1.bf16.msra.mxu1 %v4541_v56  ;;  %v4565_v0 = vld [vmem:[#allocation2 + $0x8] ss:$16 sps:$4 sm:$0xff]  }
  0x75   :  { %875 = vmatprep.subr.bf16.mxu0 %v4545_v62  ;;  %916 = vmatprep.subr.bf16.mxu1 %v4547_v63  ;;  %6410 = vst [vmem:[#allocation60_spill] sm:$0xff] %v4565_v0  ;;  %v154_v63 = vlaneseq }
  0x78   :  { %876 = vmatpush1.bf16.msra.mxu0 %v4551_v59  ;;  %917 = vmatpush1.bf16.msra.mxu1 %v4553_v57  ;;  %v4127_v59 = vmov 1983009808   ;;  %v4573_v57 = vshrl.u32 %v154_v63, 7 }
  0x79   :  { %877 = vmatprep.subr.bf16.mxu0 %v4557_v61  ;;  %918 = vmatprep.subr.bf16.mxu1 %v4559_v60  ;;  %v424_v62 = vunpack.c.l.s4 %v4127_v59  ;;  %v174_v59 = vld [vmem:[%s6069_s0] sm:$0xff] }
  0x7a   :  { %6411 = vst [vmem:[#allocation61_spill] sm:$0xff] %v4573_v57 }
  0x7b   :  { %v425_v56 = vunpack.c.0.s8 %v424_v62 }
  0x7c   :  { %878 = vmatpush1.bf16.msra.mxu0 %v4563_v55  ;;  %919 = vmatpush1.bf16.msra.mxu1 %v4565_v0 }
  0x7d   :  { %975 = vmatprep.subr.bf16.mxu0 %v4182_v1  ;;  %1016 = vmatprep.subr.bf16.mxu1 %v4187_v2  ;;  %v4576_v61 = vsub.s32 %v425_v56, %v4573_v57 }
  0x7f   :  { %6412 = vst [vmem:[#allocation62_spill] sm:$0xff] %v4576_v61 }
  0xfe   :  { %v369_v54 = vpop.f32.mrf.mxu0  ;;  %v410_v53 = vpop.f32.mrf.mxu1 }
 0x100   :  { %v371_v60 = vpop.f32.mrf.mxu0  ;;  %v412_v52 = vpop.f32.mrf.mxu1 }
 0x101   :  { %v421_v55 = vcombine.low %v369_v54, %v371_v60  ;;  %v422_v51 = vcombine.low %v410_v53, %v412_v52 }
 0x102   :  { %v373_v0 = vpop.f32.mrf.mxu0  ;;  %v414_v50 = vpop.f32.mrf.mxu1 }
 0x103   :  { %v429_v1 = vrot.slane %v421_v55, %v4576_v61  ;;  %v436_v2 = vrot.slane %v422_v51, %v4576_v61 }
 0x104   :  { %v374_v62 = vpop.f32.mrf.mxu0  ;;  %v415_v63 = vpop.f32.mrf.mxu1 }
 0x105   :  { %v437_v49 = vcombine.low %v429_v1, %v436_v2  ;;  %v6421_v2 = vld [vmem:[#allocation19_spill] sm:$0xff]  ;;  %v6423_v63 = vld [vmem:[#allocation21_spill] sm:$0xff] }
 0x107   :  { %v439_v48 = vadd.f32 %v437_v49, %v174_v59  ;;  %v6422_v59 = vld [vmem:[#allocation20_spill] sm:$0xff] }
 0x109   :  { %v3363_v56 = vmul.f32 -1.442695, %v439_v48  ;;  %v447_v54 = vrot.slane %v439_v48, 6  ;;  %v6419_v48 = vld [vmem:[#allocation17_spill] sm:$0xff] }
 0x10b   :  { %3672 = vpow2.f32 %v3363_v56  ;;  %v6424_v56 = vld [vmem:[#allocation22_spill] sm:$0xff] }
 0x118   :  { %v3673_v57 = vpop.eup %3672 }
 0x119   :  { %v443_v47 = vadd.f32 1.0, %v3673_v57  ;;  %v6420_v57 = vld [vmem:[#allocation18_spill] sm:$0xff] }
 0x11b   :  { %3674 = vrcp.f32 %v443_v47  ;;  %v6418_v47 = vld [vmem:[#allocation16_spill] sm:$0xff] }
 0x11c   :  { %3676 = vtanh.f32 %v447_v54  ;;  %v6425_v54 = vld [vmem:[#allocation23_spill] sm:$0xff] }
 0x128   :  { %v3675_v0 = vpop.eup %3674 }
 0x129   :  { %v451_v50 = vrot.slane %v3675_v0, 2  ;;  %v3677_v52 = vpop.eup %3676  ;;  %v457_v60 = vrot.slane %v3675_v0, 4 }
 0x12a   :  { %v454_v53 = vmul.f32 %v3677_v52, %v3675_v0  ;;  %v6426_v0 = vld [vmem:[#allocation24_spill] sm:$0xff]  ;;  %v6428_v52 = vld [vmem:[#allocation26_spill] sm:$0xff] }
 0x12b   :  { %v453_v51 = vmul.f32 0.0, %v451_v50  ;;  %v6427_v50 = vld [vmem:[#allocation25_spill] sm:$0xff] }
 0x12d   :  { %v4583_v55 = vadd.f32 %v454_v53, %v453_v51  ;;  %v6429_v53 = vld [vmem:[#allocation27_spill] sm:$0xff]  ;;  %v6430_v51 = vld [vmem:[#allocation28_spill] sm:$0xff] }
 0x12f   :  { %3678 = vtanh.f32 %v4583_v55 }
 0x13c   :  { %v3679_v62 = vpop.eup %3678 }
 0x13d   :  { %v459_v1 = vmul.f32 %v3679_v62, %v457_v60  ;;  %v6431_v60 = vld [vmem:[#allocation29_spill] sm:$0xff]  ;;  %v6432_v62 = vld [vmem:[#allocation30_spill] sm:$0xff] }
 0x13f   :  { %v460_v49 = vpack.c.bf16 %v459_v1, %v459_v1  ;;  %v6433_v1 = vld [vmem:[#allocation61_spill] sm:$0xff] }
 0x141   :  { %896 = vmatmul.mubr.bf16.vlgmr.msra.gmra.mxu0 %v460_v49  ;;  %937 = vmatmul.mubr.bf16.vlgmr.msra.gmra.mxu1 %v460_v49 }
 0x142   :  { %976 = vmatpush1.bf16.msra.mxu0 %v4193_v3  ;;  %1017 = vmatpush1.bf16.msra.mxu1 %v4198_v4  ;;  %v655_v3 = vpop.f32.mrf.mxu0  ;;  %v4616_v4 = vpop.f32.mrf.mxu1 }
 0x143   :  { %977 = vmatprep.subr.bf16.mxu0 %v4204_v5  ;;  %1018 = vmatprep.subr.bf16.mxu1 %v4211_v6 }
 0x144   :  { %1007 = vmatprep.mubr.bf16.mxu0 %v6378_v58  ;;  %1048 = vmatprep.mubr.bf16.mxu1 %v6378_v58  ;;  %v657_v5 = vpop.f32.mrf.mxu0  ;;  %v4620_v6 = vpop.f32.mrf.mxu1 }
 0x146   :  { %978 = vmatpush1.bf16.msra.mxu0 %v4216_v7  ;;  %1019 = vmatpush1.bf16.msra.mxu1 %v4222_v8  ;;  %v659_v7 = vpop.f32.mrf.mxu0  ;;  %v700_v8 = vpop.f32.mrf.mxu1 }
 0x147   :  { %979 = vmatprep.subr.bf16.mxu0 %v4228_v9  ;;  %1020 = vmatprep.subr.bf16.mxu1 %v4233_v10  ;;  %v152_v7 = vld [vmem:[%s6073_s4] sm:$0xf]  ;;  %v160_v8 = vsub.s32 1, %v6433_v1 }
 0x148   :  { %v660_v9 = vpop.f32.mrf.mxu0  ;;  %v701_v10 = vpop.f32.mrf.mxu1 }
 0x14a   :  { %980 = vmatpush1.bf16.msra.mxu0 %v4238_v11  ;;  %1021 = vmatpush1.bf16.msra.mxu1 %v4243_v12  ;;  %v6413_v11 = vld [vmem:[#allocation11_spill] sm:$0xff]  ;;  %v6414_v12 = vld [vmem:[#allocation12_spill] sm:$0xff] }
 0x14b   :  { %981 = vmatprep.subr.bf16.mxu0 %v4250_v13  ;;  %1022 = vmatprep.subr.bf16.mxu1 %v4257_v14  ;;  %v6415_v13 = vld [vmem:[#allocation13_spill] sm:$0xff]  ;;  %v6416_v14 = vld [vmem:[#allocation14_spill] sm:$0xff] }
 0x14e   :  { %982 = vmatpush1.bf16.msra.mxu0 %v4262_v15  ;;  %1023 = vmatpush1.bf16.msra.mxu1 %v4269_v16  ;;  %v6417_v15 = vld [vmem:[#allocation15_spill] sm:$0xff] }
 0x14f   :  { %983 = vmatprep.subr.bf16.mxu0 %v4274_v17  ;;  %1024 = vmatprep.subr.bf16.mxu1 %v4281_v18 }
 0x152   :  { %984 = vmatpush1.bf16.msra.mxu0 %v4286_v19  ;;  %1025 = vmatpush1.bf16.msra.mxu1 %v4291_v20 }
 0x153   :  { %985 = vmatprep.subr.bf16.mxu0 %v4298_v21  ;;  %1026 = vmatprep.subr.bf16.mxu1 %v4305_v22 }
 0x156   :  { %986 = vmatpush1.bf16.msra.mxu0 %v4310_v23  ;;  %1027 = vmatpush1.bf16.msra.mxu1 %v4317_v24 }
 0x157   :  { %987 = vmatprep.subr.bf16.mxu0 %v4322_v25  ;;  %1028 = vmatprep.subr.bf16.mxu1 %v4329_v26 }
 0x15a   :  { %988 = vmatpush1.bf16.msra.mxu0 %v4334_v27  ;;  %1029 = vmatpush1.bf16.msra.mxu1 %v4339_v28 }
 0x15b   :  { %989 = vmatprep.subr.bf16.mxu0 %v4344_v29  ;;  %1030 = vmatprep.subr.bf16.mxu1 %v4349_v30 }
 0x15e   :  { %990 = vmatpush1.bf16.msra.mxu0 %v4358_v31  ;;  %1031 = vmatpush1.bf16.msra.mxu1 %v4363_v32 }
 0x15f   :  { %1102 = vmatprep.subr.bf16.mxu0 %v4365_v33  ;;  %1143 = vmatprep.subr.bf16.mxu1 %v4367_v34 }
 0x161   :  { %1008 = vmatmul.mubr.bf16.vlgmr.msra.gmra.mxu0 %v460_v49  ;;  %1049 = vmatmul.mubr.bf16.vlgmr.msra.gmra.mxu1 %v460_v49  ;;  %v156_v49 = vsub.s32 0, %v6433_v1 }
 0x162   :  { %1103 = vmatpush1.bf16.msra.mxu0 %v4373_v35  ;;  %1144 = vmatpush1.bf16.msra.mxu1 %v4375_v36 }
 0x163   :  { %1104 = vmatprep.subr.bf16.mxu0 %v4387_v37  ;;  %1145 = vmatprep.subr.bf16.mxu1 %v4389_v38  ;;  %v4663_v9 = vrot.slane %v152_v7, %v156_v49 }
 0x164   :  { %1134 = vmatprep.mubr.bf16.mxu0 %v6378_v58  ;;  %1175 = vmatprep.mubr.bf16.mxu1 %v6378_v58 }
 0x166   :  { %1105 = vmatpush1.bf16.msra.mxu0 %v4393_v39  ;;  %1146 = vmatpush1.bf16.msra.mxu1 %v4395_v40 }
 0x167   :  { %1106 = vmatprep.subr.bf16.mxu0 %v4399_v41  ;;  %1147 = vmatprep.subr.bf16.mxu1 %v4401_v42 }
 0x16a   :  { %1107 = vmatpush1.bf16.msra.mxu0 %v4403_v43  ;;  %1148 = vmatpush1.bf16.msra.mxu1 %v4405_v44 }
 0x16b   :  { %1108 = vmatprep.subr.bf16.mxu0 %v4411_v45  ;;  %1149 = vmatprep.subr.bf16.mxu1 %v4413_v46 }
 0x16e   :  { %1109 = vmatpush1.bf16.msra.mxu0 %v6413_v11  ;;  %1150 = vmatpush1.bf16.msra.mxu1 %v6414_v12 }
 0x16f   :  { %1110 = vmatprep.subr.bf16.mxu0 %v6415_v13  ;;  %1151 = vmatprep.subr.bf16.mxu1 %v6416_v14 }
 0x172   :  { %1111 = vmatpush1.bf16.msra.mxu0 %v6417_v15  ;;  %1152 = vmatpush1.bf16.msra.mxu1 %v6418_v47 }
 0x173   :  { %1112 = vmatprep.subr.bf16.mxu0 %v6419_v48  ;;  %1153 = vmatprep.subr.bf16.mxu1 %v6420_v57 }
 0x176   :  { %1113 = vmatpush1.bf16.msra.mxu0 %v6421_v2  ;;  %1154 = vmatpush1.bf16.msra.mxu1 %v6422_v59  ;;  %v164_v2 = vsub.s32 2, %v6433_v1 }
 0x177   :  { %1114 = vmatprep.subr.bf16.mxu0 %v6423_v63  ;;  %1155 = vmatprep.subr.bf16.mxu1 %v6424_v56 }
 0x17a   :  { %1115 = vmatpush1.bf16.msra.mxu0 %v6425_v54  ;;  %1156 = vmatpush1.bf16.msra.mxu1 %v6426_v0 }
 0x17b   :  { %1116 = vmatprep.subr.bf16.mxu0 %v6427_v50  ;;  %1157 = vmatprep.subr.bf16.mxu1 %v6428_v52 }
 0x17e   :  { %1117 = vmatpush1.bf16.msra.mxu0 %v6429_v53  ;;  %1158 = vmatpush1.bf16.msra.mxu1 %v6430_v51  ;;  %v4665_v53 = vrot.slane %v152_v7, %v160_v8 }
 0x17f   :  { %1184 = vmatprep.subr.bf16.mxu0 %v6431_v60  ;;  %1225 = vmatprep.subr.bf16.mxu1 %v6432_v62 }
 0x201   :  { %v897_v10 = vpop.f32.mrf.mxu0  ;;  %v938_v52 = vpop.f32.mrf.mxu1 }
 0x202   :  { %v898_v50 = vadd.f32 %v897_v10, %v655_v3  ;;  %v4670_v3 = vrot.slane %v152_v7, %v164_v2  ;;  %v939_v8 = vadd.f32 %v938_v52, %v4616_v4  ;;  %v168_v10 = vsub.s32 3, %v6433_v1 }
 0x203   :  { %v899_v51 = vpop.f32.mrf.mxu0  ;;  %v940_v0 = vpop.f32.mrf.mxu1 }
 0x204   :  { %v945_v60 = vadd.f32 %v898_v50, %v4663_v9  ;;  %v900_v62 = vadd.f32 %v899_v51, %v657_v5  ;;  %v947_v5 = vadd.f32 %v939_v8, %v4670_v3 }
 0x205   :  { %v901_v54 = vpop.f32.mrf.mxu0  ;;  %v942_v56 = vpop.f32.mrf.mxu1 }
 0x206   :  { %v3428_v63 = vmul.f32 -1.442695, %v945_v60  ;;  %v946_v59 = vadd.f32 %v900_v62, %v4665_v53  ;;  %v4675_v54 = vrot.slane %v152_v7, %v168_v10  ;;  %v941_v56 = vadd.f32 %v940_v0, %v4620_v6 }
 0x207   :  { %v902_v57 = vpop.f32.mrf.mxu0  ;;  %v943_v49 = vpop.f32.mrf.mxu1  ;;  %v3430_v50 = vmul.f32 -1.442695, %v947_v5 }
 0x208   :  { %3680 = vpow2.f32 %v3428_v63  ;;  %v3429_v48 = vmul.f32 -1.442695, %v946_v59  ;;  %6434 = vst [vmem:[#allocation11_spill] sm:$0xff] %v4675_v54  ;;  %v948_v57 = vadd.f32 %v941_v56, %v4675_v54 }
 0x20a   :  { %3682 = vpow2.f32 %v3429_v48 }
 0x20b   :  { %3684 = vpow2.f32 %v3430_v50 }
 0x215   :  { %v3681_v51 = vpop.eup %3680 }
 0x216   :  { %v958_v60 = vadd.f32 1.0, %v3681_v51  ;;  %v3431_v51 = vld [vmem:[%s6069_s0 + $0x8] sm:$0xff] }
 0x217   :  { %v3683_v63 = vpop.eup %3682 }
 0x218   :  { %3686 = vrcp.f32 %v958_v60  ;;  %v959_v48 = vadd.f32 1.0, %v3683_v63  ;;  %v3685_v62 = vpop.eup %3684 }
 0x219   :  { %3688 = vtanh.f32 %v948_v57  ;;  %v960_v50 = vadd.f32 1.0, %v3685_v62 }
 0x21a   :  { %3690 = vrcp.f32 %v959_v48 }
 0x21b   :  { %3692 = vrcp.f32 %v960_v50  ;;  %v6440_v50 = vld [vmem:[#allocation36_spill] sm:$0xff] }
 0x221   :  { %v1009_v4 = vpop.f32.mrf.mxu0  ;;  %v1050_v2 = vpop.f32.mrf.mxu1 }
 0x223   :  { %v1011_v59 = vpop.f32.mrf.mxu0  ;;  %v1052_v52 = vpop.f32.mrf.mxu1 }
 0x224   :  { %v1061_v1 = vcombine.low %v1009_v4, %v1011_v59  ;;  %v1062_v7 = vcombine.low %v1050_v2, %v1052_v52 }
 0x225   :  { %v3687_v49 = vpop.eup %3686  ;;  %v1013_v6 = vpop.f32.mrf.mxu0 }
 0x226   :  { %v1054_v0 = vpop.f32.mrf.mxu1  ;;  %v3689_v8 = vpop.eup %3688  ;;  %v1069_v10 = vrot.slane %v1061_v1, %v4576_v61  ;;  %v1076_v5 = vrot.slane %v1062_v7, %v4576_v61 }
 0x227   :  { %v3691_v56 = vpop.eup %3690  ;;  %v1014_v57 = vpop.f32.mrf.mxu0  ;;  %v969_v48 = vmul.f32 %v3689_v8, %v3687_v49  ;;  %v6435_v49 = vld [vmem:[#allocation31_spill] sm:$0xff]  ;;  %v6436_v8 = vld [vmem:[#allocation32_spill] sm:$0xff] }
 0x228   :  { %v1055_v60 = vpop.f32.mrf.mxu1  ;;  %v968_v63 = vmul.f32 0.0, %v3691_v56  ;;  %v1077_v4 = vcombine.low %v1069_v10, %v1076_v5  ;;  %v3693_v1 = vpop.eup %3692  ;;  %v6437_v10 = vld [vmem:[#allocation33_spill] sm:$0xff]  ;;  %v6438_v5 = vld [vmem:[#allocation34_spill] sm:$0xff]  ;;  %v6439_v56 = vld [vmem:[#allocation35_spill] sm:$0xff] }
 0x229   :  { %v6443_v57 = vld [vmem:[#allocation39_spill] sm:$0xff]  ;;  %v6444_v60 = vld [vmem:[#allocation40_spill] sm:$0xff] }
 0x22a   :  { %v4684_v2 = vadd.f32 %v969_v48, %v968_v63  ;;  %v1079_v59 = vadd.f32 %v3431_v51, %v1077_v4  ;;  %v6441_v51 = vld [vmem:[#allocation37_spill] sm:$0xff]  ;;  %v6446_v63 = vld [vmem:[#allocation42_spill] sm:$0xff]  ;;  %v6447_v4 = vld [vmem:[#allocation43_spill] sm:$0xff] }
 0x22c   :  { %3694 = vtanh.f32 %v4684_v2  ;;  %v3432_v52 = vmul.f32 -1.442695, %v1079_v59  ;;  %v1087_v61 = vrot.slane %v1079_v59, 6  ;;  %v6448_v59 = vld [vmem:[#allocation44_spill] sm:$0xff] }
 0x22e   :  { %3696 = vpow2.f32 %v3432_v52  ;;  %v6449_v52 = vld [vmem:[#allocation45_spill] sm:$0xff] }
 0x239   :  { %v3695_v7 = vpop.eup %3694 }
 0x23a   :  { %v972_v62 = vmul.f32 %v3695_v7, %v3693_v1  ;;  %v6450_v1 = vld [vmem:[#allocation46_spill] sm:$0xff] }
 0x23b   :  { %v3697_v6 = vpop.eup %3696 }
 0x23c   :  { %v1083_v0 = vadd.f32 1.0, %v3697_v6  ;;  %v1101_v54 = vpack.c.bf16 %v972_v62, %v972_v62 }
 0x23e   :  { %3698 = vrcp.f32 %v1083_v0  ;;  %1135 = vmatmul.mubr.bf16.vlgmr.msra.gmra.mxu0 %v1101_v54  ;;  %1176 = vmatmul.mubr.bf16.vlgmr.msra.gmra.mxu1 %v1101_v54  ;;  %v6442_v54 = vld [vmem:[#allocation38_spill] sm:$0xff] }
 0x23f   :  { %1185 = vmatpush1.bf16.msra.mxu0 %v6435_v49  ;;  %1226 = vmatpush1.bf16.msra.mxu1 %v6436_v8  ;;  %3700 = vtanh.f32 %v1087_v61  ;;  %v6445_v61 = vld [vmem:[#allocation41_spill] sm:$0xff] }
 0x240   :  { %1186 = vmatprep.subr.bf16.mxu0 %v6437_v10  ;;  %1227 = vmatprep.subr.bf16.mxu1 %v6438_v5 }
 0x241   :  { %1216 = vmatprep.mubr.bf16.mxu0 %v6378_v58  ;;  %1257 = vmatprep.mubr.bf16.mxu1 %v6378_v58 }
 0x243   :  { %1187 = vmatpush1.bf16.msra.mxu0 %v6439_v56  ;;  %1228 = vmatpush1.bf16.msra.mxu1 %v6440_v50 }
 0x244   :  { %1188 = vmatprep.subr.bf16.mxu0 %v6441_v51  ;;  %1229 = vmatprep.subr.bf16.mxu1 %v6442_v54 }
 0x247   :  { %1189 = vmatpush1.bf16.msra.mxu0 %v6443_v57  ;;  %1230 = vmatpush1.bf16.msra.mxu1 %v6444_v60  ;;  %v6451_v57 = vld [vmem:[#allocation47_spill] sm:$0xff]  ;;  %v6452_v60 = vld [vmem:[#allocation48_spill] sm:$0xff] }
 0x248   :  { %1190 = vmatprep.subr.bf16.mxu0 %v6445_v61  ;;  %1231 = vmatprep.subr.bf16.mxu1 %v6446_v63  ;;  %v6453_v61 = vld [vmem:[#allocation49_spill] sm:$0xff]  ;;  %v6454_v63 = vld [vmem:[#allocation50_spill] sm:$0xff] }
 0x24b   :  { %v3699_v48 = vpop.eup %3698  ;;  %1191 = vmatpush1.bf16.msra.mxu0 %v6447_v4  ;;  %1232 = vmatpush1.bf16.msra.mxu1 %v6448_v59  ;;  %v6457_v59 = vld [vmem:[#allocation53_spill] sm:$0xff] }
 0x24c   :  { %1192 = vmatprep.subr.bf16.mxu0 %v6449_v52  ;;  %1233 = vmatprep.subr.bf16.mxu1 %v6450_v1  ;;  %v1091_v7 = vrot.slane %v3699_v48, 2  ;;  %v3701_v62 = vpop.eup %3700  ;;  %v6455_v52 = vld [vmem:[#allocation51_spill] sm:$0xff]  ;;  %v6456_v1 = vld [vmem:[#allocation52_spill] sm:$0xff] }
 0x24d   :  { %v1094_v6 = vmul.f32 %v3701_v62, %v3699_v48  ;;  %v6458_v62 = vld [vmem:[#allocation54_spill] sm:$0xff] }
 0x24e   :  { %v1093_v0 = vmul.f32 %v1091_v7, %v4583_v55  ;;  %v6459_v55 = vld [vmem:[#allocation55_spill] sm:$0xff]  ;;  %v6460_v7 = vld [vmem:[#allocation56_spill] sm:$0xff] }
 0x24f   :  { %1193 = vmatpush1.bf16.msra.mxu0 %v6451_v57  ;;  %1234 = vmatpush1.bf16.msra.mxu1 %v6452_v60  ;;  %v6461_v60 = vld [vmem:[#allocation57_spill] sm:$0xff] }
 0x250   :  { %1194 = vmatprep.subr.bf16.mxu0 %v6453_v61  ;;  %1235 = vmatprep.subr.bf16.mxu1 %v6454_v63  ;;  %v4710_v4 = vadd.f32 %v1094_v6, %v1093_v0  ;;  %v6462_v61 = vld [vmem:[#allocation58_spill] sm:$0xff]  ;;  %v6463_v6 = vld [vmem:[#allocation59_spill] sm:$0xff]  ;;  %v6464_v0 = vld [vmem:[#allocation60_spill] sm:$0xff] }
 0x252   :  { %3702 = vtanh.f32 %v4710_v4 }
 0x253   :  { %1195 = vmatpush1.bf16.msra.mxu0 %v6455_v52  ;;  %1236 = vmatpush1.bf16.msra.mxu1 %v6456_v1  ;;  %v4726_v1 = vld [vmem:[%s6070_s1 + $0xe4] ss:$16 sps:$4 sm:$0xff]  }
 0x254   :  { %1196 = vmatprep.subr.bf16.mxu0 %v6457_v59  ;;  %1237 = vmatprep.subr.bf16.mxu1 %v6458_v62  ;;  %6465 = vst [vmem:[#allocation12_spill] sm:$0xff] %v4726_v1 }
 0x257   :  { %1197 = vmatpush1.bf16.msra.mxu0 %v6459_v55  ;;  %1238 = vmatpush1.bf16.msra.mxu1 %v6460_v7  ;;  %v4732_v55 = vld [vmem:[%s6070_s1 + $0xec] ss:$16 sps:$4 sm:$0xff]  }
 0x258   :  { %1198 = vmatprep.subr.bf16.mxu0 %v6461_v60  ;;  %1239 = vmatprep.subr.bf16.mxu1 %v6462_v61  ;;  %v1097_v60 = vrot.slane %v3699_v48, 4  ;;  %v4764_v48 = vld [vmem:[%s6070_s1 + $0xc0] ss:$16 sps:$4 sm:$0xff]  }
 0x259   :  { %6468 = vst [vmem:[#allocation15_spill] sm:$0xff] %v4764_v48 }
 0x25b   :  { %1199 = vmatpush1.bf16.msra.mxu0 %v6463_v6  ;;  %1240 = vmatpush1.bf16.msra.mxu1 %v6464_v0  ;;  %v4738_v0 = vld [vmem:[%s6070_s1 + $0xe0] ss:$16 sps:$4 sm:$0xff]  }
 0x25c   :  { %1296 = vmatprep.subr.bf16.mxu0 %v4726_v1  ;;  %1337 = vmatprep.subr.bf16.mxu1 %v4732_v55  ;;  %v4744_v1 = vld [vmem:[%s6070_s1 + $0xe8] ss:$16 sps:$4 sm:$0xff]  }
 0x25f   :  { %v3703_v61 = vpop.eup %3702 }
 0x260   :  { %v1099_v7 = vmul.f32 %v3703_v61, %v1097_v60  ;;  %v4750_v60 = vld [vmem:[%s6070_s1 + $0xc4] ss:$16 sps:$4 sm:$0xff]   ;;  %v4756_v61 = vld [vmem:[%s6070_s1 + $0xcc] ss:$16 sps:$4 sm:$0xff]  }
 0x261   :  { %6466 = vst [vmem:[#allocation13_spill] sm:$0xff] %v4750_v60  ;;  %6467 = vst [vmem:[#allocation14_spill] sm:$0xff] %v4756_v61 }
 0x262   :  { %v1100_v6 = vpack.c.bf16 %v1099_v7, %v1099_v7  ;;  %v4770_v7 = vld [vmem:[%s6070_s1 + $0xc8] ss:$16 sps:$4 sm:$0xff]  }
 0x263   :  { %6469 = vst [vmem:[#allocation16_spill] sm:$0xff] %v4770_v7 }
 0x264   :  { %1217 = vmatmul.mubr.bf16.vlgmr.msra.gmra.mxu0 %v1100_v6  ;;  %1258 = vmatmul.mubr.bf16.vlgmr.msra.gmra.mxu1 %v1100_v6 }
 0x265   :  { %1297 = vmatpush1.bf16.msra.mxu0 %v4738_v0  ;;  %1338 = vmatpush1.bf16.msra.mxu1 %v4744_v1 }
 0x266   :  { %1298 = vmatprep.subr.bf16.mxu0 %v4750_v60  ;;  %1339 = vmatprep.subr.bf16.mxu1 %v4756_v61  ;;  %v4776_v61 = vld [vmem:[%s6070_s1 + $0xa4] ss:$16 sps:$4 sm:$0xff]   ;;  %v4782_v60 = vld [vmem:[%s6070_s1 + $0xac] ss:$16 sps:$4 sm:$0xff]  }
 0x267   :  { %1328 = vmatprep.mubr.bf16.mxu0 %v6378_v58  ;;  %1369 = vmatprep.mubr.bf16.mxu1 %v6378_v58  ;;  %6470 = vst [vmem:[#allocation61_spill] sm:$0xff] %v4776_v61  ;;  %6471 = vst [vmem:[#allocation31_spill] sm:$0xff] %v4782_v60 }
 0x269   :  { %1299 = vmatpush1.bf16.msra.mxu0 %v4764_v48  ;;  %1340 = vmatpush1.bf16.msra.mxu1 %v4770_v7  ;;  %v4788_v48 = vld [vmem:[%s6070_s1 + $0xa0] ss:$16 sps:$4 sm:$0xff]   ;;  %v4794_v7 = vld [vmem:[%s6070_s1 + $0xa8] ss:$16 sps:$4 sm:$0xff]  }
 0x26a   :  { %1300 = vmatprep.subr.bf16.mxu0 %v4776_v61  ;;  %1341 = vmatprep.subr.bf16.mxu1 %v4782_v60  ;;  %6472 = vst [vmem:[#allocation32_spill] sm:$0xff] %v4788_v48  ;;  %v4800_v61 = vld [vmem:[%s6070_s1 + $0x84] ss:$16 sps:$4 sm:$0xff]   ;;  %v4806_v60 = vld [vmem:[%s6070_s1 + $0x8c] ss:$16 sps:$4 sm:$0xff]  }
 0x26d   :  { %1301 = vmatpush1.bf16.msra.mxu0 %v4788_v48  ;;  %1342 = vmatpush1.bf16.msra.mxu1 %v4794_v7  ;;  %v4812_v48 = vld [vmem:[%s6070_s1 + $0x80] ss:$16 sps:$4 sm:$0xff]  }
 0x26e   :  { %1302 = vmatprep.subr.bf16.mxu0 %v4800_v61  ;;  %1343 = vmatprep.subr.bf16.mxu1 %v4806_v60 }
 0x271   :  { %1303 = vmatpush1.bf16.msra.mxu0 %v4812_v48  ;;  %1344 = vmatpush1.bf16.msra.mxu1 %v4269_v16  ;;  %v6473_v16 = vld [vmem:[#allocation17_spill] sm:$0xff] }
 0x272   :  { %1304 = vmatprep.subr.bf16.mxu0 %v4274_v17  ;;  %1345 = vmatprep.subr.bf16.mxu1 %v4281_v18  ;;  %v6474_v17 = vld [vmem:[#allocation18_spill] sm:$0xff]  ;;  %v6475_v18 = vld [vmem:[#allocation19_spill] sm:$0xff] }
 0x275   :  { %1305 = vmatpush1.bf16.msra.mxu0 %v4286_v19  ;;  %1346 = vmatpush1.bf16.msra.mxu1 %v4291_v20  ;;  %v6476_v19 = vld [vmem:[#allocation20_spill] sm:$0xff]  ;;  %v6477_v20 = vld [vmem:[#allocation21_spill] sm:$0xff] }
 0x276   :  { %1306 = vmatprep.subr.bf16.mxu0 %v4298_v21  ;;  %1347 = vmatprep.subr.bf16.mxu1 %v4305_v22  ;;  %v6478_v21 = vld [vmem:[#allocation22_spill] sm:$0xff]  ;;  %v6479_v22 = vld [vmem:[#allocation23_spill] sm:$0xff] }
 0x279   :  { %1307 = vmatpush1.bf16.msra.mxu0 %v4310_v23  ;;  %1348 = vmatpush1.bf16.msra.mxu1 %v4317_v24  ;;  %v6480_v23 = vld [vmem:[#allocation24_spill] sm:$0xff]  ;;  %v6481_v24 = vld [vmem:[#allocation25_spill] sm:$0xff] }
 0x27a   :  { %1308 = vmatprep.subr.bf16.mxu0 %v4322_v25  ;;  %1349 = vmatprep.subr.bf16.mxu1 %v4329_v26  ;;  %v6482_v25 = vld [vmem:[#allocation26_spill] sm:$0xff]  ;;  %v6483_v26 = vld [vmem:[#allocation27_spill] sm:$0xff] }
 0x27d   :  { %1309 = vmatpush1.bf16.msra.mxu0 %v4334_v27  ;;  %1350 = vmatpush1.bf16.msra.mxu1 %v4339_v28  ;;  %v6484_v27 = vld [vmem:[#allocation28_spill] sm:$0xff]  ;;  %v6485_v28 = vld [vmem:[#allocation29_spill] sm:$0xff] }
 0x27e   :  { %1310 = vmatprep.subr.bf16.mxu0 %v4344_v29  ;;  %1351 = vmatprep.subr.bf16.mxu1 %v4349_v30  ;;  %v6486_v29 = vld [vmem:[#allocation30_spill] sm:$0xff] }
 0x281   :  { %1311 = vmatpush1.bf16.msra.mxu0 %v4358_v31  ;;  %1352 = vmatpush1.bf16.msra.mxu1 %v4363_v32 }
 0x282   :  { %1423 = vmatprep.subr.bf16.mxu0 %v4365_v33  ;;  %1464 = vmatprep.subr.bf16.mxu1 %v4367_v34 }
 0x284   :  { %1329 = vmatmul.mubr.bf16.vlgmr.msra.gmra.mxu0 %v1100_v6  ;;  %1370 = vmatmul.mubr.bf16.vlgmr.msra.gmra.mxu1 %v1100_v6 }
 0x285   :  { %1424 = vmatpush1.bf16.msra.mxu0 %v4373_v35  ;;  %1465 = vmatpush1.bf16.msra.mxu1 %v4375_v36 }
 0x286   :  { %1425 = vmatprep.subr.bf16.mxu0 %v4387_v37  ;;  %1466 = vmatprep.subr.bf16.mxu1 %v4389_v38 }
 0x287   :  { %1455 = vmatprep.mubr.bf16.mxu0 %v6378_v58  ;;  %1496 = vmatprep.mubr.bf16.mxu1 %v6378_v58 }
 0x289   :  { %1426 = vmatpush1.bf16.msra.mxu0 %v4393_v39  ;;  %1467 = vmatpush1.bf16.msra.mxu1 %v4395_v40 }
 0x28a   :  { %1427 = vmatprep.subr.bf16.mxu0 %v4399_v41  ;;  %1468 = vmatprep.subr.bf16.mxu1 %v4401_v42 }
 0x28d   :  { %1428 = vmatpush1.bf16.msra.mxu0 %v4403_v43  ;;  %1469 = vmatpush1.bf16.msra.mxu1 %v4405_v44 }
 0x28e   :  { %1429 = vmatprep.subr.bf16.mxu0 %v4411_v45  ;;  %1470 = vmatprep.subr.bf16.mxu1 %v4413_v46 }
 0x291   :  { %1430 = vmatpush1.bf16.msra.mxu0 %v6413_v11  ;;  %1471 = vmatpush1.bf16.msra.mxu1 %v6414_v12 }
 0x292   :  { %1431 = vmatprep.subr.bf16.mxu0 %v6415_v13  ;;  %1472 = vmatprep.subr.bf16.mxu1 %v6416_v14 }
 0x295   :  { %1432 = vmatpush1.bf16.msra.mxu0 %v6417_v15  ;;  %1473 = vmatpush1.bf16.msra.mxu1 %v6418_v47 }
 0x296   :  { %1433 = vmatprep.subr.bf16.mxu0 %v6473_v16  ;;  %1474 = vmatprep.subr.bf16.mxu1 %v6474_v17 }
 0x299   :  { %1434 = vmatpush1.bf16.msra.mxu0 %v6475_v18  ;;  %1475 = vmatpush1.bf16.msra.mxu1 %v6476_v19  ;;  %v6487_v19 = vld [vmem:[#allocation11_spill] sm:$0xff] }
 0x29a   :  { %1435 = vmatprep.subr.bf16.mxu0 %v6477_v20  ;;  %1476 = vmatprep.subr.bf16.mxu1 %v6478_v21 }
 0x29d   :  { %1436 = vmatpush1.bf16.msra.mxu0 %v6479_v22  ;;  %1477 = vmatpush1.bf16.msra.mxu1 %v6480_v23 }
 0x29e   :  { %1437 = vmatprep.subr.bf16.mxu0 %v6481_v24  ;;  %1478 = vmatprep.subr.bf16.mxu1 %v6482_v25 }
 0x2a1   :  { %1438 = vmatpush1.bf16.msra.mxu0 %v6483_v26  ;;  %1479 = vmatpush1.bf16.msra.mxu1 %v6484_v27 }
 0x2a2   :  { %1505 = vmatprep.subr.bf16.mxu0 %v6485_v28  ;;  %1546 = vmatprep.subr.bf16.mxu1 %v6486_v29 }
 0x2fe   :  { %v1136_v30 = vpop.f32.mrf.mxu0  ;;  %v1177_v31 = vpop.f32.mrf.mxu1 }
 0x300   :  { %v1138_v32 = vpop.f32.mrf.mxu0  ;;  %v1179_v33 = vpop.f32.mrf.mxu1 }
 0x302   :  { %v1140_v34 = vpop.f32.mrf.mxu0  ;;  %v1181_v35 = vpop.f32.mrf.mxu1 }
 0x303   :  { %v6488_v35 = vld [vmem:[#allocation62_spill] sm:$0xff] }
 0x304   :  { %v1141_v36 = vpop.f32.mrf.mxu0  ;;  %v1182_v37 = vpop.f32.mrf.mxu1 }
 0x324   :  { %v1218_v38 = vpop.f32.mrf.mxu0  ;;  %v1259_v39 = vpop.f32.mrf.mxu1 }
 0x325   :  { %v1219_v40 = vadd.f32 %v1218_v38, %v1136_v30  ;;  %v1260_v47 = vadd.f32 %v1259_v39, %v1177_v31 }
 0x326   :  { %v1220_v41 = vpop.f32.mrf.mxu0  ;;  %v1261_v42 = vpop.f32.mrf.mxu1 }
 0x327   :  { %v1266_v43 = vadd.f32 %v1219_v40, %v4663_v9  ;;  %v1221_v44 = vadd.f32 %v1220_v41, %v1138_v32  ;;  %v1268_v6 = vadd.f32 %v1260_v47, %v4670_v3  ;;  %v1262_v16 = vadd.f32 %v1261_v42, %v1179_v33  ;;  %v3436_v40 = vld [vmem:[%s6069_s0 + $0x10] sm:$0xff] }
 0x328   :  { %v1222_v45 = vpop.f32.mrf.mxu0  ;;  %v1263_v46 = vpop.f32.mrf.mxu1 }
 0x329   :  { %v3433_v11 = vmul.f32 -1.442695, %v1266_v43  ;;  %v1267_v12 = vadd.f32 %v1221_v44, %v4665_v53  ;;  %v3435_v17 = vmul.f32 -1.442695, %v1268_v6  ;;  %v1269_v20 = vadd.f32 %v1262_v16, %v6487_v19 }
 0x32a   :  { %v1223_v13 = vpop.f32.mrf.mxu0  ;;  %v1264_v14 = vpop.f32.mrf.mxu1 }
 0x32b   :  { %3704 = vpow2.f32 %v3433_v11  ;;  %v3434_v15 = vmul.f32 -1.442695, %v1267_v12 }
 0x32d   :  { %3706 = vpow2.f32 %v3434_v15 }
 0x32e   :  { %3708 = vpow2.f32 %v3435_v17 }
 0x338   :  { %v3705_v18 = vpop.eup %3704 }
 0x339   :  { %v1279_v21 = vadd.f32 1.0, %v3705_v18  ;;  %v6493_v18 = vld [vmem:[#allocation43_spill] sm:$0xff] }
 0x33a   :  { %v3707_v22 = vpop.eup %3706 }
 0x33b   :  { %3710 = vrcp.f32 %v1279_v21  ;;  %v1280_v23 = vadd.f32 1.0, %v3707_v22  ;;  %v3709_v28 = vpop.eup %3708 }
 0x33c   :  { %3712 = vtanh.f32 %v1269_v20  ;;  %v1281_v39 = vadd.f32 1.0, %v3709_v28  ;;  %v6494_v20 = vld [vmem:[#allocation44_spill] sm:$0xff]  ;;  %v6503_v28 = vld [vmem:[#allocation58_spill] sm:$0xff] }
 0x33d   :  { %3714 = vrcp.f32 %v1280_v23  ;;  %v6497_v23 = vld [vmem:[#allocation48_spill] sm:$0xff] }
 0x33e   :  { %3716 = vrcp.f32 %v1281_v39  ;;  %v6513_v39 = vld [vmem:[#allocation32_spill] sm:$0xff] }
 0x344   :  { %v1330_v24 = vpop.f32.mrf.mxu0  ;;  %v1371_v25 = vpop.f32.mrf.mxu1 }
 0x346   :  { %v1332_v26 = vpop.f32.mrf.mxu0  ;;  %v1373_v27 = vpop.f32.mrf.mxu1 }
 0x347   :  { %v1382_v29 = vcombine.low %v1330_v24, %v1332_v26  ;;  %v1383_v30 = vcombine.low %v1371_v25, %v1373_v27  ;;  %v6498_v24 = vld [vmem:[#allocation49_spill] sm:$0xff]  ;;  %v6499_v26 = vld [vmem:[#allocation52_spill] sm:$0xff] }
 0x348   :  { %v3711_v31 = vpop.eup %3710  ;;  %v1334_v32 = vpop.f32.mrf.mxu0  ;;  %v6502_v27 = vld [vmem:[#allocation57_spill] sm:$0xff] }
 0x349   :  { %v1375_v33 = vpop.f32.mrf.mxu1  ;;  %v3713_v34 = vpop.eup %3712  ;;  %v1390_v36 = vrot.slane %v1382_v29, %v6488_v35  ;;  %v1397_v37 = vrot.slane %v1383_v30, %v6488_v35  ;;  %v6505_v29 = vld [vmem:[#allocation60_spill] sm:$0xff]  ;;  %v6507_v32 = vld [vmem:[#allocation13_spill] sm:$0xff] }
 0x34a   :  { %v3715_v38 = vpop.eup %3714  ;;  %v1335_v41 = vpop.f32.mrf.mxu0  ;;  %v1290_v44 = vmul.f32 %v3713_v34, %v3711_v31  ;;  %v6506_v30 = vld [vmem:[#allocation12_spill] sm:$0xff]  ;;  %v6508_v33 = vld [vmem:[#allocation14_spill] sm:$0xff]  ;;  %v6509_v34 = vld [vmem:[#allocation15_spill] sm:$0xff] }
 0x34b   :  { %v1376_v42 = vpop.f32.mrf.mxu1  ;;  %v1289_v43 = vmul.f32 %v3715_v38, %v4684_v2  ;;  %v1398_v45 = vcombine.low %v1390_v36, %v1397_v37  ;;  %v3717_v13 = vpop.eup %3716  ;;  %v6489_v2 = vld [vmem:[#allocation39_spill] sm:$0xff]  ;;  %v6510_v36 = vld [vmem:[#allocation16_spill] sm:$0xff]  ;;  %v6511_v37 = vld [vmem:[#allocation61_spill] sm:$0xff] }
 0x34c   :  { %v6512_v38 = vld [vmem:[#allocation31_spill] sm:$0xff]  ;;  %v4949_v42 = vld [vmem:[%s6070_s1 + $0x6c] ss:$16 sps:$4 sm:$0xff]  }
 0x34d   :  { %v4878_v46 = vadd.f32 %v1290_v44, %v1289_v43  ;;  %v1400_v11 = vadd.f32 %v3436_v40, %v1398_v45  ;;  %v4937_v40 = vld [vmem:[%s6070_s1 + $0x88] ss:$16 sps:$4 sm:$0xff]   ;;  %v4943_v41 = vld [vmem:[%s6070_s1 + $0x64] ss:$16 sps:$4 sm:$0xff]   ;;  %v4955_v43 = vld [vmem:[%s6070_s1 + $0x60] ss:$16 sps:$4 sm:$0xff]  }
 0x34e   :  { %v4961_v44 = vld [vmem:[%s6070_s1 + $0x68] ss:$16 sps:$4 sm:$0xff]   ;;  %v4967_v45 = vld [vmem:[%s6070_s1 + $0x44] ss:$16 sps:$4 sm:$0xff]  }
 0x34f   :  { %3718 = vtanh.f32 %v4878_v46  ;;  %v3437_v12 = vmul.f32 -1.442695, %v1400_v11  ;;  %v1408_v16 = vrot.slane %v1400_v11, 6  ;;  %v4973_v11 = vld [vmem:[%s6070_s1 + $0x4c] ss:$16 sps:$4 sm:$0xff]  }
 0x351   :  { %3720 = vpow2.f32 %v3437_v12  ;;  %v4979_v12 = vld [vmem:[%s6070_s1 + $0x40] ss:$16 sps:$4 sm:$0xff]  }
 0x35c   :  { %v3719_v14 = vpop.eup %3718 }
 0x35d   :  { %v1293_v15 = vmul.f32 %v3719_v14, %v3717_v13  ;;  %v4985_v13 = vld [vmem:[%s6070_s1 + $0x48] ss:$16 sps:$4 sm:$0xff]   ;;  %v4991_v14 = vld [vmem:[%s6070_s1 + $0x24] ss:$16 sps:$4 sm:$0xff]  }
 0x35e   :  { %v3721_v47 = vpop.eup %3720 }
 0x35f   :  { %v1404_v6 = vadd.f32 1.0, %v3721_v47  ;;  %v1422_v17 = vpack.c.bf16 %v1293_v15, %v1293_v15  ;;  %v4997_v15 = vld [vmem:[%s6070_s1 + $0x2c] ss:$16 sps:$4 sm:$0xff]   ;;  %v5003_v47 = vld [vmem:[%s6070_s1 + $0x20] ss:$16 sps:$4 sm:$0xff]  }
 0x361   :  { %3722 = vrcp.f32 %v1404_v6  ;;  %1456 = vmatmul.mubr.bf16.vlgmr.msra.gmra.mxu0 %v1422_v17  ;;  %1497 = vmatmul.mubr.bf16.vlgmr.msra.gmra.mxu1 %v1422_v17  ;;  %v5009_v6 = vld [vmem:[%s6070_s1 + $0x28] ss:$16 sps:$4 sm:$0xff]   ;;  %v5021_v17 = vld [vmem:[%s6070_s1 + $0xc] ss:$16 sps:$4 sm:$0xff]  }
 0x362   :  { %1506 = vmatpush1.bf16.msra.mxu0 %v6435_v49  ;;  %1547 = vmatpush1.bf16.msra.mxu1 %v6436_v8  ;;  %3724 = vtanh.f32 %v1408_v16  ;;  %v6490_v49 = vld [vmem:[#allocation40_spill] sm:$0xff]  ;;  %v6491_v8 = vld [vmem:[#allocation41_spill] sm:$0xff] }
 0x363   :  { %1507 = vmatprep.subr.bf16.mxu0 %v6437_v10  ;;  %1548 = vmatprep.subr.bf16.mxu1 %v6438_v5  ;;  %v6492_v10 = vld [vmem:[#allocation42_spill] sm:$0xff]  ;;  %v5015_v16 = vld [vmem:[%s6070_s1 + $0x4] ss:$16 sps:$4 sm:$0xff]  }
 0x364   :  { %1537 = vmatprep.mubr.bf16.mxu0 %v6378_v58  ;;  %1578 = vmatprep.mubr.bf16.mxu1 %v6378_v58 }
 0x366   :  { %1508 = vmatpush1.bf16.msra.mxu0 %v6439_v56  ;;  %1549 = vmatpush1.bf16.msra.mxu1 %v6440_v50  ;;  %v6495_v56 = vld [vmem:[#allocation45_spill] sm:$0xff]  ;;  %v6496_v50 = vld [vmem:[#allocation46_spill] sm:$0xff] }
 0x367   :  { %1509 = vmatprep.subr.bf16.mxu0 %v6441_v51  ;;  %1550 = vmatprep.subr.bf16.mxu1 %v6442_v54 }
 0x36a   :  { %1510 = vmatpush1.bf16.msra.mxu0 %v6489_v2  ;;  %1551 = vmatpush1.bf16.msra.mxu1 %v6490_v49  ;;  %v5027_v2 = vld [vmem:[%s6070_s1] ss:$16 sps:$4 sm:$0xff]   ;;  %v5033_v49 = vld [vmem:[%s6070_s1 + $0x8] ss:$16 sps:$4 sm:$0xff]  }
 0x36b   :  { %1511 = vmatprep.subr.bf16.mxu0 %v6491_v8  ;;  %1552 = vmatprep.subr.bf16.mxu1 %v6492_v10  ;;  %v5036_v8 = vld [vmem:[#allocation5 + $0xe4] ss:$16 sps:$4 sm:$0xff]   ;;  %v5039_v10 = vld [vmem:[#allocation5 + $0xec] ss:$16 sps:$4 sm:$0xff]  }
 0x36c   :  { %6514 = vst [vmem:[#allocation33_spill] sm:$0xff] %v5036_v8  ;;  %6515 = vst [vmem:[#allocation34_spill] sm:$0xff] %v5039_v10 }
 0x36e   :  { %v3723_v5 = vpop.eup %3722  ;;  %1512 = vmatpush1.bf16.msra.mxu0 %v6493_v18  ;;  %1553 = vmatpush1.bf16.msra.mxu1 %v6494_v20  ;;  %v5045_v18 = vld [vmem:[#allocation5 + $0xe8] ss:$16 sps:$4 sm:$0xff]   ;;  %v5048_v20 = vld [vmem:[#allocation5 + $0xc4] ss:$16 sps:$4 sm:$0xff]  }
 0x36f   :  { %1513 = vmatprep.subr.bf16.mxu0 %v6495_v56  ;;  %1554 = vmatprep.subr.bf16.mxu1 %v6496_v50  ;;  %v1412_v51 = vrot.slane %v3723_v5, 2  ;;  %v3725_v21 = vpop.eup %3724  ;;  %6517 = vst [vmem:[#allocation36_spill] sm:$0xff] %v5045_v18  ;;  %6518 = vst [vmem:[#allocation37_spill] sm:$0xff] %v5048_v20  ;;  %v5051_v56 = vld [vmem:[#allocation5 + $0xcc] ss:$16 sps:$4 sm:$0xff]  }
 0x370   :  { %v1415_v54 = vmul.f32 %v3725_v21, %v3723_v5  ;;  %6519 = vst [vmem:[#allocation38_spill] sm:$0xff] %v5051_v56  ;;  %v5056_v50 = vld [vmem:[#allocation5 + $0xc0] ss:$16 sps:$4 sm:$0xff]   ;;  %v5062_v21 = vld [vmem:[#allocation5 + $0xa4] ss:$16 sps:$4 sm:$0xff]  }
 0x371   :  { %v1414_v22 = vmul.f32 %v1412_v51, %v4710_v4  ;;  %v6500_v4 = vld [vmem:[#allocation55_spill] sm:$0xff]  ;;  %6520 = vst [vmem:[#allocation47_spill] sm:$0xff] %v5056_v50  ;;  %6522 = vst [vmem:[#allocation51_spill] sm:$0xff] %v5062_v21 }
 0x372   :  { %1514 = vmatpush1.bf16.msra.mxu0 %v6451_v57  ;;  %1555 = vmatpush1.bf16.msra.mxu1 %v6497_v23  ;;  %v6501_v57 = vld [vmem:[#allocation56_spill] sm:$0xff] }
 0x373   :  { %1515 = vmatprep.subr.bf16.mxu0 %v6498_v24  ;;  %1556 = vmatprep.subr.bf16.mxu1 %v6454_v63  ;;  %v4904_v25 = vadd.f32 %v1415_v54, %v1414_v22  ;;  %v6504_v63 = vld [vmem:[#allocation59_spill] sm:$0xff]  ;;  %v5065_v54 = vld [vmem:[#allocation5 + $0xac] ss:$16 sps:$4 sm:$0xff]  }
 0x374   :  { %v5059_v51 = vld [vmem:[#allocation5 + $0xc8] ss:$16 sps:$4 sm:$0xff]   ;;  %6523 = vst [vmem:[#allocation53_spill] sm:$0xff] %v5065_v54  ;;  %v5068_v22 = vld [vmem:[#allocation5 + $0xa0] ss:$16 sps:$4 sm:$0xff]  }
 0x375   :  { %3726 = vtanh.f32 %v4904_v25  ;;  %6521 = vst [vmem:[#allocation50_spill] sm:$0xff] %v5059_v51  ;;  %6524 = vst [vmem:[#allocation54_spill] sm:$0xff] %v5068_v22  ;;  %v5071_v23 = vld [vmem:[#allocation5 + $0xa8] ss:$16 sps:$4 sm:$0xff]   ;;  %v5074_v24 = vld [vmem:[#allocation5 + $0x84] ss:$16 sps:$4 sm:$0xff]  }
 0x376   :  { %1516 = vmatpush1.bf16.msra.mxu0 %v6455_v52  ;;  %1557 = vmatpush1.bf16.msra.mxu1 %v6499_v26  ;;  %v1418_v52 = vrot.slane %v3723_v5, 4  ;;  %v5042_v5 = vld [vmem:[#allocation5 + $0xe0] ss:$16 sps:$4 sm:$0xff]   ;;  %6525 = vst [vmem:[#allocation17_spill] sm:$0xff] %v5071_v23  ;;  %6526 = vst [vmem:[#allocation18_spill] sm:$0xff] %v5074_v24 }
 0x377   :  { %1517 = vmatprep.subr.bf16.mxu0 %v6457_v59  ;;  %1558 = vmatprep.subr.bf16.mxu1 %v6458_v62  ;;  %6516 = vst [vmem:[#allocation35_spill] sm:$0xff] %v5042_v5  ;;  %v5077_v26 = vld [vmem:[#allocation5 + $0x8c] ss:$16 sps:$4 sm:$0xff]  }
 0x378   :  { %6527 = vst [vmem:[#allocation19_spill] sm:$0xff] %v5077_v26 }
 0x37a   :  { %1518 = vmatpush1.bf16.msra.mxu0 %v6500_v4  ;;  %1559 = vmatpush1.bf16.msra.mxu1 %v6501_v57  ;;  %v5080_v4 = vld [vmem:[#allocation5 + $0x80] ss:$16 sps:$4 sm:$0xff]   ;;  %v5083_v57 = vld [vmem:[#allocation5 + $0x88] ss:$16 sps:$4 sm:$0xff]  }
 0x37b   :  { %1519 = vmatprep.subr.bf16.mxu0 %v6502_v27  ;;  %1560 = vmatprep.subr.bf16.mxu1 %v6503_v28  ;;  %6528 = vst [vmem:[#allocation20_spill] sm:$0xff] %v5080_v4  ;;  %6529 = vst [vmem:[#allocation21_spill] sm:$0xff] %v5083_v57  ;;  %v5086_v27 = vld [vmem:[#allocation5 + $0x64] ss:$16 sps:$4 sm:$0xff]   ;;  %v5089_v28 = vld [vmem:[#allocation5 + $0x6c] ss:$16 sps:$4 sm:$0xff]  }
 0x37c   :  { %6530 = vst [vmem:[#allocation22_spill] sm:$0xff] %v5086_v27  ;;  %6531 = vst [vmem:[#allocation23_spill] sm:$0xff] %v5089_v28 }
 0x37e   :  { %1520 = vmatpush1.bf16.msra.mxu0 %v6504_v63  ;;  %1561 = vmatpush1.bf16.msra.mxu1 %v6505_v29  ;;  %v5092_v63 = vld [vmem:[#allocation5 + $0x60] ss:$16 sps:$4 sm:$0xff]   ;;  %v5095_v29 = vld [vmem:[#allocation5 + $0x68] ss:$16 sps:$4 sm:$0xff]  }
 0x37f   :  { %1617 = vmatprep.subr.bf16.mxu0 %v6506_v30  ;;  %1658 = vmatprep.subr.bf16.mxu1 %v4732_v55  ;;  %6532 = vst [vmem:[#allocation24_spill] sm:$0xff] %v5092_v63  ;;  %6533 = vst [vmem:[#allocation25_spill] sm:$0xff] %v5095_v29 }
 0x382   :  { %v3727_v59 = vpop.eup %3726 }
 0x383   :  { %v1420_v31 = vmul.f32 %v3727_v59, %v1418_v52  ;;  %v5098_v52 = vld [vmem:[#allocation5 + $0x44] ss:$16 sps:$4 sm:$0xff]   ;;  %v5101_v59 = vld [vmem:[#allocation5 + $0x4c] ss:$16 sps:$4 sm:$0xff]  }
 0x384   :  { %6534 = vst [vmem:[#allocation26_spill] sm:$0xff] %v5098_v52  ;;  %6535 = vst [vmem:[#allocation27_spill] sm:$0xff] %v5101_v59 }
 0x385   :  { %v1421_v62 = vpack.c.bf16 %v1420_v31, %v1420_v31  ;;  %v5104_v31 = vld [vmem:[#allocation5 + $0x40] ss:$16 sps:$4 sm:$0xff]  }
 0x386   :  { %6536 = vst [vmem:[#allocation28_spill] sm:$0xff] %v5104_v31 }
 0x387   :  { %1538 = vmatmul.mubr.bf16.vlgmr.msra.gmra.mxu0 %v1421_v62  ;;  %1579 = vmatmul.mubr.bf16.vlgmr.msra.gmra.mxu1 %v1421_v62 }
 0x388   :  { %1618 = vmatpush1.bf16.msra.mxu0 %v4738_v0  ;;  %1659 = vmatpush1.bf16.msra.mxu1 %v4744_v1 }
 0x389   :  { %1619 = vmatprep.subr.bf16.mxu0 %v6507_v32  ;;  %1660 = vmatprep.subr.bf16.mxu1 %v6508_v33 }
 0x38a   :  { %1649 = vmatprep.mubr.bf16.mxu0 %v6378_v58  ;;  %1690 = vmatprep.mubr.bf16.mxu1 %v6378_v58 }
 0x38c   :  { %1620 = vmatpush1.bf16.msra.mxu0 %v6509_v34  ;;  %1661 = vmatpush1.bf16.msra.mxu1 %v6510_v36 }
 0x38d   :  { %1621 = vmatprep.subr.bf16.mxu0 %v6511_v37  ;;  %1662 = vmatprep.subr.bf16.mxu1 %v6512_v38 }
 0x390   :  { %1622 = vmatpush1.bf16.msra.mxu0 %v6513_v39  ;;  %1663 = vmatpush1.bf16.msra.mxu1 %v4794_v7 }
 0x391   :  { %1623 = vmatprep.subr.bf16.mxu0 %v4800_v61  ;;  %1664 = vmatprep.subr.bf16.mxu1 %v4806_v60 }
 0x394   :  { %1624 = vmatpush1.bf16.msra.mxu0 %v4812_v48  ;;  %1665 = vmatpush1.bf16.msra.mxu1 %v4937_v40 }
 0x395   :  { %1625 = vmatprep.subr.bf16.mxu0 %v4943_v41  ;;  %1666 = vmatprep.subr.bf16.mxu1 %v4949_v42 }
 0x398   :  { %1626 = vmatpush1.bf16.msra.mxu0 %v4955_v43  ;;  %1667 = vmatpush1.bf16.msra.mxu1 %v4961_v44 }
 0x399   :  { %1627 = vmatprep.subr.bf16.mxu0 %v4967_v45  ;;  %1668 = vmatprep.subr.bf16.mxu1 %v4973_v11 }
 0x39c   :  { %1628 = vmatpush1.bf16.msra.mxu0 %v4979_v12  ;;  %1669 = vmatpush1.bf16.msra.mxu1 %v4985_v13 }
 0x39d   :  { %1629 = vmatprep.subr.bf16.mxu0 %v4991_v14  ;;  %1670 = vmatprep.subr.bf16.mxu1 %v4997_v15 }
 0x3a0   :  { %1630 = vmatpush1.bf16.msra.mxu0 %v5003_v47  ;;  %1671 = vmatpush1.bf16.msra.mxu1 %v5009_v6 }
 0x3a1   :  { %1631 = vmatprep.subr.bf16.mxu0 %v5015_v16  ;;  %1672 = vmatprep.subr.bf16.mxu1 %v5021_v17 }
 0x3a4   :  { %1632 = vmatpush1.bf16.msra.mxu0 %v5027_v2  ;;  %1673 = vmatpush1.bf16.msra.mxu1 %v5033_v49 }
 0x3a5   :  { %1744 = vmatprep.subr.bf16.mxu0 %v5036_v8  ;;  %1785 = vmatprep.subr.bf16.mxu1 %v5039_v10 }
 0x3a7   :  { %1650 = vmatmul.mubr.bf16.vlgmr.msra.gmra.mxu0 %v1421_v62  ;;  %1691 = vmatmul.mubr.bf16.vlgmr.msra.gmra.mxu1 %v1421_v62  ;;  %v5107_v62 = vld [vmem:[#allocation5 + $0x48] ss:$16 sps:$4 sm:$0xff]  }
 0x3a8   :  { %1745 = vmatpush1.bf16.msra.mxu0 %v5042_v5  ;;  %1786 = vmatpush1.bf16.msra.mxu1 %v5045_v18  ;;  %6537 = vst [vmem:[#allocation29_spill] sm:$0xff] %v5107_v62 }
 0x3a9   :  { %1746 = vmatprep.subr.bf16.mxu0 %v5048_v20  ;;  %1787 = vmatprep.subr.bf16.mxu1 %v5051_v56 }
 0x3aa   :  { %1776 = vmatprep.mubr.bf16.mxu0 %v6378_v58  ;;  %1817 = vmatprep.mubr.bf16.mxu1 %v6378_v58 }
 0x3ac   :  { %1747 = vmatpush1.bf16.msra.mxu0 %v5056_v50  ;;  %1788 = vmatpush1.bf16.msra.mxu1 %v5059_v51 }
 0x3ad   :  { %1748 = vmatprep.subr.bf16.mxu0 %v5062_v21  ;;  %1789 = vmatprep.subr.bf16.mxu1 %v5065_v54 }
 0x3b0   :  { %1749 = vmatpush1.bf16.msra.mxu0 %v5068_v22  ;;  %1790 = vmatpush1.bf16.msra.mxu1 %v5071_v23 }
 0x3b1   :  { %1750 = vmatprep.subr.bf16.mxu0 %v5074_v24  ;;  %1791 = vmatprep.subr.bf16.mxu1 %v5077_v26 }
 0x3b4   :  { %1751 = vmatpush1.bf16.msra.mxu0 %v5080_v4  ;;  %1792 = vmatpush1.bf16.msra.mxu1 %v5083_v57 }
 0x3b5   :  { %1752 = vmatprep.subr.bf16.mxu0 %v5086_v27  ;;  %1793 = vmatprep.subr.bf16.mxu1 %v5089_v28 }
 0x3b8   :  { %1753 = vmatpush1.bf16.msra.mxu0 %v5092_v63  ;;  %1794 = vmatpush1.bf16.msra.mxu1 %v5095_v29  ;;  %v5110_v63 = vld [vmem:[#allocation5 + $0x24] ss:$16 sps:$4 sm:$0xff]   ;;  %v5113_v29 = vld [vmem:[#allocation5 + $0x2c] ss:$16 sps:$4 sm:$0xff]  }
 0x3b9   :  { %1754 = vmatprep.subr.bf16.mxu0 %v5098_v52  ;;  %1795 = vmatprep.subr.bf16.mxu1 %v5101_v59  ;;  %6538 = vst [vmem:[#allocation30_spill] sm:$0xff] %v5110_v63  ;;  %6539 = vst [vmem:[#allocation11_spill] sm:$0xff] %v5113_v29  ;;  %v5116_v52 = vld [vmem:[#allocation5 + $0x20] ss:$16 sps:$4 sm:$0xff]   ;;  %v5119_v59 = vld [vmem:[#allocation5 + $0x28] ss:$16 sps:$4 sm:$0xff]  }
 0x3ba   :  { %6540 = vst [vmem:[#allocation62_spill] sm:$0xff] %v5116_v52  ;;  %6541 = vst [vmem:[#allocation39_spill] sm:$0xff] %v5119_v59 }
 0x3bc   :  { %1755 = vmatpush1.bf16.msra.mxu0 %v5104_v31  ;;  %1796 = vmatpush1.bf16.msra.mxu1 %v5107_v62  ;;  %v5122_v31 = vld [vmem:[#allocation5 + $0x4] ss:$16 sps:$4 sm:$0xff]   ;;  %v5125_v62 = vld [vmem:[#allocation5 + $0xc] ss:$16 sps:$4 sm:$0xff]  }
 0x3bd   :  { %1756 = vmatprep.subr.bf16.mxu0 %v5110_v63  ;;  %1797 = vmatprep.subr.bf16.mxu1 %v5113_v29  ;;  %6542 = vst [vmem:[#allocation40_spill] sm:$0xff] %v5122_v31  ;;  %6543 = vst [vmem:[#allocation41_spill] sm:$0xff] %v5125_v62  ;;  %v5128_v63 = vld [vmem:[#allocation5] ss:$16 sps:$4 sm:$0xff]   ;;  %v5131_v29 = vld [vmem:[#allocation5 + $0x8] ss:$16 sps:$4 sm:$0xff]  }
 0x3be   :  { %6544 = vst [vmem:[#allocation42_spill] sm:$0xff] %v5128_v63  ;;  %6545 = vst [vmem:[#allocation43_spill] sm:$0xff] %v5131_v29 }
 0x3c0   :  { %1757 = vmatpush1.bf16.msra.mxu0 %v5116_v52  ;;  %1798 = vmatpush1.bf16.msra.mxu1 %v5119_v59  ;;  %v5134_v52 = vld [vmem:[#allocation2 + $0xe4] ss:$16 sps:$4 sm:$0xff]   ;;  %v5137_v59 = vld [vmem:[#allocation2 + $0xec] ss:$16 sps:$4 sm:$0xff]  }
 0x3c1   :  { %1758 = vmatprep.subr.bf16.mxu0 %v5122_v31  ;;  %1799 = vmatprep.subr.bf16.mxu1 %v5125_v62  ;;  %6546 = vst [vmem:[#allocation44_spill] sm:$0xff] %v5134_v52  ;;  %6547 = vst [vmem:[#allocation45_spill] sm:$0xff] %v5137_v59 }
 0x3c4   :  { %1759 = vmatpush1.bf16.msra.mxu0 %v5128_v63  ;;  %1800 = vmatpush1.bf16.msra.mxu1 %v5131_v29 }
 0x3c5   :  { %1826 = vmatprep.subr.bf16.mxu0 %v5134_v52  ;;  %1867 = vmatprep.subr.bf16.mxu1 %v5137_v59 }
 0x421   :  { %v1457_v31 = vpop.f32.mrf.mxu0  ;;  %v1498_v28 = vpop.f32.mrf.mxu1 }
 0x423   :  { %v1459_v27 = vpop.f32.mrf.mxu0  ;;  %v1500_v62 = vpop.f32.mrf.mxu1 }
 0x425   :  { %v1461_v57 = vpop.f32.mrf.mxu0  ;;  %v1502_v4 = vpop.f32.mrf.mxu1 }
 0x427   :  { %v1462_v26 = vpop.f32.mrf.mxu0  ;;  %v1503_v63 = vpop.f32.mrf.mxu1 }
 0x447   :  { %v1539_v24 = vpop.f32.mrf.mxu0  ;;  %v1580_v23 = vpop.f32.mrf.mxu1 }
 0x448   :  { %v1540_v22 = vadd.f32 %v1539_v24, %v1457_v31  ;;  %v1581_v26 = vadd.f32 %v1580_v23, %v1498_v28 }
 0x449   :  { %v1541_v29 = vpop.f32.mrf.mxu0  ;;  %v1582_v54 = vpop.f32.mrf.mxu1 }
 0x44a   :  { %v1587_v21 = vadd.f32 %v1540_v22, %v4663_v9  ;;  %v1542_v52 = vadd.f32 %v1541_v29, %v1459_v27  ;;  %v1589_v4 = vadd.f32 %v1581_v26, %v4670_v3  ;;  %v1583_v63 = vadd.f32 %v1582_v54, %v1500_v62 }
 0x44b   :  { %v1543_v51 = vpop.f32.mrf.mxu0  ;;  %v1584_v50 = vpop.f32.mrf.mxu1 }
 0x44c   :  { %v3438_v56 = vmul.f32 -1.442695, %v1587_v21  ;;  %v1588_v59 = vadd.f32 %v1542_v52, %v4665_v53  ;;  %v3440_v24 = vmul.f32 -1.442695, %v1589_v4  ;;  %v1590_v5 = vadd.f32 %v1583_v63, %v6487_v19 }
 0x44d   :  { %v1544_v20 = vpop.f32.mrf.mxu0  ;;  %v1585_v18 = vpop.f32.mrf.mxu1 }
 0x44e   :  { %3728 = vpow2.f32 %v3438_v56  ;;  %v3439_v57 = vmul.f32 -1.442695, %v1588_v59 }
 0x450   :  { %3730 = vpow2.f32 %v3439_v57 }
 0x451   :  { %3732 = vpow2.f32 %v3440_v24 }
 0x45b   :  { %v3729_v31 = vpop.eup %3728 }
 0x45c   :  { %v1600_v22 = vadd.f32 1.0, %v3729_v31 }
 0x45d   :  { %v3731_v27 = vpop.eup %3730 }
 0x45e   :  { %3734 = vrcp.f32 %v1600_v22  ;;  %v1601_v50 = vadd.f32 1.0, %v3731_v27  ;;  %v3733_v21 = vpop.eup %3732 }
 0x45f   :  { %3736 = vtanh.f32 %v1590_v5  ;;  %v1602_v4 = vadd.f32 1.0, %v3733_v21  ;;  %v3441_v5 = vld [vmem:[%s6069_s0 + $0x18] sm:$0xff] }
 0x460   :  { %3738 = vrcp.f32 %v1601_v50 }
 0x461   :  { %3740 = vrcp.f32 %v1602_v4  ;;  %v5173_v4 = vld [vmem:[#allocation2 + $0xa4] ss:$16 sps:$4 sm:$0xff]  }
 0x467   :  { %v1651_v20 = vpop.f32.mrf.mxu0  ;;  %v1692_v18 = vpop.f32.mrf.mxu1 }
 0x469   :  { %v1653_v56 = vpop.f32.mrf.mxu0  ;;  %v1694_v51 = vpop.f32.mrf.mxu1 }
 0x46a   :  { %v1703_v23 = vcombine.low %v1651_v20, %v1653_v56  ;;  %v1704_v28 = vcombine.low %v1692_v18, %v1694_v51 }
 0x46b   :  { %v3735_v29 = vpop.eup %3734  ;;  %v1655_v54 = vpop.f32.mrf.mxu0 }
 0x46c   :  { %v1696_v52 = vpop.f32.mrf.mxu1  ;;  %v3737_v59 = vpop.eup %3736  ;;  %v1711_v62 = vrot.slane %v1703_v23, %v6488_v35  ;;  %v1718_v57 = vrot.slane %v1704_v28, %v6488_v35 }
 0x46d   :  { %v3739_v26 = vpop.eup %3738  ;;  %v1656_v63 = vpop.f32.mrf.mxu0  ;;  %v1611_v22 = vmul.f32 %v3737_v59, %v3735_v29  ;;  %v5156_v29 = vld [vmem:[#allocation2 + $0xe8] ss:$16 sps:$4 sm:$0xff]   ;;  %v5159_v59 = vld [vmem:[#allocation2 + $0xc4] ss:$16 sps:$4 sm:$0xff]  }
 0x46e   :  { %v1697_v24 = vpop.f32.mrf.mxu1  ;;  %v1610_v31 = vmul.f32 %v3739_v26, %v4878_v46  ;;  %v1719_v27 = vcombine.low %v1711_v62, %v1718_v57  ;;  %v3741_v56 = vpop.eup %3740  ;;  %v5153_v46 = vld [vmem:[#allocation2 + $0xe0] ss:$16 sps:$4 sm:$0xff]   ;;  %v5162_v62 = vld [vmem:[#allocation2 + $0xcc] ss:$16 sps:$4 sm:$0xff]   ;;  %v5170_v26 = vld [vmem:[#allocation2 + $0xc8] ss:$16 sps:$4 sm:$0xff]  }
 0x46f   :  { %v5167_v57 = vld [vmem:[#allocation2 + $0xc0] ss:$16 sps:$4 sm:$0xff]   ;;  %v5182_v24 = vld [vmem:[#allocation2 + $0xa8] ss:$16 sps:$4 sm:$0xff]  }
 0x470   :  { %v5150_v50 = vadd.f32 %v1611_v22, %v1610_v31  ;;  %v1721_v20 = vadd.f32 %v3441_v5, %v1719_v27  ;;  %v5176_v5 = vld [vmem:[#allocation2 + $0xac] ss:$16 sps:$4 sm:$0xff]   ;;  %v5179_v63 = vld [vmem:[#allocation2 + $0xa0] ss:$16 sps:$4 sm:$0xff]   ;;  %v5185_v31 = vld [vmem:[#allocation2 + $0x84] ss:$16 sps:$4 sm:$0xff]  }
 0x471   :  { %v5188_v22 = vld [vmem:[#allocation2 + $0x8c] ss:$16 sps:$4 sm:$0xff]  }
 0x472   :  { %3742 = vtanh.f32 %v5150_v50  ;;  %v3442_v18 = vmul.f32 -1.442695, %v1721_v20  ;;  %v1729_v54 = vrot.slane %v1721_v20, 6  ;;  %v5191_v20 = vld [vmem:[#allocation2 + $0x80] ss:$16 sps:$4 sm:$0xff]  }
 0x473   :  { %6548 = vst [vmem:[#allocation46_spill] sm:$0xff] %v5191_v20 }
 0x474   :  { %3744 = vpow2.f32 %v3442_v18  ;;  %v5194_v18 = vld [vmem:[#allocation2 + $0x88] ss:$16 sps:$4 sm:$0xff]  }
 0x475   :  { %6549 = vst [vmem:[#allocation48_spill] sm:$0xff] %v5194_v18 }
 0x47f   :  { %v3743_v51 = vpop.eup %3742 }
 0x480   :  { %v1614_v21 = vmul.f32 %v3743_v51, %v3741_v56  ;;  %v5197_v56 = vld [vmem:[#allocation2 + $0x64] ss:$16 sps:$4 sm:$0xff]   ;;  %v5200_v51 = vld [vmem:[#allocation2 + $0x6c] ss:$16 sps:$4 sm:$0xff]  }
 0x481   :  { %v3745_v23 = vpop.eup %3744  ;;  %6550 = vst [vmem:[#allocation49_spill] sm:$0xff] %v5197_v56  ;;  %6551 = vst [vmem:[#allocation52_spill] sm:$0xff] %v5200_v51 }
 0x482   :  { %v1725_v28 = vadd.f32 1.0, %v3745_v23  ;;  %v1743_v52 = vpack.c.bf16 %v1614_v21, %v1614_v21 }
 0x484   :  { %3746 = vrcp.f32 %v1725_v28  ;;  %1777 = vmatmul.mubr.bf16.vlgmr.msra.gmra.mxu0 %v1743_v52  ;;  %1818 = vmatmul.mubr.bf16.vlgmr.msra.gmra.mxu1 %v1743_v52  ;;  %v5204_v52 = vld [vmem:[#allocation2 + $0x60] ss:$16 sps:$4 sm:$0xff]  }
 0x485   :  { %1827 = vmatpush1.bf16.msra.mxu0 %v5153_v46  ;;  %1868 = vmatpush1.bf16.msra.mxu1 %v5156_v29  ;;  %3748 = vtanh.f32 %v1729_v54 }
 0x486   :  { %1828 = vmatprep.subr.bf16.mxu0 %v5159_v59  ;;  %1869 = vmatprep.subr.bf16.mxu1 %v5162_v62 }
 0x487   :  { %1858 = vmatprep.mubr.bf16.mxu0 %v6378_v58  ;;  %1899 = vmatprep.mubr.bf16.mxu1 %v6378_v58 }
 0x489   :  { %1829 = vmatpush1.bf16.msra.mxu0 %v5167_v57  ;;  %1870 = vmatpush1.bf16.msra.mxu1 %v5170_v26 }
 0x48a   :  { %1830 = vmatprep.subr.bf16.mxu0 %v5173_v4  ;;  %1871 = vmatprep.subr.bf16.mxu1 %v5176_v5 }
 0x48d   :  { %1831 = vmatpush1.bf16.msra.mxu0 %v5179_v63  ;;  %1872 = vmatpush1.bf16.msra.mxu1 %v5182_v24 }
 0x48e   :  { %1832 = vmatprep.subr.bf16.mxu0 %v5185_v31  ;;  %1873 = vmatprep.subr.bf16.mxu1 %v5188_v22 }
 0x491   :  { %v3747_v27 = vpop.eup %3746  ;;  %1833 = vmatpush1.bf16.msra.mxu0 %v5191_v20  ;;  %1874 = vmatpush1.bf16.msra.mxu1 %v5194_v18  ;;  %v5207_v20 = vld [vmem:[#allocation2 + $0x68] ss:$16 sps:$4 sm:$0xff]   ;;  %v5210_v18 = vld [vmem:[#allocation2 + $0x44] ss:$16 sps:$4 sm:$0xff]  }
 0x492   :  { %1834 = vmatprep.subr.bf16.mxu0 %v5197_v56  ;;  %1875 = vmatprep.subr.bf16.mxu1 %v5200_v51  ;;  %v1733_v21 = vrot.slane %v3747_v27, 2  ;;  %v3749_v23 = vpop.eup %3748  ;;  %6552 = vst [vmem:[#allocation55_spill] sm:$0xff] %v5210_v18  ;;  %v5213_v56 = vld [vmem:[#allocation2 + $0x4c] ss:$16 sps:$4 sm:$0xff]  }
 0x493   :  { %v1736_v28 = vmul.f32 %v3749_v23, %v3747_v27  ;;  %6553 = vst [vmem:[#allocation56_spill] sm:$0xff] %v5213_v56  ;;  %v5225_v23 = vld [vmem:[#allocation2 + $0x24] ss:$16 sps:$4 sm:$0xff]  }
 0x494   :  { %v1735_v54 = vmul.f32 %v1733_v21, %v4904_v25  ;;  %v5219_v25 = vld [vmem:[#allocation2 + $0x40] ss:$16 sps:$4 sm:$0xff]   ;;  %v5222_v21 = vld [vmem:[#allocation2 + $0x48] ss:$16 sps:$4 sm:$0xff]   ;;  %6556 = vst [vmem:[#allocation59_spill] sm:$0xff] %v5225_v23 }
 0x495   :  { %1835 = vmatpush1.bf16.msra.mxu0 %v5204_v52  ;;  %1876 = vmatpush1.bf16.msra.mxu1 %v5207_v20  ;;  %6554 = vst [vmem:[#allocation57_spill] sm:$0xff] %v5219_v25  ;;  %6555 = vst [vmem:[#allocation58_spill] sm:$0xff] %v5222_v21 }
 0x496   :  { %1836 = vmatprep.subr.bf16.mxu0 %v5210_v18  ;;  %1877 = vmatprep.subr.bf16.mxu1 %v5213_v56  ;;  %v5216_v51 = vadd.f32 %v1736_v28, %v1735_v54  ;;  %v5228_v18 = vld [vmem:[#allocation2 + $0x2c] ss:$16 sps:$4 sm:$0xff]   ;;  %v5231_v28 = vld [vmem:[#allocation2 + $0x20] ss:$16 sps:$4 sm:$0xff]   ;;  %v5234_v54 = vld [vmem:[#allocation2 + $0x28] ss:$16 sps:$4 sm:$0xff]  }
 0x497   :  { %6557 = vst [vmem:[#allocation60_spill] sm:$0xff] %v5228_v18  ;;  %6558 = vst [vmem:[#allocation12_spill] sm:$0xff] %v5231_v28 }
 0x498   :  { %3750 = vtanh.f32 %v5216_v51  ;;  %6559 = vst [vmem:[#allocation13_spill] sm:$0xff] %v5234_v54 }
 0x499   :  { %1837 = vmatpush1.bf16.msra.mxu0 %v5219_v25  ;;  %1878 = vmatpush1.bf16.msra.mxu1 %v5222_v21  ;;  %v5237_v25 = vld [vmem:[#allocation2 + $0x4] ss:$16 sps:$4 sm:$0xff]   ;;  %v5240_v21 = vld [vmem:[#allocation2 + $0xc] ss:$16 sps:$4 sm:$0xff]  }
 0x49a   :  { %1838 = vmatprep.subr.bf16.mxu0 %v5225_v23  ;;  %1879 = vmatprep.subr.bf16.mxu1 %v5228_v18  ;;  %6560 = vst [vmem:[#allocation14_spill] sm:$0xff] %v5237_v25  ;;  %v5243_v23 = vld [vmem:[#allocation2] ss:$16 sps:$4 sm:$0xff]   ;;  %v5246_v18 = vld [vmem:[#allocation2 + $0x8] ss:$16 sps:$4 sm:$0xff]  }
 0x49d   :  { %1839 = vmatpush1.bf16.msra.mxu0 %v5231_v28  ;;  %1880 = vmatpush1.bf16.msra.mxu1 %v5234_v54  ;;  %v1739_v54 = vrot.slane %v3747_v27, 4  ;;  %v6576_v27 = vld [vmem:[#allocation23_spill] sm:$0xff] }
 0x49e   :  { %1840 = vmatprep.subr.bf16.mxu0 %v5237_v25  ;;  %1881 = vmatprep.subr.bf16.mxu1 %v5240_v21 }
 0x4a1   :  { %1841 = vmatpush1.bf16.msra.mxu0 %v5243_v23  ;;  %1882 = vmatpush1.bf16.msra.mxu1 %v5246_v18 }
 0x4a2   :  { %1938 = vmatprep.subr.bf16.mxu0 %v6506_v30  ;;  %1979 = vmatprep.subr.bf16.mxu1 %v4732_v55  ;;  %v6562_v55 = vld [vmem:[#allocation36_spill] sm:$0xff]  ;;  %v6568_v30 = vld [vmem:[#allocation53_spill] sm:$0xff] }
 0x4a5   :  { %v3751_v28 = vpop.eup %3750 }
 0x4a6   :  { %v1741_v56 = vmul.f32 %v3751_v28, %v1739_v54  ;;  %v6579_v28 = vld [vmem:[#allocation26_spill] sm:$0xff]  ;;  %v6580_v54 = vld [vmem:[#allocation27_spill] sm:$0xff] }
 0x4a8   :  { %v1742_v25 = vpack.c.bf16 %v1741_v56, %v1741_v56  ;;  %v6577_v56 = vld [vmem:[#allocation24_spill] sm:$0xff] }
 0x4aa   :  { %1859 = vmatmul.mubr.bf16.vlgmr.msra.gmra.mxu0 %v1742_v25  ;;  %1900 = vmatmul.mubr.bf16.vlgmr.msra.gmra.mxu1 %v1742_v25 }
 0x4ab   :  { %1939 = vmatpush1.bf16.msra.mxu0 %v4738_v0  ;;  %1980 = vmatpush1.bf16.msra.mxu1 %v4744_v1  ;;  %v6561_v1 = vld [vmem:[#allocation35_spill] sm:$0xff]  ;;  %v6563_v0 = vld [vmem:[#allocation37_spill] sm:$0xff] }
 0x4ac   :  { %1940 = vmatprep.subr.bf16.mxu0 %v6507_v32  ;;  %1981 = vmatprep.subr.bf16.mxu1 %v6508_v33  ;;  %v6569_v32 = vld [vmem:[#allocation54_spill] sm:$0xff]  ;;  %v6570_v33 = vld [vmem:[#allocation17_spill] sm:$0xff] }
 0x4ad   :  { %1970 = vmatprep.mubr.bf16.mxu0 %v6378_v58  ;;  %2011 = vmatprep.mubr.bf16.mxu1 %v6378_v58 }
 0x4af   :  { %1941 = vmatpush1.bf16.msra.mxu0 %v6509_v34  ;;  %1982 = vmatpush1.bf16.msra.mxu1 %v6510_v36  ;;  %v6571_v34 = vld [vmem:[#allocation18_spill] sm:$0xff]  ;;  %v6572_v36 = vld [vmem:[#allocation19_spill] sm:$0xff] }
 0x4b0   :  { %1942 = vmatprep.subr.bf16.mxu0 %v6511_v37  ;;  %1983 = vmatprep.subr.bf16.mxu1 %v6512_v38  ;;  %v6573_v37 = vld [vmem:[#allocation20_spill] sm:$0xff]  ;;  %v6574_v38 = vld [vmem:[#allocation21_spill] sm:$0xff] }
 0x4b3   :  { %1943 = vmatpush1.bf16.msra.mxu0 %v6513_v39  ;;  %1984 = vmatpush1.bf16.msra.mxu1 %v4794_v7  ;;  %v6567_v7 = vld [vmem:[#allocation51_spill] sm:$0xff]  ;;  %v6575_v39 = vld [vmem:[#allocation22_spill] sm:$0xff] }
 0x4b4   :  { %1944 = vmatprep.subr.bf16.mxu0 %v4800_v61  ;;  %1985 = vmatprep.subr.bf16.mxu1 %v4806_v60  ;;  %v6564_v60 = vld [vmem:[#allocation38_spill] sm:$0xff]  ;;  %v6565_v61 = vld [vmem:[#allocation47_spill] sm:$0xff] }
 0x4b7   :  { %1945 = vmatpush1.bf16.msra.mxu0 %v4812_v48  ;;  %1986 = vmatpush1.bf16.msra.mxu1 %v4937_v40  ;;  %v6566_v48 = vld [vmem:[#allocation50_spill] sm:$0xff] }
 0x4b8   :  { %1946 = vmatprep.subr.bf16.mxu0 %v4943_v41  ;;  %1987 = vmatprep.subr.bf16.mxu1 %v4949_v42 }
 0x4bb   :  { %1947 = vmatpush1.bf16.msra.mxu0 %v4955_v43  ;;  %1988 = vmatpush1.bf16.msra.mxu1 %v4961_v44 }
 0x4bc   :  { %1948 = vmatprep.subr.bf16.mxu0 %v4967_v45  ;;  %1989 = vmatprep.subr.bf16.mxu1 %v4973_v11 }
 0x4bf   :  { %1949 = vmatpush1.bf16.msra.mxu0 %v4979_v12  ;;  %1990 = vmatpush1.bf16.msra.mxu1 %v4985_v13 }
 0x4c0   :  { %1950 = vmatprep.subr.bf16.mxu0 %v4991_v14  ;;  %1991 = vmatprep.subr.bf16.mxu1 %v4997_v15 }
 0x4c3   :  { %1951 = vmatpush1.bf16.msra.mxu0 %v5003_v47  ;;  %1992 = vmatpush1.bf16.msra.mxu1 %v5009_v6 }
 0x4c4   :  { %1952 = vmatprep.subr.bf16.mxu0 %v5015_v16  ;;  %1993 = vmatprep.subr.bf16.mxu1 %v5021_v17 }
 0x4c7   :  { %1953 = vmatpush1.bf16.msra.mxu0 %v5027_v2  ;;  %1994 = vmatpush1.bf16.msra.mxu1 %v5033_v49 }
 0x4c8   :  { %2065 = vmatprep.subr.bf16.mxu0 %v5036_v8  ;;  %2106 = vmatprep.subr.bf16.mxu1 %v5039_v10 }
 0x4ca   :  { %1971 = vmatmul.mubr.bf16.vlgmr.msra.gmra.mxu0 %v1742_v25  ;;  %2012 = vmatmul.mubr.bf16.vlgmr.msra.gmra.mxu1 %v1742_v25  ;;  %v6578_v25 = vld [vmem:[#allocation25_spill] sm:$0xff] }
 0x4cb   :  { %2066 = vmatpush1.bf16.msra.mxu0 %v6561_v1  ;;  %2107 = vmatpush1.bf16.msra.mxu1 %v6562_v55 }
 0x4cc   :  { %2067 = vmatprep.subr.bf16.mxu0 %v6563_v0  ;;  %2108 = vmatprep.subr.bf16.mxu1 %v6564_v60 }
 0x4cd   :  { %2097 = vmatprep.mubr.bf16.mxu0 %v6378_v58  ;;  %2138 = vmatprep.mubr.bf16.mxu1 %v6378_v58 }
 0x4cf   :  { %2068 = vmatpush1.bf16.msra.mxu0 %v6565_v61  ;;  %2109 = vmatpush1.bf16.msra.mxu1 %v6566_v48 }
 0x4d0   :  { %2069 = vmatprep.subr.bf16.mxu0 %v6567_v7  ;;  %2110 = vmatprep.subr.bf16.mxu1 %v6568_v30 }
 0x4d3   :  { %2070 = vmatpush1.bf16.msra.mxu0 %v6569_v32  ;;  %2111 = vmatpush1.bf16.msra.mxu1 %v6570_v33  ;;  %v6581_v33 = vld [vmem:[#allocation28_spill] sm:$0xff] }
 0x4d4   :  { %2071 = vmatprep.subr.bf16.mxu0 %v6571_v34  ;;  %2112 = vmatprep.subr.bf16.mxu1 %v6572_v36  ;;  %v6582_v34 = vld [vmem:[#allocation29_spill] sm:$0xff]  ;;  %v6583_v36 = vld [vmem:[#allocation30_spill] sm:$0xff] }
 0x4d7   :  { %2072 = vmatpush1.bf16.msra.mxu0 %v6573_v37  ;;  %2113 = vmatpush1.bf16.msra.mxu1 %v6574_v38  ;;  %v6584_v37 = vld [vmem:[#allocation11_spill] sm:$0xff]  ;;  %v6585_v38 = vld [vmem:[#allocation62_spill] sm:$0xff] }
 0x4d8   :  { %2073 = vmatprep.subr.bf16.mxu0 %v6575_v39  ;;  %2114 = vmatprep.subr.bf16.mxu1 %v6576_v27  ;;  %v6586_v39 = vld [vmem:[#allocation39_spill] sm:$0xff]  ;;  %v6587_v27 = vld [vmem:[#allocation40_spill] sm:$0xff] }
 0x4db   :  { %2074 = vmatpush1.bf16.msra.mxu0 %v6577_v56  ;;  %2115 = vmatpush1.bf16.msra.mxu1 %v6578_v25  ;;  %v6588_v56 = vld [vmem:[#allocation41_spill] sm:$0xff]  ;;  %v6589_v25 = vld [vmem:[#allocation42_spill] sm:$0xff] }
 0x4dc   :  { %2075 = vmatprep.subr.bf16.mxu0 %v6579_v28  ;;  %2116 = vmatprep.subr.bf16.mxu1 %v6580_v54  ;;  %v6590_v28 = vld [vmem:[#allocation43_spill] sm:$0xff]  ;;  %v6591_v54 = vld [vmem:[#allocation44_spill] sm:$0xff] }
 0x4df   :  { %2076 = vmatpush1.bf16.msra.mxu0 %v6581_v33  ;;  %2117 = vmatpush1.bf16.msra.mxu1 %v6582_v34  ;;  %v6592_v33 = vld [vmem:[#allocation45_spill] sm:$0xff] }
 0x4e0   :  { %2077 = vmatprep.subr.bf16.mxu0 %v6583_v36  ;;  %2118 = vmatprep.subr.bf16.mxu1 %v6584_v37 }
 0x4e3   :  { %2078 = vmatpush1.bf16.msra.mxu0 %v6585_v38  ;;  %2119 = vmatpush1.bf16.msra.mxu1 %v6586_v39 }
 0x4e4   :  { %2079 = vmatprep.subr.bf16.mxu0 %v6587_v27  ;;  %2120 = vmatprep.subr.bf16.mxu1 %v6588_v56 }
 0x4e7   :  { %2080 = vmatpush1.bf16.msra.mxu0 %v6589_v25  ;;  %2121 = vmatpush1.bf16.msra.mxu1 %v6590_v28 }
 0x4e8   :  { %2147 = vmatprep.subr.bf16.mxu0 %v6591_v54  ;;  %2188 = vmatprep.subr.bf16.mxu1 %v6592_v33 }
 0x544   :  { %v1778_v34 = vpop.f32.mrf.mxu0  ;;  %v1819_v36 = vpop.f32.mrf.mxu1 }
 0x546   :  { %v1780_v32 = vpop.f32.mrf.mxu0  ;;  %v1821_v37 = vpop.f32.mrf.mxu1 }
 0x548   :  { %v1782_v30 = vpop.f32.mrf.mxu0  ;;  %v1823_v38 = vpop.f32.mrf.mxu1 }
 0x54a   :  { %v1783_v7 = vpop.f32.mrf.mxu0  ;;  %v1824_v39 = vpop.f32.mrf.mxu1 }
 0x56a   :  { %v1860_v48 = vpop.f32.mrf.mxu0  ;;  %v1901_v27 = vpop.f32.mrf.mxu1 }
 0x56b   :  { %v1861_v61 = vadd.f32 %v1860_v48, %v1778_v34  ;;  %v1902_v7 = vadd.f32 %v1901_v27, %v1819_v36 }
 0x56c   :  { %v1862_v56 = vpop.f32.mrf.mxu0  ;;  %v1903_v60 = vpop.f32.mrf.mxu1 }
 0x56d   :  { %v1908_v25 = vadd.f32 %v1861_v61, %v4663_v9  ;;  %v1863_v28 = vadd.f32 %v1862_v56, %v1780_v32  ;;  %v1910_v38 = vadd.f32 %v1902_v7, %v4670_v3  ;;  %v1904_v39 = vadd.f32 %v1903_v60, %v1821_v37 }
 0x56e   :  { %v1864_v0 = vpop.f32.mrf.mxu0  ;;  %v1905_v54 = vpop.f32.mrf.mxu1 }
 0x56f   :  { %v3443_v55 = vmul.f32 -1.442695, %v1908_v25  ;;  %v1909_v33 = vadd.f32 %v1863_v28, %v4665_v53  ;;  %v3445_v48 = vmul.f32 -1.442695, %v1910_v38  ;;  %v1911_v8 = vadd.f32 %v1904_v39, %v6487_v19 }
 0x570   :  { %v1865_v1 = vpop.f32.mrf.mxu0  ;;  %v1906_v10 = vpop.f32.mrf.mxu1 }
 0x571   :  { %3752 = vpow2.f32 %v3443_v55  ;;  %v3444_v30 = vmul.f32 -1.442695, %v1909_v33 }
 0x573   :  { %3754 = vpow2.f32 %v3444_v30 }
 0x574   :  { %3756 = vpow2.f32 %v3445_v48 }
 0x57e   :  { %v3753_v34 = vpop.eup %3752 }
 0x57f   :  { %v1921_v61 = vadd.f32 1.0, %v3753_v34 }
 0x580   :  { %v3755_v32 = vpop.eup %3754 }
 0x581   :  { %3758 = vrcp.f32 %v1921_v61  ;;  %v1922_v0 = vadd.f32 1.0, %v3755_v32  ;;  %v3757_v56 = vpop.eup %3756 }
 0x582   :  { %3760 = vtanh.f32 %v1911_v8  ;;  %v1923_v38 = vadd.f32 1.0, %v3757_v56  ;;  %v3446_v8 = vld [vmem:[%s6069_s0 + $0x20] sm:$0xff] }
 0x583   :  { %3762 = vrcp.f32 %v1922_v0 }
 0x584   :  { %3764 = vrcp.f32 %v1923_v38 }
 0x58a   :  { %v1972_v1 = vpop.f32.mrf.mxu0  ;;  %v2013_v10 = vpop.f32.mrf.mxu1 }
 0x58c   :  { %v1974_v55 = vpop.f32.mrf.mxu0  ;;  %v2015_v33 = vpop.f32.mrf.mxu1 }
 0x58d   :  { %v2024_v36 = vcombine.low %v1972_v1, %v1974_v55  ;;  %v2025_v27 = vcombine.low %v2013_v10, %v2015_v33 }
 0x58e   :  { %v3759_v25 = vpop.eup %3758  ;;  %v1976_v60 = vpop.f32.mrf.mxu0 }
 0x58f   :  { %v2017_v37 = vpop.f32.mrf.mxu1  ;;  %v3761_v28 = vpop.eup %3760  ;;  %v2032_v54 = vrot.slane %v2024_v36, %v6488_v35  ;;  %v2039_v30 = vrot.slane %v2025_v27, %v6488_v35 }
 0x590   :  { %v3763_v7 = vpop.eup %3762  ;;  %v1977_v39 = vpop.f32.mrf.mxu0  ;;  %v1932_v61 = vmul.f32 %v3761_v28, %v3759_v25  ;;  %v6593_v25 = vld [vmem:[#allocation46_spill] sm:$0xff]  ;;  %v6594_v28 = vld [vmem:[#allocation48_spill] sm:$0xff] }
 0x591   :  { %v2018_v48 = vpop.f32.mrf.mxu1  ;;  %v1931_v34 = vmul.f32 %v3763_v7, %v5150_v50  ;;  %v2040_v32 = vcombine.low %v2032_v54, %v2039_v30  ;;  %v3765_v55 = vpop.eup %3764  ;;  %v6595_v54 = vld [vmem:[#allocation49_spill] sm:$0xff]  ;;  %v6596_v30 = vld [vmem:[#allocation52_spill] sm:$0xff] }
 0x592   :  { %v6597_v48 = vld [vmem:[#allocation55_spill] sm:$0xff] }
 0x593   :  { %v5329_v0 = vadd.f32 %v1932_v61, %v1931_v34  ;;  %v2042_v1 = vadd.f32 %v3446_v8, %v2040_v32  ;;  %v6598_v34 = vld [vmem:[#allocation56_spill] sm:$0xff]  ;;  %v6599_v32 = vld [vmem:[#allocation57_spill] sm:$0xff] }
 0x595   :  { %3766 = vtanh.f32 %v5329_v0  ;;  %v3447_v10 = vmul.f32 -1.442695, %v2042_v1  ;;  %v2050_v60 = vrot.slane %v2042_v1, 6  ;;  %v6600_v1 = vld [vmem:[#allocation58_spill] sm:$0xff] }
 0x597   :  { %3768 = vpow2.f32 %v3447_v10  ;;  %v6601_v10 = vld [vmem:[#allocation59_spill] sm:$0xff] }
 0x5a2   :  { %v3767_v33 = vpop.eup %3766 }
 0x5a3   :  { %v1935_v56 = vmul.f32 %v3767_v33, %v3765_v55  ;;  %v6602_v55 = vld [vmem:[#allocation60_spill] sm:$0xff]  ;;  %v6604_v33 = vld [vmem:[#allocation13_spill] sm:$0xff] }
 0x5a4   :  { %v3769_v36 = vpop.eup %3768 }
 0x5a5   :  { %v2046_v27 = vadd.f32 1.0, %v3769_v36  ;;  %v2064_v37 = vpack.c.bf16 %v1935_v56, %v1935_v56  ;;  %v6605_v56 = vld [vmem:[#allocation14_spill] sm:$0xff]  ;;  %v5371_v36 = vld [vmem:[%s6070_s1 + $0xe4] ss:$16 sps:$4 sm:$0xff]  }
 0x5a7   :  { %3770 = vrcp.f32 %v2046_v27  ;;  %2098 = vmatmul.mubr.bf16.vlgmr.msra.gmra.mxu0 %v2064_v37  ;;  %2139 = vmatmul.mubr.bf16.vlgmr.msra.gmra.mxu1 %v2064_v37  ;;  %v5377_v27 = vld [vmem:[%s6070_s1 + $0xec] ss:$16 sps:$4 sm:$0xff]  }
 0x5a8   :  { %2148 = vmatpush1.bf16.msra.mxu0 %v5153_v46  ;;  %2189 = vmatpush1.bf16.msra.mxu1 %v5156_v29  ;;  %3772 = vtanh.f32 %v2050_v60 }
 0x5a9   :  { %2149 = vmatprep.subr.bf16.mxu0 %v5159_v59  ;;  %2190 = vmatprep.subr.bf16.mxu1 %v5162_v62 }
 0x5aa   :  { %2179 = vmatprep.mubr.bf16.mxu0 %v6378_v58  ;;  %2220 = vmatprep.mubr.bf16.mxu1 %v6378_v58 }
 0x5ac   :  { %2150 = vmatpush1.bf16.msra.mxu0 %v5167_v57  ;;  %2191 = vmatpush1.bf16.msra.mxu1 %v5170_v26 }
 0x5ad   :  { %2151 = vmatprep.subr.bf16.mxu0 %v5173_v4  ;;  %2192 = vmatprep.subr.bf16.mxu1 %v5176_v5 }
 0x5b0   :  { %2152 = vmatpush1.bf16.msra.mxu0 %v5179_v63  ;;  %2193 = vmatpush1.bf16.msra.mxu1 %v5182_v24 }
 0x5b1   :  { %2153 = vmatprep.subr.bf16.mxu0 %v5185_v31  ;;  %2194 = vmatprep.subr.bf16.mxu1 %v5188_v22 }
 0x5b4   :  { %v3771_v50 = vpop.eup %3770  ;;  %2154 = vmatpush1.bf16.msra.mxu0 %v6593_v25  ;;  %2195 = vmatpush1.bf16.msra.mxu1 %v6594_v28 }
 0x5b5   :  { %2155 = vmatprep.subr.bf16.mxu0 %v6595_v54  ;;  %2196 = vmatprep.subr.bf16.mxu1 %v6596_v30  ;;  %v2054_v7 = vrot.slane %v3771_v50, 2  ;;  %v3773_v38 = vpop.eup %3772  ;;  %v2060_v60 = vrot.slane %v3771_v50, 4 }
 0x5b6   :  { %v2057_v8 = vmul.f32 %v3773_v38, %v3771_v50  ;;  %v5395_v50 = vld [vmem:[%s6070_s1 + $0xc4] ss:$16 sps:$4 sm:$0xff]  }
 0x5b7   :  { %v2056_v39 = vmul.f32 %v2054_v7, %v5216_v51  ;;  %v6603_v51 = vld [vmem:[#allocation12_spill] sm:$0xff]  ;;  %6606 = vst [vmem:[#allocation15_spill] sm:$0xff] %v5395_v50 }
 0x5b8   :  { %2156 = vmatpush1.bf16.msra.mxu0 %v5204_v52  ;;  %2197 = vmatpush1.bf16.msra.mxu1 %v5207_v20 }
 0x5b9   :  { %2157 = vmatprep.subr.bf16.mxu0 %v6597_v48  ;;  %2198 = vmatprep.subr.bf16.mxu1 %v6598_v34  ;;  %v5355_v61 = vadd.f32 %v2057_v8, %v2056_v39  ;;  %v5383_v8 = vld [vmem:[%s6070_s1 + $0xe0] ss:$16 sps:$4 sm:$0xff]   ;;  %v5389_v39 = vld [vmem:[%s6070_s1 + $0xe8] ss:$16 sps:$4 sm:$0xff]  }
 0x5bb   :  { %3774 = vtanh.f32 %v5355_v61 }
 0x5bc   :  { %2158 = vmatpush1.bf16.msra.mxu0 %v6599_v32  ;;  %2199 = vmatpush1.bf16.msra.mxu1 %v6600_v1 }
 0x5bd   :  { %2159 = vmatprep.subr.bf16.mxu0 %v6601_v10  ;;  %2200 = vmatprep.subr.bf16.mxu1 %v6602_v55 }
 0x5c0   :  { %2160 = vmatpush1.bf16.msra.mxu0 %v6603_v51  ;;  %2201 = vmatpush1.bf16.msra.mxu1 %v6604_v33 }
 0x5c1   :  { %2161 = vmatprep.subr.bf16.mxu0 %v6605_v56  ;;  %2202 = vmatprep.subr.bf16.mxu1 %v5240_v21 }
 0x5c4   :  { %2162 = vmatpush1.bf16.msra.mxu0 %v5243_v23  ;;  %2203 = vmatpush1.bf16.msra.mxu1 %v5246_v18 }
 0x5c5   :  { %2259 = vmatprep.subr.bf16.mxu0 %v5371_v36  ;;  %2300 = vmatprep.subr.bf16.mxu1 %v5377_v27 }
 0x5c8   :  { %v3775_v37 = vpop.eup %3774 }
 0x5c9   :  { %v2062_v7 = vmul.f32 %v3775_v37, %v2060_v60  ;;  %v5401_v60 = vld [vmem:[%s6070_s1 + $0xcc] ss:$16 sps:$4 sm:$0xff]   ;;  %v5409_v37 = vld [vmem:[%s6070_s1 + $0xc0] ss:$16 sps:$4 sm:$0xff]  }
 0x5ca   :  { %6607 = vst [vmem:[#allocation16_spill] sm:$0xff] %v5401_v60  ;;  %6608 = vst [vmem:[#allocation61_spill] sm:$0xff] %v5409_v37 }
 0x5cb   :  { %v2063_v38 = vpack.c.bf16 %v2062_v7, %v2062_v7  ;;  %v5415_v7 = vld [vmem:[%s6070_s1 + $0xc8] ss:$16 sps:$4 sm:$0xff]  }
 0x5cc   :  { %6609 = vst [vmem:[#allocation31_spill] sm:$0xff] %v5415_v7 }
 0x5cd   :  { %2180 = vmatmul.mubr.bf16.vlgmr.msra.gmra.mxu0 %v2063_v38  ;;  %2221 = vmatmul.mubr.bf16.vlgmr.msra.gmra.mxu1 %v2063_v38 }
 0x5ce   :  { %2260 = vmatpush1.bf16.msra.mxu0 %v5383_v8  ;;  %2301 = vmatpush1.bf16.msra.mxu1 %v5389_v39 }
 0x5cf   :  { %2261 = vmatprep.subr.bf16.mxu0 %v5395_v50  ;;  %2302 = vmatprep.subr.bf16.mxu1 %v5401_v60  ;;  %v5421_v60 = vld [vmem:[%s6070_s1 + $0xa4] ss:$16 sps:$4 sm:$0xff]   ;;  %v5427_v50 = vld [vmem:[%s6070_s1 + $0xac] ss:$16 sps:$4 sm:$0xff]  }
 0x5d0   :  { %2291 = vmatprep.mubr.bf16.mxu0 %v6378_v58  ;;  %2332 = vmatprep.mubr.bf16.mxu1 %v6378_v58  ;;  %6610 = vst [vmem:[#allocation32_spill] sm:$0xff] %v5421_v60  ;;  %6611 = vst [vmem:[#allocation46_spill] sm:$0xff] %v5427_v50 }
 0x5d2   :  { %2262 = vmatpush1.bf16.msra.mxu0 %v5409_v37  ;;  %2303 = vmatpush1.bf16.msra.mxu1 %v5415_v7  ;;  %v5433_v37 = vld [vmem:[%s6070_s1 + $0xa0] ss:$16 sps:$4 sm:$0xff]   ;;  %v5439_v7 = vld [vmem:[%s6070_s1 + $0xa8] ss:$16 sps:$4 sm:$0xff]  }
 0x5d3   :  { %2263 = vmatprep.subr.bf16.mxu0 %v5421_v60  ;;  %2304 = vmatprep.subr.bf16.mxu1 %v5427_v50  ;;  %6612 = vst [vmem:[#allocation48_spill] sm:$0xff] %v5433_v37  ;;  %6613 = vst [vmem:[#allocation49_spill] sm:$0xff] %v5439_v7  ;;  %v5445_v60 = vld [vmem:[%s6070_s1 + $0x84] ss:$16 sps:$4 sm:$0xff]   ;;  %v5451_v50 = vld [vmem:[%s6070_s1 + $0x8c] ss:$16 sps:$4 sm:$0xff]  }
 0x5d4   :  { %6614 = vst [vmem:[#allocation52_spill] sm:$0xff] %v5445_v60  ;;  %6615 = vst [vmem:[#allocation55_spill] sm:$0xff] %v5451_v50 }
 0x5d6   :  { %2264 = vmatpush1.bf16.msra.mxu0 %v5433_v37  ;;  %2305 = vmatpush1.bf16.msra.mxu1 %v5439_v7  ;;  %v5457_v37 = vld [vmem:[%s6070_s1 + $0x80] ss:$16 sps:$4 sm:$0xff]  }
 0x5d7   :  { %2265 = vmatprep.subr.bf16.mxu0 %v5445_v60  ;;  %2306 = vmatprep.subr.bf16.mxu1 %v5451_v50  ;;  %6616 = vst [vmem:[#allocation56_spill] sm:$0xff] %v5457_v37 }
 0x5da   :  { %2266 = vmatpush1.bf16.msra.mxu0 %v5457_v37  ;;  %2307 = vmatpush1.bf16.msra.mxu1 %v4937_v40  ;;  %v6617_v40 = vld [vmem:[#allocation33_spill] sm:$0xff] }
 0x5db   :  { %2267 = vmatprep.subr.bf16.mxu0 %v4943_v41  ;;  %2308 = vmatprep.subr.bf16.mxu1 %v4949_v42  ;;  %v6618_v41 = vld [vmem:[#allocation34_spill] sm:$0xff]  ;;  %v6619_v42 = vld [vmem:[#allocation35_spill] sm:$0xff] }
 0x5de   :  { %2268 = vmatpush1.bf16.msra.mxu0 %v4955_v43  ;;  %2309 = vmatpush1.bf16.msra.mxu1 %v4961_v44  ;;  %v6620_v43 = vld [vmem:[#allocation36_spill] sm:$0xff]  ;;  %v6621_v44 = vld [vmem:[#allocation37_spill] sm:$0xff] }
 0x5df   :  { %2269 = vmatprep.subr.bf16.mxu0 %v4967_v45  ;;  %2310 = vmatprep.subr.bf16.mxu1 %v4973_v11  ;;  %v6622_v45 = vld [vmem:[#allocation38_spill] sm:$0xff]  ;;  %v6623_v11 = vld [vmem:[#allocation47_spill] sm:$0xff] }
 0x5e2   :  { %2270 = vmatpush1.bf16.msra.mxu0 %v4979_v12  ;;  %2311 = vmatpush1.bf16.msra.mxu1 %v4985_v13  ;;  %v6624_v12 = vld [vmem:[#allocation50_spill] sm:$0xff]  ;;  %v6625_v13 = vld [vmem:[#allocation51_spill] sm:$0xff] }
 0x5e3   :  { %2271 = vmatprep.subr.bf16.mxu0 %v4991_v14  ;;  %2312 = vmatprep.subr.bf16.mxu1 %v4997_v15  ;;  %v6626_v14 = vld [vmem:[#allocation53_spill] sm:$0xff]  ;;  %v6627_v15 = vld [vmem:[#allocation54_spill] sm:$0xff] }
 0x5e6   :  { %2272 = vmatpush1.bf16.msra.mxu0 %v5003_v47  ;;  %2313 = vmatpush1.bf16.msra.mxu1 %v5009_v6  ;;  %v6628_v47 = vld [vmem:[#allocation17_spill] sm:$0xff]  ;;  %v6629_v6 = vld [vmem:[#allocation18_spill] sm:$0xff] }
 0x5e7   :  { %2273 = vmatprep.subr.bf16.mxu0 %v5015_v16  ;;  %2314 = vmatprep.subr.bf16.mxu1 %v5021_v17  ;;  %v6630_v16 = vld [vmem:[#allocation19_spill] sm:$0xff]  ;;  %v6631_v17 = vld [vmem:[#allocation20_spill] sm:$0xff] }
 0x5ea   :  { %2274 = vmatpush1.bf16.msra.mxu0 %v5027_v2  ;;  %2315 = vmatpush1.bf16.msra.mxu1 %v5033_v49  ;;  %v6632_v2 = vld [vmem:[#allocation21_spill] sm:$0xff]  ;;  %v6633_v49 = vld [vmem:[#allocation22_spill] sm:$0xff] }
 0x5eb   :  { %2386 = vmatprep.subr.bf16.mxu0 %v6617_v40  ;;  %2427 = vmatprep.subr.bf16.mxu1 %v6618_v41  ;;  %v6635_v40 = vld [vmem:[#allocation24_spill] sm:$0xff]  ;;  %v6636_v41 = vld [vmem:[#allocation25_spill] sm:$0xff] }
 0x5ed   :  { %2292 = vmatmul.mubr.bf16.vlgmr.msra.gmra.mxu0 %v2063_v38  ;;  %2333 = vmatmul.mubr.bf16.vlgmr.msra.gmra.mxu1 %v2063_v38  ;;  %v6634_v38 = vld [vmem:[#allocation23_spill] sm:$0xff] }
 0x5ee   :  { %2387 = vmatpush1.bf16.msra.mxu0 %v6619_v42  ;;  %2428 = vmatpush1.bf16.msra.mxu1 %v6620_v43  ;;  %v6637_v42 = vld [vmem:[#allocation26_spill] sm:$0xff]  ;;  %v6638_v43 = vld [vmem:[#allocation27_spill] sm:$0xff] }
 0x5ef   :  { %2388 = vmatprep.subr.bf16.mxu0 %v6621_v44  ;;  %2429 = vmatprep.subr.bf16.mxu1 %v6622_v45  ;;  %v6639_v44 = vld [vmem:[#allocation28_spill] sm:$0xff]  ;;  %v6640_v45 = vld [vmem:[#allocation29_spill] sm:$0xff] }
 0x5f0   :  { %2418 = vmatprep.mubr.bf16.mxu0 %v6378_v58  ;;  %2459 = vmatprep.mubr.bf16.mxu1 %v6378_v58 }
 0x5f2   :  { %2389 = vmatpush1.bf16.msra.mxu0 %v6623_v11  ;;  %2430 = vmatpush1.bf16.msra.mxu1 %v6624_v12  ;;  %v6641_v11 = vld [vmem:[#allocation30_spill] sm:$0xff]  ;;  %v6642_v12 = vld [vmem:[#allocation11_spill] sm:$0xff] }
 0x5f3   :  { %2390 = vmatprep.subr.bf16.mxu0 %v6625_v13  ;;  %2431 = vmatprep.subr.bf16.mxu1 %v6626_v14  ;;  %v6643_v13 = vld [vmem:[#allocation62_spill] sm:$0xff]  ;;  %v6644_v14 = vld [vmem:[#allocation39_spill] sm:$0xff] }
 0x5f6   :  { %2391 = vmatpush1.bf16.msra.mxu0 %v6627_v15  ;;  %2432 = vmatpush1.bf16.msra.mxu1 %v6628_v47  ;;  %v6645_v15 = vld [vmem:[#allocation40_spill] sm:$0xff]  ;;  %v6646_v47 = vld [vmem:[#allocation41_spill] sm:$0xff] }
 0x5f7   :  { %2392 = vmatprep.subr.bf16.mxu0 %v6629_v6  ;;  %2433 = vmatprep.subr.bf16.mxu1 %v6630_v16  ;;  %v6647_v6 = vld [vmem:[#allocation42_spill] sm:$0xff]  ;;  %v6648_v16 = vld [vmem:[#allocation43_spill] sm:$0xff] }
 0x5fa   :  { %2393 = vmatpush1.bf16.msra.mxu0 %v6631_v17  ;;  %2434 = vmatpush1.bf16.msra.mxu1 %v6632_v2  ;;  %v6649_v17 = vld [vmem:[#allocation44_spill] sm:$0xff]  ;;  %v6650_v2 = vld [vmem:[#allocation45_spill] sm:$0xff] }
 0x5fb   :  { %2394 = vmatprep.subr.bf16.mxu0 %v6633_v49  ;;  %2435 = vmatprep.subr.bf16.mxu1 %v6634_v38 }
 0x5fe   :  { %2395 = vmatpush1.bf16.msra.mxu0 %v6635_v40  ;;  %2436 = vmatpush1.bf16.msra.mxu1 %v6636_v41 }
 0x5ff   :  { %2396 = vmatprep.subr.bf16.mxu0 %v6637_v42  ;;  %2437 = vmatprep.subr.bf16.mxu1 %v6638_v43 }
 0x602   :  { %2397 = vmatpush1.bf16.msra.mxu0 %v6639_v44  ;;  %2438 = vmatpush1.bf16.msra.mxu1 %v6640_v45 }
 0x603   :  { %2398 = vmatprep.subr.bf16.mxu0 %v6641_v11  ;;  %2439 = vmatprep.subr.bf16.mxu1 %v6642_v12 }
 0x606   :  { %2399 = vmatpush1.bf16.msra.mxu0 %v6643_v13  ;;  %2440 = vmatpush1.bf16.msra.mxu1 %v6644_v14 }
 0x607   :  { %2400 = vmatprep.subr.bf16.mxu0 %v6645_v15  ;;  %2441 = vmatprep.subr.bf16.mxu1 %v6646_v47 }
 0x60a   :  { %2401 = vmatpush1.bf16.msra.mxu0 %v6647_v6  ;;  %2442 = vmatpush1.bf16.msra.mxu1 %v6648_v16 }
 0x60b   :  { %2468 = vmatprep.subr.bf16.mxu0 %v6649_v17  ;;  %2509 = vmatprep.subr.bf16.mxu1 %v6650_v2 }
 0x667   :  { %v2099_v49 = vpop.f32.mrf.mxu0  ;;  %v2140_v38 = vpop.f32.mrf.mxu1 }
 0x669   :  { %v2101_v40 = vpop.f32.mrf.mxu0  ;;  %v2142_v41 = vpop.f32.mrf.mxu1 }
 0x66b   :  { %v2103_v42 = vpop.f32.mrf.mxu0  ;;  %v2144_v43 = vpop.f32.mrf.mxu1 }
 0x66d   :  { %v2104_v44 = vpop.f32.mrf.mxu0  ;;  %v2145_v45 = vpop.f32.mrf.mxu1 }
 0x68d   :  { %v2181_v11 = vpop.f32.mrf.mxu0  ;;  %v2222_v12 = vpop.f32.mrf.mxu1 }
 0x68e   :  { %v2182_v13 = vadd.f32 %v2181_v11, %v2099_v49  ;;  %v2223_v43 = vadd.f32 %v2222_v12, %v2140_v38 }
 0x68f   :  { %v2183_v14 = vpop.f32.mrf.mxu0  ;;  %v2224_v15 = vpop.f32.mrf.mxu1 }
 0x690   :  { %v2229_v47 = vadd.f32 %v2182_v13, %v4663_v9  ;;  %v2184_v6 = vadd.f32 %v2183_v14, %v2101_v40  ;;  %v2231_v44 = vadd.f32 %v2223_v43, %v4670_v3  ;;  %v2225_v45 = vadd.f32 %v2224_v15, %v2142_v41 }
 0x691   :  { %v2185_v16 = vpop.f32.mrf.mxu0  ;;  %v2226_v17 = vpop.f32.mrf.mxu1 }
 0x692   :  { %v3448_v37 = vmul.f32 -1.442695, %v2229_v47  ;;  %v2230_v2 = vadd.f32 %v2184_v6, %v4665_v53  ;;  %v3450_v49 = vmul.f32 -1.442695, %v2231_v44  ;;  %v2232_v7 = vadd.f32 %v2225_v45, %v6487_v19 }
 0x693   :  { %v2186_v50 = vpop.f32.mrf.mxu0  ;;  %v2227_v60 = vpop.f32.mrf.mxu1 }
 0x694   :  { %3776 = vpow2.f32 %v3448_v37  ;;  %v3449_v42 = vmul.f32 -1.442695, %v2230_v2 }
 0x696   :  { %3778 = vpow2.f32 %v3449_v42 }
 0x697   :  { %3780 = vpow2.f32 %v3450_v49 }
 0x6a1   :  { %v3777_v11 = vpop.eup %3776 }
 0x6a2   :  { %v2242_v13 = vadd.f32 1.0, %v3777_v11 }
 0x6a3   :  { %v3779_v40 = vpop.eup %3778 }
 0x6a4   :  { %3782 = vrcp.f32 %v2242_v13  ;;  %v2243_v14 = vadd.f32 1.0, %v3779_v40  ;;  %v3781_v6 = vpop.eup %3780 }
 0x6a5   :  { %3784 = vtanh.f32 %v2232_v7  ;;  %v2244_v44 = vadd.f32 1.0, %v3781_v6  ;;  %v3451_v7 = vld [vmem:[%s6069_s0 + $0x28] sm:$0xff] }
 0x6a6   :  { %3786 = vrcp.f32 %v2243_v14 }
 0x6a7   :  { %3788 = vrcp.f32 %v2244_v44  ;;  %v5678_v44 = vld [vmem:[%s6070_s1 + $0x8] ss:$16 sps:$4 sm:$0xff]  }
 0x6ad   :  { %v2293_v50 = vpop.f32.mrf.mxu0  ;;  %v2334_v60 = vpop.f32.mrf.mxu1 }
 0x6af   :  { %v2295_v37 = vpop.f32.mrf.mxu0  ;;  %v2336_v47 = vpop.f32.mrf.mxu1 }
 0x6b0   :  { %v2345_v38 = vcombine.low %v2293_v50, %v2295_v37  ;;  %v2346_v12 = vcombine.low %v2334_v60, %v2336_v47 }
 0x6b1   :  { %v3783_v16 = vpop.eup %3782  ;;  %v2297_v41 = vpop.f32.mrf.mxu0 }
 0x6b2   :  { %v2338_v15 = vpop.f32.mrf.mxu1  ;;  %v3785_v17 = vpop.eup %3784  ;;  %v2353_v2 = vrot.slane %v2345_v38, %v6488_v35  ;;  %v2360_v42 = vrot.slane %v2346_v12, %v6488_v35 }
 0x6b3   :  { %v3787_v43 = vpop.eup %3786  ;;  %v2298_v45 = vpop.f32.mrf.mxu0  ;;  %v2253_v13 = vmul.f32 %v3785_v17, %v3783_v16  ;;  %v5648_v16 = vld [vmem:[%s6070_s1 + $0x20] ss:$16 sps:$4 sm:$0xff]   ;;  %v5654_v17 = vld [vmem:[%s6070_s1 + $0x28] ss:$16 sps:$4 sm:$0xff]  }
 0x6b4   :  { %v2339_v49 = vpop.f32.mrf.mxu1  ;;  %v2252_v11 = vmul.f32 %v3787_v43, %v5329_v0  ;;  %v2361_v40 = vcombine.low %v2353_v2, %v2360_v42  ;;  %v3789_v37 = vpop.eup %3788  ;;  %v6658_v0 = vld [vmem:[#allocation49_spill] sm:$0xff]  ;;  %v5666_v42 = vld [vmem:[%s6070_s1 + $0xc] ss:$16 sps:$4 sm:$0xff]  }
 0x6b5   :  { %v5660_v2 = vld [vmem:[%s6070_s1 + $0x4] ss:$16 sps:$4 sm:$0xff]   ;;  %v5672_v43 = vld [vmem:[%s6070_s1] ss:$16 sps:$4 sm:$0xff]   ;;  %v5684_v45 = vld [vmem:[#allocation5 + $0xec] ss:$16 sps:$4 sm:$0xff]  }
 0x6b6   :  { %v5523_v14 = vadd.f32 %v2253_v13, %v2252_v11  ;;  %v2363_v50 = vadd.f32 %v3451_v7, %v2361_v40  ;;  %v5681_v7 = vld [vmem:[#allocation5 + $0xe4] ss:$16 sps:$4 sm:$0xff]   ;;  %v5687_v49 = vld [vmem:[#allocation5 + $0xe0] ss:$16 sps:$4 sm:$0xff]   ;;  %v5690_v11 = vld [vmem:[#allocation5 + $0xe8] ss:$16 sps:$4 sm:$0xff]  }
 0x6b7   :  { %6662 = vst [vmem:[#allocation57_spill] sm:$0xff] %v5687_v49  ;;  %6663 = vst [vmem:[#allocation58_spill] sm:$0xff] %v5690_v11  ;;  %v5693_v13 = vld [vmem:[#allocation5 + $0xc4] ss:$16 sps:$4 sm:$0xff]   ;;  %v5696_v40 = vld [vmem:[#allocation5 + $0xcc] ss:$16 sps:$4 sm:$0xff]  }
 0x6b8   :  { %3790 = vtanh.f32 %v5523_v14  ;;  %v3452_v60 = vmul.f32 -1.442695, %v2363_v50  ;;  %v2371_v41 = vrot.slane %v2363_v50, 6  ;;  %6664 = vst [vmem:[#allocation59_spill] sm:$0xff] %v5693_v13  ;;  %6665 = vst [vmem:[#allocation60_spill] sm:$0xff] %v5696_v40 }
 0x6b9   :  { %v5701_v50 = vld [vmem:[#allocation5 + $0xc0] ss:$16 sps:$4 sm:$0xff]  }
 0x6ba   :  { %3792 = vpow2.f32 %v3452_v60  ;;  %6666 = vst [vmem:[#allocation12_spill] sm:$0xff] %v5701_v50  ;;  %v5704_v60 = vld [vmem:[#allocation5 + $0xc8] ss:$16 sps:$4 sm:$0xff]  }
 0x6bb   :  { %6667 = vst [vmem:[#allocation13_spill] sm:$0xff] %v5704_v60 }
 0x6c5   :  { %v3791_v47 = vpop.eup %3790 }
 0x6c6   :  { %v2256_v6 = vmul.f32 %v3791_v47, %v3789_v37  ;;  %v5707_v37 = vld [vmem:[#allocation5 + $0xa4] ss:$16 sps:$4 sm:$0xff]   ;;  %v5710_v47 = vld [vmem:[#allocation5 + $0xac] ss:$16 sps:$4 sm:$0xff]  }
 0x6c7   :  { %v3793_v38 = vpop.eup %3792  ;;  %6668 = vst [vmem:[#allocation14_spill] sm:$0xff] %v5707_v37  ;;  %6669 = vst [vmem:[#allocation33_spill] sm:$0xff] %v5710_v47 }
 0x6c8   :  { %v2367_v12 = vadd.f32 1.0, %v3793_v38  ;;  %v2385_v15 = vpack.c.bf16 %v2256_v6, %v2256_v6  ;;  %v5713_v6 = vld [vmem:[#allocation5 + $0xa0] ss:$16 sps:$4 sm:$0xff]   ;;  %v5716_v38 = vld [vmem:[#allocation5 + $0xa8] ss:$16 sps:$4 sm:$0xff]  }
 0x6c9   :  { %6670 = vst [vmem:[#allocation34_spill] sm:$0xff] %v5713_v6  ;;  %6671 = vst [vmem:[#allocation35_spill] sm:$0xff] %v5716_v38 }
 0x6ca   :  { %3794 = vrcp.f32 %v2367_v12  ;;  %2419 = vmatmul.mubr.bf16.vlgmr.msra.gmra.mxu0 %v2385_v15  ;;  %2460 = vmatmul.mubr.bf16.vlgmr.msra.gmra.mxu1 %v2385_v15  ;;  %v5719_v12 = vld [vmem:[#allocation5 + $0x84] ss:$16 sps:$4 sm:$0xff]   ;;  %v5725_v15 = vld [vmem:[#allocation5 + $0x80] ss:$16 sps:$4 sm:$0xff]  }
 0x6cb   :  { %2469 = vmatpush1.bf16.msra.mxu0 %v5153_v46  ;;  %2510 = vmatpush1.bf16.msra.mxu1 %v5156_v29  ;;  %3796 = vtanh.f32 %v2371_v41  ;;  %6672 = vst [vmem:[#allocation36_spill] sm:$0xff] %v5719_v12  ;;  %v5722_v41 = vld [vmem:[#allocation5 + $0x8c] ss:$16 sps:$4 sm:$0xff]   ;;  %6674 = vst [vmem:[#allocation38_spill] sm:$0xff] %v5725_v15 }
 0x6cc   :  { %2470 = vmatprep.subr.bf16.mxu0 %v5159_v59  ;;  %2511 = vmatprep.subr.bf16.mxu1 %v5162_v62  ;;  %6673 = vst [vmem:[#allocation37_spill] sm:$0xff] %v5722_v41 }
 0x6cd   :  { %2500 = vmatprep.mubr.bf16.mxu0 %v6378_v58  ;;  %2541 = vmatprep.mubr.bf16.mxu1 %v6378_v58 }
 0x6cf   :  { %2471 = vmatpush1.bf16.msra.mxu0 %v5167_v57  ;;  %2512 = vmatpush1.bf16.msra.mxu1 %v5170_v26 }
 0x6d0   :  { %2472 = vmatprep.subr.bf16.mxu0 %v5173_v4  ;;  %2513 = vmatprep.subr.bf16.mxu1 %v5176_v5 }
 0x6d3   :  { %2473 = vmatpush1.bf16.msra.mxu0 %v5179_v63  ;;  %2514 = vmatpush1.bf16.msra.mxu1 %v5182_v24 }
 0x6d4   :  { %2474 = vmatprep.subr.bf16.mxu0 %v5185_v31  ;;  %2515 = vmatprep.subr.bf16.mxu1 %v5188_v22  ;;  %v6651_v31 = vld [vmem:[#allocation15_spill] sm:$0xff]  ;;  %v6652_v22 = vld [vmem:[#allocation16_spill] sm:$0xff] }
 0x6d7   :  { %v3795_v46 = vpop.eup %3794  ;;  %2475 = vmatpush1.bf16.msra.mxu0 %v6593_v25  ;;  %2516 = vmatpush1.bf16.msra.mxu1 %v6594_v28  ;;  %v6659_v25 = vld [vmem:[#allocation52_spill] sm:$0xff]  ;;  %v6660_v28 = vld [vmem:[#allocation55_spill] sm:$0xff] }
 0x6d8   :  { %2476 = vmatprep.subr.bf16.mxu0 %v6595_v54  ;;  %2517 = vmatprep.subr.bf16.mxu1 %v6596_v30  ;;  %v2375_v29 = vrot.slane %v3795_v46, 2  ;;  %v3797_v59 = vpop.eup %3796  ;;  %v2381_v4 = vrot.slane %v3795_v46, 4  ;;  %v6661_v54 = vld [vmem:[#allocation56_spill] sm:$0xff] }
 0x6d9   :  { %v2378_v62 = vmul.f32 %v3797_v59, %v3795_v46  ;;  %v5582_v30 = vld [vmem:[%s6070_s1 + $0x88] ss:$16 sps:$4 sm:$0xff]   ;;  %v5734_v59 = vld [vmem:[#allocation5 + $0x6c] ss:$16 sps:$4 sm:$0xff]  }
 0x6da   :  { %v2377_v57 = vmul.f32 %v2375_v29, %v5355_v61  ;;  %v5600_v61 = vld [vmem:[%s6070_s1 + $0x60] ss:$16 sps:$4 sm:$0xff]   ;;  %v5728_v46 = vld [vmem:[#allocation5 + $0x88] ss:$16 sps:$4 sm:$0xff]   ;;  %v5731_v29 = vld [vmem:[#allocation5 + $0x64] ss:$16 sps:$4 sm:$0xff]  }
 0x6db   :  { %2477 = vmatpush1.bf16.msra.mxu0 %v5204_v52  ;;  %2518 = vmatpush1.bf16.msra.mxu1 %v5207_v20  ;;  %v6653_v20 = vld [vmem:[#allocation61_spill] sm:$0xff]  ;;  %v6655_v52 = vld [vmem:[#allocation32_spill] sm:$0xff]  ;;  %6675 = vst [vmem:[#allocation47_spill] sm:$0xff] %v5728_v46  ;;  %6676 = vst [vmem:[#allocation50_spill] sm:$0xff] %v5731_v29 }
 0x6dc   :  { %2478 = vmatprep.subr.bf16.mxu0 %v6597_v48  ;;  %2519 = vmatprep.subr.bf16.mxu1 %v6598_v34  ;;  %v5549_v26 = vadd.f32 %v2378_v62, %v2377_v57  ;;  %v5588_v48 = vld [vmem:[%s6070_s1 + $0x64] ss:$16 sps:$4 sm:$0xff]   ;;  %v5594_v34 = vld [vmem:[%s6070_s1 + $0x6c] ss:$16 sps:$4 sm:$0xff]   ;;  %6677 = vst [vmem:[#allocation51_spill] sm:$0xff] %v5734_v59 }
 0x6dd   :  { %v5737_v62 = vld [vmem:[#allocation5 + $0x60] ss:$16 sps:$4 sm:$0xff]   ;;  %v5740_v57 = vld [vmem:[#allocation5 + $0x68] ss:$16 sps:$4 sm:$0xff]  }
 0x6de   :  { %3798 = vtanh.f32 %v5549_v26  ;;  %6678 = vst [vmem:[#allocation53_spill] sm:$0xff] %v5737_v62  ;;  %6679 = vst [vmem:[#allocation54_spill] sm:$0xff] %v5740_v57 }
 0x6df   :  { %2479 = vmatpush1.bf16.msra.mxu0 %v6599_v32  ;;  %2520 = vmatpush1.bf16.msra.mxu1 %v6600_v1  ;;  %v5606_v32 = vld [vmem:[%s6070_s1 + $0x68] ss:$16 sps:$4 sm:$0xff]   ;;  %v5612_v1 = vld [vmem:[%s6070_s1 + $0x44] ss:$16 sps:$4 sm:$0xff]  }
 0x6e0   :  { %2480 = vmatprep.subr.bf16.mxu0 %v6601_v10  ;;  %2521 = vmatprep.subr.bf16.mxu1 %v6602_v55  ;;  %v5618_v10 = vld [vmem:[%s6070_s1 + $0x4c] ss:$16 sps:$4 sm:$0xff]   ;;  %v5624_v55 = vld [vmem:[%s6070_s1 + $0x40] ss:$16 sps:$4 sm:$0xff]  }
 0x6e3   :  { %2481 = vmatpush1.bf16.msra.mxu0 %v6603_v51  ;;  %2522 = vmatpush1.bf16.msra.mxu1 %v6604_v33  ;;  %v5630_v51 = vld [vmem:[%s6070_s1 + $0x48] ss:$16 sps:$4 sm:$0xff]   ;;  %v5636_v33 = vld [vmem:[%s6070_s1 + $0x24] ss:$16 sps:$4 sm:$0xff]  }
 0x6e4   :  { %2482 = vmatprep.subr.bf16.mxu0 %v6605_v56  ;;  %2523 = vmatprep.subr.bf16.mxu1 %v5240_v21  ;;  %v6656_v21 = vld [vmem:[#allocation46_spill] sm:$0xff] }
 0x6e5   :  { %v5642_v56 = vld [vmem:[%s6070_s1 + $0x2c] ss:$16 sps:$4 sm:$0xff]  }
 0x6e7   :  { %2483 = vmatpush1.bf16.msra.mxu0 %v5243_v23  ;;  %2524 = vmatpush1.bf16.msra.mxu1 %v5246_v18  ;;  %v6654_v18 = vld [vmem:[#allocation31_spill] sm:$0xff]  ;;  %v6657_v23 = vld [vmem:[#allocation48_spill] sm:$0xff] }
 0x6e8   :  { %2580 = vmatprep.subr.bf16.mxu0 %v5371_v36  ;;  %2621 = vmatprep.subr.bf16.mxu1 %v5377_v27 }
 0x6eb   :  { %v3799_v5 = vpop.eup %3798 }
 0x6ec   :  { %v2383_v63 = vmul.f32 %v3799_v5, %v2381_v4  ;;  %v5743_v4 = vld [vmem:[#allocation5 + $0x44] ss:$16 sps:$4 sm:$0xff]   ;;  %v5746_v5 = vld [vmem:[#allocation5 + $0x4c] ss:$16 sps:$4 sm:$0xff]  }
 0x6ed   :  { %6680 = vst [vmem:[#allocation17_spill] sm:$0xff] %v5743_v4  ;;  %6681 = vst [vmem:[#allocation18_spill] sm:$0xff] %v5746_v5 }
 0x6ee   :  { %v2384_v24 = vpack.c.bf16 %v2383_v63, %v2383_v63  ;;  %v5749_v63 = vld [vmem:[#allocation5 + $0x40] ss:$16 sps:$4 sm:$0xff]  }
 0x6ef   :  { %6682 = vst [vmem:[#allocation19_spill] sm:$0xff] %v5749_v63 }
 0x6f0   :  { %2501 = vmatmul.mubr.bf16.vlgmr.msra.gmra.mxu0 %v2384_v24  ;;  %2542 = vmatmul.mubr.bf16.vlgmr.msra.gmra.mxu1 %v2384_v24 }
 0x6f1   :  { %2581 = vmatpush1.bf16.msra.mxu0 %v5383_v8  ;;  %2622 = vmatpush1.bf16.msra.mxu1 %v5389_v39 }
 0x6f2   :  { %2582 = vmatprep.subr.bf16.mxu0 %v6651_v31  ;;  %2623 = vmatprep.subr.bf16.mxu1 %v6652_v22 }
 0x6f3   :  { %2612 = vmatprep.mubr.bf16.mxu0 %v6378_v58  ;;  %2653 = vmatprep.mubr.bf16.mxu1 %v6378_v58 }
 0x6f5   :  { %2583 = vmatpush1.bf16.msra.mxu0 %v6653_v20  ;;  %2624 = vmatpush1.bf16.msra.mxu1 %v6654_v18 }
 0x6f6   :  { %2584 = vmatprep.subr.bf16.mxu0 %v6655_v52  ;;  %2625 = vmatprep.subr.bf16.mxu1 %v6656_v21 }
 0x6f9   :  { %2585 = vmatpush1.bf16.msra.mxu0 %v6657_v23  ;;  %2626 = vmatpush1.bf16.msra.mxu1 %v6658_v0 }
 0x6fa   :  { %2586 = vmatprep.subr.bf16.mxu0 %v6659_v25  ;;  %2627 = vmatprep.subr.bf16.mxu1 %v6660_v28 }
 0x6fd   :  { %2587 = vmatpush1.bf16.msra.mxu0 %v6661_v54  ;;  %2628 = vmatpush1.bf16.msra.mxu1 %v5582_v30 }
 0x6fe   :  { %2588 = vmatprep.subr.bf16.mxu0 %v5588_v48  ;;  %2629 = vmatprep.subr.bf16.mxu1 %v5594_v34 }
 0x701   :  { %2589 = vmatpush1.bf16.msra.mxu0 %v5600_v61  ;;  %2630 = vmatpush1.bf16.msra.mxu1 %v5606_v32 }
 0x702   :  { %2590 = vmatprep.subr.bf16.mxu0 %v5612_v1  ;;  %2631 = vmatprep.subr.bf16.mxu1 %v5618_v10 }
 0x705   :  { %2591 = vmatpush1.bf16.msra.mxu0 %v5624_v55  ;;  %2632 = vmatpush1.bf16.msra.mxu1 %v5630_v51 }
 0x706   :  { %2592 = vmatprep.subr.bf16.mxu0 %v5636_v33  ;;  %2633 = vmatprep.subr.bf16.mxu1 %v5642_v56 }
 0x709   :  { %2593 = vmatpush1.bf16.msra.mxu0 %v5648_v16  ;;  %2634 = vmatpush1.bf16.msra.mxu1 %v5654_v17 }
 0x70a   :  { %2594 = vmatprep.subr.bf16.mxu0 %v5660_v2  ;;  %2635 = vmatprep.subr.bf16.mxu1 %v5666_v42 }
 0x70d   :  { %2595 = vmatpush1.bf16.msra.mxu0 %v5672_v43  ;;  %2636 = vmatpush1.bf16.msra.mxu1 %v5678_v44 }
 0x70e   :  { %2707 = vmatprep.subr.bf16.mxu0 %v5681_v7  ;;  %2748 = vmatprep.subr.bf16.mxu1 %v5684_v45 }
 0x710   :  { %2613 = vmatmul.mubr.bf16.vlgmr.msra.gmra.mxu0 %v2384_v24  ;;  %2654 = vmatmul.mubr.bf16.vlgmr.msra.gmra.mxu1 %v2384_v24  ;;  %v5752_v24 = vld [vmem:[#allocation5 + $0x48] ss:$16 sps:$4 sm:$0xff]  }
 0x711   :  { %2708 = vmatpush1.bf16.msra.mxu0 %v5687_v49  ;;  %2749 = vmatpush1.bf16.msra.mxu1 %v5690_v11  ;;  %6683 = vst [vmem:[#allocation20_spill] sm:$0xff] %v5752_v24 }
 0x712   :  { %2709 = vmatprep.subr.bf16.mxu0 %v5693_v13  ;;  %2750 = vmatprep.subr.bf16.mxu1 %v5696_v40 }
 0x713   :  { %2739 = vmatprep.mubr.bf16.mxu0 %v6378_v58  ;;  %2780 = vmatprep.mubr.bf16.mxu1 %v6378_v58 }
 0x715   :  { %2710 = vmatpush1.bf16.msra.mxu0 %v5701_v50  ;;  %2751 = vmatpush1.bf16.msra.mxu1 %v5704_v60 }
 0x716   :  { %2711 = vmatprep.subr.bf16.mxu0 %v5707_v37  ;;  %2752 = vmatprep.subr.bf16.mxu1 %v5710_v47 }
 0x719   :  { %2712 = vmatpush1.bf16.msra.mxu0 %v5713_v6  ;;  %2753 = vmatpush1.bf16.msra.mxu1 %v5716_v38 }
 0x71a   :  { %2713 = vmatprep.subr.bf16.mxu0 %v5719_v12  ;;  %2754 = vmatprep.subr.bf16.mxu1 %v5722_v41 }
 0x71d   :  { %2714 = vmatpush1.bf16.msra.mxu0 %v5725_v15  ;;  %2755 = vmatpush1.bf16.msra.mxu1 %v5728_v46 }
 0x71e   :  { %2715 = vmatprep.subr.bf16.mxu0 %v5731_v29  ;;  %2756 = vmatprep.subr.bf16.mxu1 %v5734_v59 }
 0x721   :  { %2716 = vmatpush1.bf16.msra.mxu0 %v5737_v62  ;;  %2757 = vmatpush1.bf16.msra.mxu1 %v5740_v57  ;;  %v5755_v62 = vld [vmem:[#allocation5 + $0x24] ss:$16 sps:$4 sm:$0xff]   ;;  %v5758_v57 = vld [vmem:[#allocation5 + $0x2c] ss:$16 sps:$4 sm:$0xff]  }
 0x722   :  { %2717 = vmatprep.subr.bf16.mxu0 %v5743_v4  ;;  %2758 = vmatprep.subr.bf16.mxu1 %v5746_v5  ;;  %6684 = vst [vmem:[#allocation21_spill] sm:$0xff] %v5755_v62  ;;  %6685 = vst [vmem:[#allocation22_spill] sm:$0xff] %v5758_v57  ;;  %v5761_v4 = vld [vmem:[#allocation5 + $0x20] ss:$16 sps:$4 sm:$0xff]   ;;  %v5764_v5 = vld [vmem:[#allocation5 + $0x28] ss:$16 sps:$4 sm:$0xff]  }
 0x723   :  { %6686 = vst [vmem:[#allocation23_spill] sm:$0xff] %v5761_v4  ;;  %6687 = vst [vmem:[#allocation24_spill] sm:$0xff] %v5764_v5 }
 0x725   :  { %2718 = vmatpush1.bf16.msra.mxu0 %v5749_v63  ;;  %2759 = vmatpush1.bf16.msra.mxu1 %v5752_v24  ;;  %v5767_v63 = vld [vmem:[#allocation5 + $0x4] ss:$16 sps:$4 sm:$0xff]   ;;  %v5770_v24 = vld [vmem:[#allocation5 + $0xc] ss:$16 sps:$4 sm:$0xff]  }
 0x726   :  { %2719 = vmatprep.subr.bf16.mxu0 %v5755_v62  ;;  %2760 = vmatprep.subr.bf16.mxu1 %v5758_v57  ;;  %6688 = vst [vmem:[#allocation25_spill] sm:$0xff] %v5767_v63  ;;  %6689 = vst [vmem:[#allocation26_spill] sm:$0xff] %v5770_v24  ;;  %v5773_v62 = vld [vmem:[#allocation5] ss:$16 sps:$4 sm:$0xff]   ;;  %v5776_v57 = vld [vmem:[#allocation5 + $0x8] ss:$16 sps:$4 sm:$0xff]  }
 0x727   :  { %6690 = vst [vmem:[#allocation27_spill] sm:$0xff] %v5773_v62  ;;  %6691 = vst [vmem:[#allocation28_spill] sm:$0xff] %v5776_v57 }
 0x729   :  { %2720 = vmatpush1.bf16.msra.mxu0 %v5761_v4  ;;  %2761 = vmatpush1.bf16.msra.mxu1 %v5764_v5  ;;  %v5779_v4 = vld [vmem:[#allocation2 + $0xe4] ss:$16 sps:$4 sm:$0xff]   ;;  %v5782_v5 = vld [vmem:[#allocation2 + $0xec] ss:$16 sps:$4 sm:$0xff]  }
 0x72a   :  { %2721 = vmatprep.subr.bf16.mxu0 %v5767_v63  ;;  %2762 = vmatprep.subr.bf16.mxu1 %v5770_v24  ;;  %6692 = vst [vmem:[#allocation29_spill] sm:$0xff] %v5779_v4  ;;  %6693 = vst [vmem:[#allocation30_spill] sm:$0xff] %v5782_v5 }
 0x72d   :  { %2722 = vmatpush1.bf16.msra.mxu0 %v5773_v62  ;;  %2763 = vmatpush1.bf16.msra.mxu1 %v5776_v57 }
 0x72e   :  { %2789 = vmatprep.subr.bf16.mxu0 %v5779_v4  ;;  %2830 = vmatprep.subr.bf16.mxu1 %v5782_v5 }
 0x78a   :  { %v2420_v63 = vpop.f32.mrf.mxu0  ;;  %v2461_v59 = vpop.f32.mrf.mxu1 }
 0x78c   :  { %v2422_v29 = vpop.f32.mrf.mxu0  ;;  %v2463_v24 = vpop.f32.mrf.mxu1 }
 0x78e   :  { %v2424_v46 = vpop.f32.mrf.mxu0  ;;  %v2465_v15 = vpop.f32.mrf.mxu1 }
 0x790   :  { %v2425_v41 = vpop.f32.mrf.mxu0  ;;  %v2466_v62 = vpop.f32.mrf.mxu1 }
 0x7b0   :  { %v2502_v12 = vpop.f32.mrf.mxu0  ;;  %v2543_v38 = vpop.f32.mrf.mxu1 }
 0x7b1   :  { %v2503_v6 = vadd.f32 %v2502_v12, %v2420_v63  ;;  %v2544_v41 = vadd.f32 %v2543_v38, %v2461_v59 }
 0x7b2   :  { %v2504_v57 = vpop.f32.mrf.mxu0  ;;  %v2545_v47 = vpop.f32.mrf.mxu1 }
 0x7b3   :  { %v2550_v37 = vadd.f32 %v2503_v6, %v4663_v9  ;;  %v2505_v4 = vadd.f32 %v2504_v57, %v2422_v29  ;;  %v2552_v15 = vadd.f32 %v2544_v41, %v4670_v3  ;;  %v2546_v62 = vadd.f32 %v2545_v47, %v2463_v24 }
 0x7b4   :  { %v2506_v60 = vpop.f32.mrf.mxu0  ;;  %v2547_v50 = vpop.f32.mrf.mxu1 }
 0x7b5   :  { %v3453_v40 = vmul.f32 -1.442695, %v2550_v37  ;;  %v2551_v5 = vadd.f32 %v2505_v4, %v4665_v53  ;;  %v3455_v12 = vmul.f32 -1.442695, %v2552_v15  ;;  %v2553_v49 = vadd.f32 %v2546_v62, %v6487_v19 }
 0x7b6   :  { %v2507_v13 = vpop.f32.mrf.mxu0  ;;  %v2548_v11 = vpop.f32.mrf.mxu1 }
 0x7b7   :  { %3800 = vpow2.f32 %v3453_v40  ;;  %v3454_v46 = vmul.f32 -1.442695, %v2551_v5 }
 0x7b9   :  { %3802 = vpow2.f32 %v3454_v46 }
 0x7ba   :  { %3804 = vpow2.f32 %v3455_v12 }
 0x7c4   :  { %v3801_v63 = vpop.eup %3800 }
 0x7c5   :  { %v2563_v6 = vadd.f32 1.0, %v3801_v63 }
 0x7c6   :  { %v3803_v29 = vpop.eup %3802 }
 0x7c7   :  { %3806 = vrcp.f32 %v2563_v6  ;;  %v2564_v50 = vadd.f32 1.0, %v3803_v29  ;;  %v3805_v37 = vpop.eup %3804 }
 0x7c8   :  { %3808 = vtanh.f32 %v2553_v49  ;;  %v2565_v15 = vadd.f32 1.0, %v3805_v37  ;;  %v3456_v49 = vld [vmem:[%s6069_s0 + $0x30] sm:$0xff] }
 0x7c9   :  { %3810 = vrcp.f32 %v2564_v50 }
 0x7ca   :  { %3812 = vrcp.f32 %v2565_v15  ;;  %v5818_v15 = vld [vmem:[#allocation2 + $0xa4] ss:$16 sps:$4 sm:$0xff]  }
 0x7d0   :  { %v2614_v13 = vpop.f32.mrf.mxu0  ;;  %v2655_v11 = vpop.f32.mrf.mxu1 }
 0x7d2   :  { %v2616_v40 = vpop.f32.mrf.mxu0  ;;  %v2657_v60 = vpop.f32.mrf.mxu1 }
 0x7d3   :  { %v2666_v38 = vcombine.low %v2614_v13, %v2616_v40  ;;  %v2667_v59 = vcombine.low %v2655_v11, %v2657_v60 }
 0x7d4   :  { %v3807_v57 = vpop.eup %3806  ;;  %v2618_v47 = vpop.f32.mrf.mxu0 }
 0x7d5   :  { %v2659_v4 = vpop.f32.mrf.mxu1  ;;  %v3809_v5 = vpop.eup %3808  ;;  %v2674_v24 = vrot.slane %v2666_v38, %v6488_v35  ;;  %v2681_v46 = vrot.slane %v2667_v59, %v6488_v35 }
 0x7d6   :  { %v3811_v41 = vpop.eup %3810  ;;  %v2619_v62 = vpop.f32.mrf.mxu0  ;;  %v2574_v6 = vmul.f32 %v3809_v5, %v3807_v57  ;;  %v5801_v57 = vld [vmem:[#allocation2 + $0xe8] ss:$16 sps:$4 sm:$0xff]   ;;  %v5804_v5 = vld [vmem:[#allocation2 + $0xc4] ss:$16 sps:$4 sm:$0xff]  }
 0x7d7   :  { %v2660_v12 = vpop.f32.mrf.mxu1  ;;  %v2573_v63 = vmul.f32 %v3811_v41, %v5523_v14  ;;  %v2682_v29 = vcombine.low %v2674_v24, %v2681_v46  ;;  %v3813_v40 = vpop.eup %3812  ;;  %v5798_v14 = vld [vmem:[#allocation2 + $0xe0] ss:$16 sps:$4 sm:$0xff]   ;;  %v5807_v24 = vld [vmem:[#allocation2 + $0xcc] ss:$16 sps:$4 sm:$0xff]   ;;  %v5815_v41 = vld [vmem:[#allocation2 + $0xc8] ss:$16 sps:$4 sm:$0xff]  }
 0x7d8   :  { %v5812_v46 = vld [vmem:[#allocation2 + $0xc0] ss:$16 sps:$4 sm:$0xff]   ;;  %v5827_v12 = vld [vmem:[#allocation2 + $0xa8] ss:$16 sps:$4 sm:$0xff]  }
 0x7d9   :  { %v5795_v50 = vadd.f32 %v2574_v6, %v2573_v63  ;;  %v2684_v13 = vadd.f32 %v3456_v49, %v2682_v29  ;;  %v5821_v49 = vld [vmem:[#allocation2 + $0xac] ss:$16 sps:$4 sm:$0xff]   ;;  %v5824_v62 = vld [vmem:[#allocation2 + $0xa0] ss:$16 sps:$4 sm:$0xff]   ;;  %v5830_v63 = vld [vmem:[#allocation2 + $0x84] ss:$16 sps:$4 sm:$0xff]  }
 0x7da   :  { %v5833_v6 = vld [vmem:[#allocation2 + $0x8c] ss:$16 sps:$4 sm:$0xff]  }
 0x7db   :  { %3814 = vtanh.f32 %v5795_v50  ;;  %v3457_v11 = vmul.f32 -1.442695, %v2684_v13  ;;  %v2692_v47 = vrot.slane %v2684_v13, 6  ;;  %v5836_v13 = vld [vmem:[#allocation2 + $0x80] ss:$16 sps:$4 sm:$0xff]  }
 0x7dc   :  { %6694 = vst [vmem:[#allocation11_spill] sm:$0xff] %v5836_v13 }
 0x7dd   :  { %3816 = vpow2.f32 %v3457_v11  ;;  %v5839_v11 = vld [vmem:[#allocation2 + $0x88] ss:$16 sps:$4 sm:$0xff]  }
 0x7de   :  { %6695 = vst [vmem:[#allocation62_spill] sm:$0xff] %v5839_v11 }
 0x7e8   :  { %v3815_v60 = vpop.eup %3814 }
 0x7e9   :  { %v2577_v37 = vmul.f32 %v3815_v60, %v3813_v40  ;;  %v5842_v40 = vld [vmem:[#allocation2 + $0x64] ss:$16 sps:$4 sm:$0xff]   ;;  %v5845_v60 = vld [vmem:[#allocation2 + $0x6c] ss:$16 sps:$4 sm:$0xff]  }
 0x7ea   :  { %v3817_v38 = vpop.eup %3816  ;;  %6696 = vst [vmem:[#allocation39_spill] sm:$0xff] %v5842_v40  ;;  %6697 = vst [vmem:[#allocation40_spill] sm:$0xff] %v5845_v60 }
 0x7eb   :  { %v2688_v59 = vadd.f32 1.0, %v3817_v38  ;;  %v2706_v4 = vpack.c.bf16 %v2577_v37, %v2577_v37 }
 0x7ed   :  { %3818 = vrcp.f32 %v2688_v59  ;;  %2740 = vmatmul.mubr.bf16.vlgmr.msra.gmra.mxu0 %v2706_v4  ;;  %2781 = vmatmul.mubr.bf16.vlgmr.msra.gmra.mxu1 %v2706_v4  ;;  %v5849_v4 = vld [vmem:[#allocation2 + $0x60] ss:$16 sps:$4 sm:$0xff]  }
 0x7ee   :  { %2790 = vmatpush1.bf16.msra.mxu0 %v5798_v14  ;;  %2831 = vmatpush1.bf16.msra.mxu1 %v5801_v57  ;;  %3820 = vtanh.f32 %v2692_v47 }
 0x7ef   :  { %2791 = vmatprep.subr.bf16.mxu0 %v5804_v5  ;;  %2832 = vmatprep.subr.bf16.mxu1 %v5807_v24 }
 0x7f0   :  { %2821 = vmatprep.mubr.bf16.mxu0 %v6378_v58  ;;  %2862 = vmatprep.mubr.bf16.mxu1 %v6378_v58 }
 0x7f2   :  { %2792 = vmatpush1.bf16.msra.mxu0 %v5812_v46  ;;  %2833 = vmatpush1.bf16.msra.mxu1 %v5815_v41 }
 0x7f3   :  { %2793 = vmatprep.subr.bf16.mxu0 %v5818_v15  ;;  %2834 = vmatprep.subr.bf16.mxu1 %v5821_v49 }
 0x7f6   :  { %2794 = vmatpush1.bf16.msra.mxu0 %v5824_v62  ;;  %2835 = vmatpush1.bf16.msra.mxu1 %v5827_v12 }
 0x7f7   :  { %2795 = vmatprep.subr.bf16.mxu0 %v5830_v63  ;;  %2836 = vmatprep.subr.bf16.mxu1 %v5833_v6 }
 0x7fa   :  { %v3819_v29 = vpop.eup %3818  ;;  %2796 = vmatpush1.bf16.msra.mxu0 %v5836_v13  ;;  %2837 = vmatpush1.bf16.msra.mxu1 %v5839_v11  ;;  %v5852_v13 = vld [vmem:[#allocation2 + $0x68] ss:$16 sps:$4 sm:$0xff]   ;;  %v5855_v11 = vld [vmem:[#allocation2 + $0x44] ss:$16 sps:$4 sm:$0xff]  }
 0x7fb   :  { %2797 = vmatprep.subr.bf16.mxu0 %v5842_v40  ;;  %2838 = vmatprep.subr.bf16.mxu1 %v5845_v60  ;;  %v2696_v37 = vrot.slane %v3819_v29, 2  ;;  %v3821_v38 = vpop.eup %3820  ;;  %6698 = vst [vmem:[#allocation41_spill] sm:$0xff] %v5855_v11  ;;  %v5858_v40 = vld [vmem:[#allocation2 + $0x4c] ss:$16 sps:$4 sm:$0xff]  }
 0x7fc   :  { %v2699_v59 = vmul.f32 %v3821_v38, %v3819_v29  ;;  %6699 = vst [vmem:[#allocation42_spill] sm:$0xff] %v5858_v40  ;;  %v5870_v38 = vld [vmem:[#allocation2 + $0x24] ss:$16 sps:$4 sm:$0xff]  }
 0x7fd   :  { %v2698_v47 = vmul.f32 %v2696_v37, %v5549_v26  ;;  %v5864_v26 = vld [vmem:[#allocation2 + $0x40] ss:$16 sps:$4 sm:$0xff]   ;;  %v5867_v37 = vld [vmem:[#allocation2 + $0x48] ss:$16 sps:$4 sm:$0xff]   ;;  %6702 = vst [vmem:[#allocation45_spill] sm:$0xff] %v5870_v38 }
 0x7fe   :  { %2798 = vmatpush1.bf16.msra.mxu0 %v5849_v4  ;;  %2839 = vmatpush1.bf16.msra.mxu1 %v5852_v13  ;;  %6700 = vst [vmem:[#allocation43_spill] sm:$0xff] %v5864_v26  ;;  %6701 = vst [vmem:[#allocation44_spill] sm:$0xff] %v5867_v37 }
 0x7ff   :  { %2799 = vmatprep.subr.bf16.mxu0 %v5855_v11  ;;  %2840 = vmatprep.subr.bf16.mxu1 %v5858_v40  ;;  %v5861_v60 = vadd.f32 %v2699_v59, %v2698_v47  ;;  %v5873_v11 = vld [vmem:[#allocation2 + $0x2c] ss:$16 sps:$4 sm:$0xff]   ;;  %v5876_v59 = vld [vmem:[#allocation2 + $0x20] ss:$16 sps:$4 sm:$0xff]   ;;  %v5879_v47 = vld [vmem:[#allocation2 + $0x28] ss:$16 sps:$4 sm:$0xff]  }
 0x800   :  { %6703 = vst [vmem:[#allocation15_spill] sm:$0xff] %v5873_v11  ;;  %6704 = vst [vmem:[#allocation16_spill] sm:$0xff] %v5876_v59 }
 0x801   :  { %3822 = vtanh.f32 %v5861_v60  ;;  %6705 = vst [vmem:[#allocation61_spill] sm:$0xff] %v5879_v47 }
 0x802   :  { %2800 = vmatpush1.bf16.msra.mxu0 %v5864_v26  ;;  %2841 = vmatpush1.bf16.msra.mxu1 %v5867_v37  ;;  %v5882_v26 = vld [vmem:[#allocation2 + $0x4] ss:$16 sps:$4 sm:$0xff]   ;;  %v5885_v37 = vld [vmem:[#allocation2 + $0xc] ss:$16 sps:$4 sm:$0xff]  }
 0x803   :  { %2801 = vmatprep.subr.bf16.mxu0 %v5870_v38  ;;  %2842 = vmatprep.subr.bf16.mxu1 %v5873_v11  ;;  %6706 = vst [vmem:[#allocation31_spill] sm:$0xff] %v5882_v26  ;;  %v5888_v38 = vld [vmem:[#allocation2] ss:$16 sps:$4 sm:$0xff]   ;;  %v5891_v11 = vld [vmem:[#allocation2 + $0x8] ss:$16 sps:$4 sm:$0xff]  }
 0x806   :  { %2802 = vmatpush1.bf16.msra.mxu0 %v5876_v59  ;;  %2843 = vmatpush1.bf16.msra.mxu1 %v5879_v47  ;;  %v2702_v47 = vrot.slane %v3819_v29, 4 }
 0x807   :  { %2803 = vmatprep.subr.bf16.mxu0 %v5882_v26  ;;  %2844 = vmatprep.subr.bf16.mxu1 %v5885_v37 }
 0x80a   :  { %2804 = vmatpush1.bf16.msra.mxu0 %v5888_v38  ;;  %2845 = vmatpush1.bf16.msra.mxu1 %v5891_v11 }
 0x80b   :  { %2901 = vmatprep.subr.bf16.mxu0 %v5371_v36  ;;  %2942 = vmatprep.subr.bf16.mxu1 %v5377_v27  ;;  %v6707_v36 = vld [vmem:[#allocation57_spill] sm:$0xff]  ;;  %v6708_v27 = vld [vmem:[#allocation58_spill] sm:$0xff] }
 0x80e   :  { %v3823_v59 = vpop.eup %3822 }
 0x80f   :  { %v2704_v40 = vmul.f32 %v3823_v59, %v2702_v47 }
 0x811   :  { %v2705_v26 = vpack.c.bf16 %v2704_v40, %v2704_v40 }
 0x813   :  { %2822 = vmatmul.mubr.bf16.vlgmr.msra.gmra.mxu0 %v2705_v26  ;;  %2863 = vmatmul.mubr.bf16.vlgmr.msra.gmra.mxu1 %v2705_v26 }
 0x814   :  { %2902 = vmatpush1.bf16.msra.mxu0 %v5383_v8  ;;  %2943 = vmatpush1.bf16.msra.mxu1 %v5389_v39  ;;  %v6709_v8 = vld [vmem:[#allocation59_spill] sm:$0xff]  ;;  %v6710_v39 = vld [vmem:[#allocation60_spill] sm:$0xff] }
 0x815   :  { %2903 = vmatprep.subr.bf16.mxu0 %v6651_v31  ;;  %2944 = vmatprep.subr.bf16.mxu1 %v6652_v22  ;;  %v6711_v31 = vld [vmem:[#allocation12_spill] sm:$0xff]  ;;  %v6712_v22 = vld [vmem:[#allocation13_spill] sm:$0xff] }
 0x816   :  { %2933 = vmatprep.mubr.bf16.mxu0 %v6378_v58  ;;  %2974 = vmatprep.mubr.bf16.mxu1 %v6378_v58 }
 0x818   :  { %2904 = vmatpush1.bf16.msra.mxu0 %v6653_v20  ;;  %2945 = vmatpush1.bf16.msra.mxu1 %v6654_v18  ;;  %v6713_v20 = vld [vmem:[#allocation14_spill] sm:$0xff]  ;;  %v6714_v18 = vld [vmem:[#allocation33_spill] sm:$0xff] }
 0x819   :  { %2905 = vmatprep.subr.bf16.mxu0 %v6655_v52  ;;  %2946 = vmatprep.subr.bf16.mxu1 %v6656_v21  ;;  %v6715_v52 = vld [vmem:[#allocation34_spill] sm:$0xff]  ;;  %v6716_v21 = vld [vmem:[#allocation35_spill] sm:$0xff] }
 0x81c   :  { %2906 = vmatpush1.bf16.msra.mxu0 %v6657_v23  ;;  %2947 = vmatpush1.bf16.msra.mxu1 %v6658_v0  ;;  %v6717_v23 = vld [vmem:[#allocation36_spill] sm:$0xff]  ;;  %v6718_v0 = vld [vmem:[#allocation37_spill] sm:$0xff] }
 0x81d   :  { %2907 = vmatprep.subr.bf16.mxu0 %v6659_v25  ;;  %2948 = vmatprep.subr.bf16.mxu1 %v6660_v28  ;;  %v6719_v25 = vld [vmem:[#allocation38_spill] sm:$0xff]  ;;  %v6720_v28 = vld [vmem:[#allocation47_spill] sm:$0xff] }
 0x820   :  { %2908 = vmatpush1.bf16.msra.mxu0 %v6661_v54  ;;  %2949 = vmatpush1.bf16.msra.mxu1 %v5582_v30  ;;  %v6721_v54 = vld [vmem:[#allocation50_spill] sm:$0xff]  ;;  %v6722_v30 = vld [vmem:[#allocation51_spill] sm:$0xff] }
 0x821   :  { %2909 = vmatprep.subr.bf16.mxu0 %v5588_v48  ;;  %2950 = vmatprep.subr.bf16.mxu1 %v5594_v34  ;;  %v6723_v48 = vld [vmem:[#allocation53_spill] sm:$0xff]  ;;  %v6724_v34 = vld [vmem:[#allocation54_spill] sm:$0xff] }
 0x824   :  { %2910 = vmatpush1.bf16.msra.mxu0 %v5600_v61  ;;  %2951 = vmatpush1.bf16.msra.mxu1 %v5606_v32  ;;  %v6725_v61 = vld [vmem:[#allocation17_spill] sm:$0xff]  ;;  %v6726_v32 = vld [vmem:[#allocation18_spill] sm:$0xff] }
 0x825   :  { %2911 = vmatprep.subr.bf16.mxu0 %v5612_v1  ;;  %2952 = vmatprep.subr.bf16.mxu1 %v5618_v10  ;;  %v6727_v1 = vld [vmem:[#allocation19_spill] sm:$0xff]  ;;  %v6728_v10 = vld [vmem:[#allocation20_spill] sm:$0xff] }
 0x828   :  { %2912 = vmatpush1.bf16.msra.mxu0 %v5624_v55  ;;  %2953 = vmatpush1.bf16.msra.mxu1 %v5630_v51  ;;  %v6729_v55 = vld [vmem:[#allocation21_spill] sm:$0xff]  ;;  %v6730_v51 = vld [vmem:[#allocation22_spill] sm:$0xff] }
 0x829   :  { %2913 = vmatprep.subr.bf16.mxu0 %v5636_v33  ;;  %2954 = vmatprep.subr.bf16.mxu1 %v5642_v56  ;;  %v6731_v33 = vld [vmem:[#allocation23_spill] sm:$0xff]  ;;  %v6732_v56 = vld [vmem:[#allocation24_spill] sm:$0xff] }
 0x82c   :  { %2914 = vmatpush1.bf16.msra.mxu0 %v5648_v16  ;;  %2955 = vmatpush1.bf16.msra.mxu1 %v5654_v17  ;;  %v6733_v16 = vld [vmem:[#allocation25_spill] sm:$0xff]  ;;  %v6734_v17 = vld [vmem:[#allocation26_spill] sm:$0xff] }
 0x82d   :  { %2915 = vmatprep.subr.bf16.mxu0 %v5660_v2  ;;  %2956 = vmatprep.subr.bf16.mxu1 %v5666_v42  ;;  %v6735_v2 = vld [vmem:[#allocation27_spill] sm:$0xff]  ;;  %v6736_v42 = vld [vmem:[#allocation28_spill] sm:$0xff] }
 0x830   :  { %2916 = vmatpush1.bf16.msra.mxu0 %v5672_v43  ;;  %2957 = vmatpush1.bf16.msra.mxu1 %v5678_v44  ;;  %v6737_v43 = vld [vmem:[#allocation29_spill] sm:$0xff]  ;;  %v6738_v44 = vld [vmem:[#allocation30_spill] sm:$0xff] }
 0x831   :  { %3028 = vmatprep.subr.bf16.mxu0 %v5681_v7  ;;  %3069 = vmatprep.subr.bf16.mxu1 %v5684_v45 }
 0x833   :  { %2934 = vmatmul.mubr.bf16.vlgmr.msra.gmra.mxu0 %v2705_v26  ;;  %2975 = vmatmul.mubr.bf16.vlgmr.msra.gmra.mxu1 %v2705_v26 }
 0x834   :  { %3029 = vmatpush1.bf16.msra.mxu0 %v6707_v36  ;;  %3070 = vmatpush1.bf16.msra.mxu1 %v6708_v27 }
 0x835   :  { %3030 = vmatprep.subr.bf16.mxu0 %v6709_v8  ;;  %3071 = vmatprep.subr.bf16.mxu1 %v6710_v39 }
 0x836   :  { %3060 = vmatprep.mubr.bf16.mxu0 %v6378_v58  ;;  %3101 = vmatprep.mubr.bf16.mxu1 %v6378_v58 }
 0x838   :  { %3031 = vmatpush1.bf16.msra.mxu0 %v6711_v31  ;;  %3072 = vmatpush1.bf16.msra.mxu1 %v6712_v22 }
 0x839   :  { %3032 = vmatprep.subr.bf16.mxu0 %v6713_v20  ;;  %3073 = vmatprep.subr.bf16.mxu1 %v6714_v18 }
 0x83c   :  { %3033 = vmatpush1.bf16.msra.mxu0 %v6715_v52  ;;  %3074 = vmatpush1.bf16.msra.mxu1 %v6716_v21 }
 0x83d   :  { %3034 = vmatprep.subr.bf16.mxu0 %v6717_v23  ;;  %3075 = vmatprep.subr.bf16.mxu1 %v6718_v0 }
 0x840   :  { %3035 = vmatpush1.bf16.msra.mxu0 %v6719_v25  ;;  %3076 = vmatpush1.bf16.msra.mxu1 %v6720_v28 }
 0x841   :  { %3036 = vmatprep.subr.bf16.mxu0 %v6721_v54  ;;  %3077 = vmatprep.subr.bf16.mxu1 %v6722_v30 }
 0x844   :  { %3037 = vmatpush1.bf16.msra.mxu0 %v6723_v48  ;;  %3078 = vmatpush1.bf16.msra.mxu1 %v6724_v34 }
 0x845   :  { %3038 = vmatprep.subr.bf16.mxu0 %v6725_v61  ;;  %3079 = vmatprep.subr.bf16.mxu1 %v6726_v32 }
 0x848   :  { %3039 = vmatpush1.bf16.msra.mxu0 %v6727_v1  ;;  %3080 = vmatpush1.bf16.msra.mxu1 %v6728_v10 }
 0x849   :  { %3040 = vmatprep.subr.bf16.mxu0 %v6729_v55  ;;  %3081 = vmatprep.subr.bf16.mxu1 %v6730_v51 }
 0x84c   :  { %3041 = vmatpush1.bf16.msra.mxu0 %v6731_v33  ;;  %3082 = vmatpush1.bf16.msra.mxu1 %v6732_v56 }
 0x84d   :  { %3042 = vmatprep.subr.bf16.mxu0 %v6733_v16  ;;  %3083 = vmatprep.subr.bf16.mxu1 %v6734_v17 }
 0x850   :  { %3043 = vmatpush1.bf16.msra.mxu0 %v6735_v2  ;;  %3084 = vmatpush1.bf16.msra.mxu1 %v6736_v42 }
 0x851   :  { %3110 = vmatprep.subr.bf16.mxu0 %v6737_v43  ;;  %3151 = vmatprep.subr.bf16.mxu1 %v6738_v44 }
 0x8ad   :  { %v2741_v7 = vpop.f32.mrf.mxu0  ;;  %v2782_v45 = vpop.f32.mrf.mxu1 }
 0x8af   :  { %v2743_v29 = vpop.f32.mrf.mxu0  ;;  %v2784_v40 = vpop.f32.mrf.mxu1 }
 0x8b1   :  { %v2745_v26 = vpop.f32.mrf.mxu0  ;;  %v2786_v59 = vpop.f32.mrf.mxu1 }
 0x8b3   :  { %v2746_v47 = vpop.f32.mrf.mxu0  ;;  %v2787_v36 = vpop.f32.mrf.mxu1 }
 0x8b4   :  { %v3461_v36 = vld [vmem:[%s6069_s0 + $0x38] sm:$0xff] }
 0x8d3   :  { %v2823_v27 = vpop.f32.mrf.mxu0  ;;  %v2864_v8 = vpop.f32.mrf.mxu1 }
 0x8d4   :  { %v2824_v39 = vadd.f32 %v2823_v27, %v2741_v7  ;;  %v2865_v30 = vadd.f32 %v2864_v8, %v2782_v45 }
 0x8d5   :  { %v2825_v31 = vpop.f32.mrf.mxu0  ;;  %v2866_v22 = vpop.f32.mrf.mxu1 }
 0x8d6   :  { %v2871_v20 = vadd.f32 %v2824_v39, %v4663_v9  ;;  %v2826_v18 = vadd.f32 %v2825_v31, %v2743_v29  ;;  %v2873_v48 = vadd.f32 %v2865_v30, %v4670_v3  ;;  %v2867_v34 = vadd.f32 %v2866_v22, %v2784_v40  ;;  %v6747_v30 = vld [vmem:[#allocation45_spill] sm:$0xff] }
 0x8d7   :  { %v2827_v52 = vpop.f32.mrf.mxu0  ;;  %v2868_v21 = vpop.f32.mrf.mxu1 }
 0x8d8   :  { %v3458_v23 = vmul.f32 -1.442695, %v2871_v20  ;;  %v2872_v0 = vadd.f32 %v2826_v18, %v4665_v53  ;;  %v3460_v61 = vmul.f32 -1.442695, %v2873_v48  ;;  %v2874_v1 = vadd.f32 %v2867_v34, %v6487_v19  ;;  %v6748_v48 = vld [vmem:[#allocation15_spill] sm:$0xff]  ;;  %v6749_v34 = vld [vmem:[#allocation16_spill] sm:$0xff] }
 0x8d9   :  { %v2828_v25 = vpop.f32.mrf.mxu0  ;;  %v2869_v28 = vpop.f32.mrf.mxu1 }
 0x8da   :  { %3824 = vpow2.f32 %v3458_v23  ;;  %v3459_v54 = vmul.f32 -1.442695, %v2872_v0 }
 0x8dc   :  { %3826 = vpow2.f32 %v3459_v54 }
 0x8dd   :  { %3828 = vpow2.f32 %v3460_v61 }
 0x8e7   :  { %v3825_v32 = vpop.eup %3824 }
 0x8e8   :  { %v2884_v10 = vadd.f32 1.0, %v3825_v32 }
 0x8e9   :  { %v3827_v55 = vpop.eup %3826 }
 0x8ea   :  { %3830 = vrcp.f32 %v2884_v10  ;;  %v2885_v51 = vadd.f32 1.0, %v3827_v55  ;;  %v3829_v2 = vpop.eup %3828  ;;  %v4128_v10 = vmov 0.0   ;;  %v3235_v55 = vld [vmem:[%s6074_s5 + $0x78] sm:$0xff] }
 0x8eb   :  { %3832 = vtanh.f32 %v2874_v1  ;;  %v2886_v47 = vadd.f32 1.0, %v3829_v2  ;;  %v3226_v2 = vld [vmem:[%s6074_s5 + $0x30] sm:$0xff] }
 0x8ec   :  { %3834 = vrcp.f32 %v2885_v51  ;;  %v3231_v51 = vld [vmem:[%s6074_s5 + $0x58] sm:$0xff] }
 0x8ed   :  { %3836 = vrcp.f32 %v2886_v47 }
 0x8f3   :  { %v2935_v33 = vpop.f32.mrf.mxu0  ;;  %v2976_v56 = vpop.f32.mrf.mxu1 }
 0x8f5   :  { %v2937_v16 = vpop.f32.mrf.mxu0  ;;  %v2978_v17 = vpop.f32.mrf.mxu1 }
 0x8f6   :  { %v2987_v42 = vcombine.low %v2935_v33, %v2937_v16  ;;  %v2988_v43 = vcombine.low %v2976_v56, %v2978_v17  ;;  %v3230_v33 = vld [vmem:[%s6074_s5 + $0x50] sm:$0xff]  ;;  %v3229_v56 = vld [vmem:[%s6074_s5 + $0x48] sm:$0xff]  ;;  %v3228_v16 = vld [vmem:[%s6074_s5 + $0x40] sm:$0xff] }
 0x8f7   :  { %v3831_v44 = vpop.eup %3830  ;;  %v2939_v7 = vpop.f32.mrf.mxu0  ;;  %v3227_v17 = vld [vmem:[%s6074_s5 + $0x38] sm:$0xff] }
 0x8f8   :  { %v2980_v45 = vpop.f32.mrf.mxu1  ;;  %v3833_v29 = vpop.eup %3832  ;;  %v2995_v40 = vrot.slane %v2987_v42, %v6488_v35  ;;  %v3002_v26 = vrot.slane %v2988_v43, %v6488_v35  ;;  %v3225_v42 = vld [vmem:[%s6074_s5 + $0x28] sm:$0xff]  ;;  %v3224_v43 = vld [vmem:[%s6074_s5 + $0x20] sm:$0xff]  ;;  %v3222_v7 = vld [vmem:[%s6074_s5 + $0x10] sm:$0xff] }
 0x8f9   :  { %v3835_v59 = vpop.eup %3834  ;;  %v2940_v27 = vpop.f32.mrf.mxu0  ;;  %v2895_v31 = vmul.f32 %v3833_v29, %v3831_v44  ;;  %v3223_v44 = vld [vmem:[%s6074_s5 + $0x18] sm:$0xff]  ;;  %v3221_v45 = vld [vmem:[%s6074_s5 + $0x8] sm:$0xff]  ;;  %v3220_v29 = vld [vmem:[%s6074_s5] sm:$0xff] }
 0x8fa   :  { %v2981_v8 = vpop.f32.mrf.mxu1  ;;  %v2894_v39 = vmul.f32 %v3835_v59, %v5795_v50  ;;  %v3003_v22 = vcombine.low %v2995_v40, %v3002_v26  ;;  %v3837_v35 = vpop.eup %3836 }
 0x8fc   :  { %v5974_v20 = vadd.f32 %v2895_v31, %v2894_v39  ;;  %v3005_v18 = vadd.f32 %v3461_v36, %v3003_v22 }
 0x8fe   :  { %3838 = vtanh.f32 %v5974_v20  ;;  %v3462_v52 = vmul.f32 -1.442695, %v3005_v18  ;;  %v3013_v28 = vrot.slane %v3005_v18, 6 }
 0x900   :  { %3840 = vpow2.f32 %v3462_v52 }
 0x90b   :  { %v3839_v21 = vpop.eup %3838 }
 0x90c   :  { %v2898_v23 = vmul.f32 %v3839_v21, %v3837_v35 }
 0x90d   :  { %v3841_v0 = vpop.eup %3840 }
 0x90e   :  { %v3009_v25 = vadd.f32 1.0, %v3841_v0  ;;  %v3027_v54 = vpack.c.bf16 %v2898_v23, %v2898_v23 }
 0x910   :  { %3842 = vrcp.f32 %v3009_v25  ;;  %3061 = vmatmul.mubr.bf16.vlgmr.msra.gmra.mxu0 %v3027_v54  ;;  %3102 = vmatmul.mubr.bf16.vlgmr.msra.gmra.mxu1 %v3027_v54 }
 0x911   :  { %3111 = vmatpush1.bf16.msra.mxu0 %v5798_v14  ;;  %3152 = vmatpush1.bf16.msra.mxu1 %v5801_v57  ;;  %3844 = vtanh.f32 %v3013_v28  ;;  %v6739_v14 = vld [vmem:[#allocation11_spill] sm:$0xff] }
 0x912   :  { %3112 = vmatprep.subr.bf16.mxu0 %v5804_v5  ;;  %3153 = vmatprep.subr.bf16.mxu1 %v5807_v24  ;;  %v6741_v57 = vld [vmem:[#allocation39_spill] sm:$0xff]  ;;  %v6742_v5 = vld [vmem:[#allocation40_spill] sm:$0xff] }
 0x913   :  { %3142 = vmatprep.mubr.bf16.mxu0 %v6378_v58  ;;  %3183 = vmatprep.mubr.bf16.mxu1 %v6378_v58  ;;  %v6740_v58 = vld [vmem:[#allocation62_spill] sm:$0xff] }
 0x915   :  { %3113 = vmatpush1.bf16.msra.mxu0 %v5812_v46  ;;  %3154 = vmatpush1.bf16.msra.mxu1 %v5815_v41 }
 0x916   :  { %3114 = vmatprep.subr.bf16.mxu0 %v5818_v15  ;;  %3155 = vmatprep.subr.bf16.mxu1 %v5821_v49  ;;  %v6743_v49 = vld [vmem:[#allocation41_spill] sm:$0xff] }
 0x919   :  { %3115 = vmatpush1.bf16.msra.mxu0 %v5824_v62  ;;  %3156 = vmatpush1.bf16.msra.mxu1 %v5827_v12  ;;  %v6744_v62 = vld [vmem:[#allocation42_spill] sm:$0xff] }
 0x91a   :  { %3116 = vmatprep.subr.bf16.mxu0 %v5830_v63  ;;  %3157 = vmatprep.subr.bf16.mxu1 %v5833_v6  ;;  %v6745_v63 = vld [vmem:[#allocation43_spill] sm:$0xff]  ;;  %v6746_v6 = vld [vmem:[#allocation44_spill] sm:$0xff] }
 0x91d   :  { %v3843_v50 = vpop.eup %3842  ;;  %3117 = vmatpush1.bf16.msra.mxu0 %v6739_v14  ;;  %3158 = vmatpush1.bf16.msra.mxu1 %v6740_v58 }
 0x91e   :  { %3118 = vmatprep.subr.bf16.mxu0 %v6741_v57  ;;  %3159 = vmatprep.subr.bf16.mxu1 %v6742_v5  ;;  %v3017_v24 = vrot.slane %v3843_v50, 2  ;;  %v3845_v46 = vpop.eup %3844 }
 0x91f   :  { %v3020_v41 = vmul.f32 %v3845_v46, %v3843_v50 }
 0x920   :  { %v3019_v15 = vmul.f32 %v3017_v24, %v5861_v60  ;;  %v6750_v60 = vld [vmem:[#allocation61_spill] sm:$0xff] }
 0x921   :  { %3119 = vmatpush1.bf16.msra.mxu0 %v5849_v4  ;;  %3160 = vmatpush1.bf16.msra.mxu1 %v5852_v13  ;;  %v6751_v4 = vld [vmem:[#allocation31_spill] sm:$0xff]  ;;  %v3023_v13 = vrot.slane %v3843_v50, 4 }
 0x922   :  { %3120 = vmatprep.subr.bf16.mxu0 %v6743_v49  ;;  %3161 = vmatprep.subr.bf16.mxu1 %v6744_v62  ;;  %v3021_v12 = vadd.f32 %v3020_v41, %v3019_v15 }
 0x924   :  { %3846 = vtanh.f32 %v3021_v12 }
 0x925   :  { %3121 = vmatpush1.bf16.msra.mxu0 %v6745_v63  ;;  %3162 = vmatpush1.bf16.msra.mxu1 %v6746_v6 }
 0x926   :  { %3122 = vmatprep.subr.bf16.mxu0 %v6747_v30  ;;  %3163 = vmatprep.subr.bf16.mxu1 %v6748_v48 }
 0x929   :  { %3123 = vmatpush1.bf16.msra.mxu0 %v6749_v34  ;;  %3164 = vmatpush1.bf16.msra.mxu1 %v6750_v60 }
 0x92a   :  { %3124 = vmatprep.subr.bf16.mxu0 %v6751_v4  ;;  %3165 = vmatprep.subr.bf16.mxu1 %v5885_v37  ;;  %v3234_v37 = vld [vmem:[%s6074_s5 + $0x70] sm:$0xff] }
 0x92d   :  { %3125 = vmatpush1.bf16.msra.mxu0 %v5888_v38  ;;  %3166 = vmatpush1.bf16.msra.mxu1 %v5891_v11  ;;  %v3233_v11 = vld [vmem:[%s6074_s5 + $0x68] sm:$0xff]  ;;  %v3232_v38 = vld [vmem:[%s6074_s5 + $0x60] sm:$0xff] }
 0x92e   :  { %3484 = vmatprep.subr.mxu0 %v4128_v10 }
 0x931   :  { %v3847_v61 = vpop.eup %3846 }
 0x932   :  { %v3025_v32 = vmul.f32 %v3847_v61, %v3023_v13  ;;  %v3466_v13 = vld [vmem:[%s6075_s6] ss:$0 sm:$0xff] }
 0x934   :  { %v3026_v1 = vpack.c.bf16 %v3025_v32, %v3025_v32 }
 0x936   :  { %3143 = vmatmul.mubr.bf16.vlgmr.msra.gmra.mxu0 %v3026_v1  ;;  %3184 = vmatmul.mubr.bf16.vlgmr.msra.gmra.mxu1 %v3026_v1 }
 0x937   :  { %3485 = vmatpush3.msra.mxu0 %v3235_v55  ;;  %3516 = vmatprep.mubr.msk.f32.mxu0 %vm4129_vm0, %v4128_v10 }
 0x938   :  { %3486 = vmatprep.subr.mxu0 %v4128_v10 }
 0x939   :  { %3487 = vmatpush3.msra.mxu0 %v3234_v37 }
 0x93a   :  { %3488 = vmatprep.subr.mxu0 %v4128_v10 }
 0x93b   :  { %3489 = vmatpush3.msra.mxu0 %v3233_v11 }
 0x93c   :  { %3490 = vmatprep.subr.mxu0 %v4128_v10 }
 0x93d   :  { %3491 = vmatpush3.msra.mxu0 %v3232_v38 }
 0x93e   :  { %3492 = vmatprep.subr.mxu0 %v4128_v10 }
 0x93f   :  { %3493 = vmatpush3.msra.mxu0 %v3231_v51 }
 0x940   :  { %3494 = vmatprep.subr.mxu0 %v4128_v10 }
 0x941   :  { %3495 = vmatpush3.msra.mxu0 %v3230_v33 }
 0x942   :  { %3496 = vmatprep.subr.mxu0 %v4128_v10 }
 0x943   :  { %3497 = vmatpush3.msra.mxu0 %v3229_v56 }
 0x944   :  { %3498 = vmatprep.subr.mxu0 %v4128_v10 }
 0x945   :  { %3499 = vmatpush3.msra.mxu0 %v3228_v16 }
 0x946   :  { %3500 = vmatprep.subr.mxu0 %v4128_v10 }
 0x947   :  { %3501 = vmatpush3.msra.mxu0 %v3227_v17 }
 0x948   :  { %3502 = vmatprep.subr.mxu0 %v4128_v10 }
 0x949   :  { %3503 = vmatpush3.msra.mxu0 %v3226_v2 }
 0x94a   :  { %3504 = vmatprep.subr.mxu0 %v4128_v10 }
 0x94b   :  { %3505 = vmatpush3.msra.mxu0 %v3225_v42 }
 0x94c   :  { %3506 = vmatprep.subr.mxu0 %v4128_v10 }
 0x94d   :  { %3507 = vmatpush3.msra.mxu0 %v3224_v43 }
 0x94e   :  { %3508 = vmatprep.subr.mxu0 %v4128_v10 }
 0x94f   :  { %3509 = vmatpush3.msra.mxu0 %v3223_v44 }
 0x950   :  { %3510 = vmatprep.subr.mxu0 %v4128_v10 }
 0x951   :  { %3511 = vmatpush3.msra.mxu0 %v3222_v7 }
 0x952   :  { %3512 = vmatprep.subr.mxu0 %v4128_v10 }
 0x953   :  { %3513 = vmatpush3.msra.mxu0 %v3221_v45 }
 0x954   :  { %3514 = vmatprep.subr.mxu0 %v4128_v10 }
 0x955   :  { %3515 = vmatpush3.msra.mxu0 %v3220_v29 }
 0x9d0   :  { %v3062_v40 = vpop.f32.mrf.mxu0  ;;  %v3103_v26 = vpop.f32.mrf.mxu1 }
 0x9d2   :  { %v3064_v59 = vpop.f32.mrf.mxu0  ;;  %v3105_v47 = vpop.f32.mrf.mxu1 }
 0x9d4   :  { %v3066_v36 = vpop.f32.mrf.mxu0  ;;  %v3107_v27 = vpop.f32.mrf.mxu1 }
 0x9d6   :  { %v3067_v8 = vpop.f32.mrf.mxu0  ;;  %v3108_v39 = vpop.f32.mrf.mxu1 }
 0x9f6   :  { %v3144_v31 = vpop.f32.mrf.mxu0  ;;  %v3185_v22 = vpop.f32.mrf.mxu1 }
 0x9f7   :  { %v3145_v18 = vadd.f32 %v3144_v31, %v3062_v40  ;;  %v3186_v57 = vadd.f32 %v3185_v22, %v3103_v26 }
 0x9f8   :  { %v3146_v52 = vpop.f32.mrf.mxu0  ;;  %v3187_v35 = vpop.f32.mrf.mxu1 }
 0x9f9   :  { %v3192_v21 = vadd.f32 %v3145_v18, %v4663_v9  ;;  %v3147_v23 = vadd.f32 %v3146_v52, %v3064_v59  ;;  %v3194_v5 = vadd.f32 %v3186_v57, %v4670_v3  ;;  %v3188_v24 = vadd.f32 %v3187_v35, %v3105_v47 }
 0x9fa   :  { %v3148_v0 = vpop.f32.mrf.mxu0  ;;  %v3189_v25 = vpop.f32.mrf.mxu1 }
 0x9fb   :  { %v3463_v28 = vmul.f32 -1.442695, %v3192_v21  ;;  %v3193_v54 = vadd.f32 %v3147_v23, %v4665_v53  ;;  %v3465_v46 = vmul.f32 -1.442695, %v3194_v5  ;;  %v3195_v15 = vadd.f32 %v3188_v24, %v6487_v19 }
 0x9fc   :  { %v3149_v50 = vpop.f32.mrf.mxu0  ;;  %v3190_v14 = vpop.f32.mrf.mxu1 }
 0x9fd   :  { %3848 = vpow2.f32 %v3463_v28  ;;  %v3464_v58 = vmul.f32 -1.442695, %v3193_v54 }
 0x9ff   :  { %3850 = vpow2.f32 %v3464_v58 }
 0xa00   :  { %3852 = vpow2.f32 %v3465_v46 }
 0xa0a   :  { %v3849_v41 = vpop.eup %3848 }
 0xa0b   :  { %v3205_v9 = vadd.f32 1.0, %v3849_v41 }
 0xa0c   :  { %v3851_v49 = vpop.eup %3850 }
 0xa0d   :  { %3854 = vrcp.f32 %v3205_v9  ;;  %v3206_v62 = vadd.f32 1.0, %v3851_v49  ;;  %v3853_v53 = vpop.eup %3852 }
 0xa0e   :  { %3856 = vtanh.f32 %v3195_v15  ;;  %v3207_v30 = vadd.f32 1.0, %v3853_v53 }
 0xa0f   :  { %3858 = vrcp.f32 %v3206_v62 }
 0xa10   :  { %3860 = vrcp.f32 %v3207_v30 }
 0xa1a   :  { %v3855_v12 = vpop.eup %3854 }
 0xa1b   :  { %v3857_v63 = vpop.eup %3856 }
 0xa1c   :  { %v3859_v6 = vpop.eup %3858  ;;  %v3216_v3 = vmul.f32 %v3857_v63, %v3855_v12 }
 0xa1d   :  { %v3215_v48 = vmul.f32 %v3859_v6, %v5974_v20  ;;  %v3861_v60 = vpop.eup %3860 }
 0xa1f   :  { %v3217_v34 = vadd.f32 %v3216_v3, %v3215_v48 }
 0xa21   :  { %3862 = vtanh.f32 %v3217_v34 }
 0xa2e   :  { %v3863_v19 = vpop.eup %3862 }
 0xa2f   :  { %v3219_v4 = vmul.f32 %v3863_v19, %v3861_v60 }
 0xa31   :  { %3517 = vmatmul.mubr.f32.vlgmr.msra.gmra.mxu0 %v3219_v4 }
 0xaf1   :  { %v3309_v61 = vpop.f32.mrf.mxu0 }
 0xaf2   :  { %v3310_v32 = vadd.f32 %v3466_v13, %v3309_v61 }
 0xaf3   :  { %v3518_v1 = vpop.f32.mrf.mxu0 }
 0xaf4   :  { %3314 = vst.msk [vmem:[#allocation7] sm:$0x3] %vm3313_vm1, %v3310_v32 }
 0xaf5   :  { %4107 = shalt.err (!%p4104_p0)
}
 0xaf6   :  { %3324 = dma.vmem_to_hbm [thread:$0]  %s3322_s19, 32, %s6076_s7, [#allocation4]  }
 0xaf7   :  { %4120 = dma.done.wait [#allocation4], 32  }
 0xaf8   :  { %4121 = vsyncadd [#allocation4], 4294967264 }
 0xaf9   :  { %3328 = vsyncpa [#allocation3], 1 }
 0xafa   :  { %3329 = vsyncpa [#allocation6], 1 }
 0xafb   :  { %3330 = vsyncpa [#allocation4], 1 }

</bundles_post_ra>
